<compile_context>
chip_gen: v5e
topology: v5e:2x2
jax: 0.10.0
libtpu: 0.0.40
codegen_flags: <defaults>
</compile_context>

<pallas_src>
import functools

import jax
import jax.numpy as jnp
import numpy as np
from jax.experimental import pallas as pl
from jax.experimental.pallas import tpu as pltpu


def _atp_kernel(*refs, n_hidden, T, D, training, compute_dtype):
    """refs = (x_flat, W0, b0, ..., W_hid..., W_out, b_out, y)."""
    xf_ref = refs[0]
    layer_refs = refs[1:-1]
    y_ref = refs[-1]

    # ---- MLP over the flat (bb, T*D) view ---------------------------------
    # Cast immediately so the full f32 load dies here; the weighted-sum loop
    # below re-reads slices from the ref rather than keeping xf live.
    h = xf_ref[...].astype(compute_dtype)

    # Hidden Linear + ReLU layers (lane-dense padded widths, f32 MXU accum).
    for li in range(n_hidden):
        w = layer_refs[2 * li][...]           # (K, H_pad), H_pad % 128 == 0
        b = layer_refs[2 * li + 1][...]       # (1, H_pad) f32, zeros in pad
        h = jnp.dot(h, w, preferred_element_type=jnp.float32) + b
        h = jnp.maximum(h, 0.0).astype(compute_dtype)

    # Final Linear -> per-frame logits g: (bb, T) f32.  Logit width is left
    # unpadded so no masking is needed before softmax / argmax.
    g = jnp.dot(h, layer_refs[-2][...], preferred_element_type=jnp.float32)
    g = g + layer_refs[-1][...]

    if training:
        m = jnp.max(g, axis=1, keepdims=True)
        e = jnp.exp(g - m)
        denom = jnp.sum(e, axis=1, keepdims=True)
        if np.dtype(compute_dtype) == np.dtype(np.float32):
            wts = e / denom                               # exact-f32 path
        else:
            # Divide moves off the VPU onto the otherwise-idle EUP slot.
            wts = e * pl.reciprocal(denom, approx=True)   # (bb, T) f32
    else:
        # argmax over frames -> one-hot (first max wins, like torch.argmax).
        # TODO(synk): an all-NaN logit row selects no frame here (y = 0),
        # whereas torch.argmax would pick the NaN index; pathological only.
        mx = jnp.max(g, axis=1, keepdims=True)
        iota = jax.lax.broadcasted_iota(jnp.int32, g.shape, 1)
        first_idx = jnp.min(jnp.where(g >= mx, iota, T), axis=1, keepdims=True)
        wts = (iota == first_idx).astype(jnp.float32)

    # y = sum_t x[:, t, :] * wts[:, t]; unrolled over T (small, e.g. 8) using
    # static, lane-aligned D-wide slices read straight from the VMEM ref (no
    # 3-D temporary, no pinned f32 copy of the whole tile).
    bb = y_ref.shape[0]
    acc = jnp.zeros((bb, D), jnp.float32)
    for t in range(T):
        acc = acc + xf_ref[:, t * D:(t + 1) * D] * wts[:, t:t + 1]
    y_ref[...] = acc.astype(y_ref.dtype)


def _pick_block_b(B, row_bytes, x_tile_budget=16 * 1024 * 1024):
    """Largest multiple-of-8 divisor of B that keeps the double-buffered
    x_flat tile within budget and is <= 512.  Prefer a grid of >= 4 steps so
    both v7x TensorCores get >= 2 pipelined steps each; fall back to >= 2
    (single-TC pipelining on v5e/v6e), then to whatever divides B."""
    cap = min(512, B, max(8, x_tile_budget // (2 * row_bytes)))
    cands = [bb for bb in range(8, cap + 1, 8) if B % bb == 0]
    if not cands:
        return B
    deep = [bb for bb in cands if B // bb >= 4]
    if deep:
        return max(deep)
    multi = [bb for bb in cands if B // bb >= 2]
    return max(multi) if multi else max(cands)


def _pad_params_lane_dense(params, compute_dtype):
    """Zero-pad every hidden width up to a multiple of 128 lanes.

    ReLU(x @ [W|0] + [b|0]) = [ReLU(x @ W + b) | 0] and the next layer's
    extra (zero) input rows contribute nothing, so the math is identical.
    The final (logit) width is left at T.  Weights are shipped in
    compute_dtype (bf16 by default: half the DMA/VMEM); biases stay f32.
    """
    out = []
    prev_pad = 0
    n = len(params)
    for li, (w, b) in enumerate(params):
        w = jnp.asarray(w, jnp.float32)
        b = jnp.asarray(b, jnp.float32)
        if prev_pad:
            w = jnp.pad(w, ((0, prev_pad), (0, 0)))
        if li < n - 1:
            pad = (-w.shape[1]) % 128
            if pad:
                w = jnp.pad(w, ((0, 0), (0, pad)))
                b = jnp.pad(b, ((0, 0), (0, pad)))
            prev_pad = pad
        else:
            prev_pad = 0
        out.append((w.astype(compute_dtype), b))
    return out


def _tile_bytes(rows, cols, itemsize):
    """Bytes for a VMEM-resident (rows, cols) block after (8,128) padding."""
    return (-(-rows // 8) * 8) * (-(-cols // 128) * 128) * itemsize


def _vmem_estimate(block_b, T, D, padded_params, compute_dtype):
    cbytes = np.dtype(compute_dtype).itemsize
    est = 2 * _tile_bytes(block_b, T * D, 4)      # double-buffered x_flat tile
    est += 2 * _tile_bytes(block_b, D, 4)         # double-buffered y tile
    widest = max(T, 128)
    for (w, b) in padded_params:
        # counted double-buffered even if Buffered(1) succeeds -> conservative
        est += 2 * (_tile_bytes(*w.shape, cbytes) + _tile_bytes(*b.shape, 4))
        widest = max(widest, w.shape[1])
    est += _tile_bytes(block_b, T * D, cbytes)    # compute_dtype copy of x
    est += 4 * _tile_bytes(block_b, widest, 4)    # h / g / wts / acc (rough)
    return est


def _vmem_cap_bytes():
    """Physical per-core VMEM; conservative 64 MiB (v7x) if the query fails."""
    try:
        return int(pltpu.get_tpu_info().vmem_capacity_bytes)
    except Exception:
        return 64 * 1024 * 1024


def atemporal_probe(x, params, *, training=True, block_b=None,
                    compute_dtype=jnp.bfloat16):
    """x: (B, T, D); params: list of (W, b) with b shaped (1, out_dim)."""
    B, T, D = x.shape
    x_flat = x.reshape(B, T * D)     # free reshape; the ONLY view DMA'd in
    if block_b is None:
        block_b = _pick_block_b(B, T * D * x.dtype.itemsize)
    assert B % block_b == 0

    n_hidden = len(params) - 1       # hidden layers (last pair = logit head)
    padded = _pad_params_lane_dense(params, compute_dtype)
    flat_params = []
    for (w, b) in padded:
        flat_params += [w, b]

    kernel = functools.partial(_atp_kernel, n_hidden=n_hidden, T=T, D=D,
                               training=training, compute_dtype=compute_dtype)

    # Footprint-based VMEM limit: 1.25x estimate with a small safety floor
    # (Mosaic internal scratch), clamped generation-aware (~48 MiB on v7x,
    # ~96 MiB on v5e/v6e) instead of a blanket 32..64 MiB reservation.
    est = _vmem_estimate(block_b, T, D, padded, compute_dtype)
    vmem_limit = int(min(int(0.75 * _vmem_cap_bytes()),
                         max(8 * 1024 * 1024, int(1.25 * est))))

    def build_and_call(single_buffer_weights):
        in_specs = [pl.BlockSpec((block_b, T * D), lambda i: (i, 0))]
        for p in flat_params:
            if single_buffer_weights:
                # Grid-invariant block: one VMEM buffer instead of two.
                spec = pl.BlockSpec(p.shape, lambda i: (0, 0),
                                    pipeline_mode=pl.Buffered(1))
            else:
                spec = pl.BlockSpec(p.shape, lambda i: (0, 0))
            in_specs.append(spec)
        return pl.pallas_call(
            kernel,
            out_shape=jax.ShapeDtypeStruct((B, D), x.dtype),
            grid_spec=pltpu.PrefetchScalarGridSpec(
                num_scalar_prefetch=0,
                grid=(B // block_b,),
                in_specs=in_specs,
                out_specs=pl.BlockSpec((block_b, D), lambda i: (i, 0)),
            ),
            compiler_params=pltpu.CompilerParams(
                dimension_semantics=("parallel",),
                vmem_limit_bytes=vmem_limit),
        )(x_flat, *flat_params)

    try:
        return build_and_call(True)
    except Exception:
        # Pallas build without pipeline_mode / Buffered(1) support: fall back
        # to the default double-buffered constant blocks (same semantics).
        return build_and_call(False)


def init_params(key, embed_dim, atp_frames, fc_dims):
    """Deterministic PyTorch-style Linear init (uniform +/- 1/sqrt(fan_in))."""
    params = []
    in_dim = embed_dim * atp_frames
    dims = list(fc_dims) + [atp_frames]
    for d in dims:
        key, k1, k2 = jax.random.split(key, 3)
        bound = 1.0 / (in_dim ** 0.5)
        w = jax.random.uniform(k1, (in_dim, d), jnp.float32, -bound, bound)
        b = jax.random.uniform(k2, (1, d), jnp.float32, -bound, bound)
        params.append((w, b))
        in_dim = d
    return params


def _reference(x, params, training, compute_dtype=None):
    """Plain-JAX reference; compute_dtype mirrors the kernel's matmul cast."""
    B, T, D = x.shape
    h = x.reshape(B, T * D)
    if compute_dtype is not None:
        h = h.astype(compute_dtype)
    for li, (w, b) in enumerate(params):
        if compute_dtype is not None:
            w = w.astype(compute_dtype)
        h = jnp.dot(h, w, preferred_element_type=jnp.float32) + b
        if li < len(params) - 1:
            h = jnp.maximum(h, 0.0)
            if compute_dtype is not None:
                h = h.astype(compute_dtype)
    g = h  # (B, T)
    if training:
        wts = jax.nn.softmax(g, axis=1)[:, :, None]
        return (x * wts).sum(axis=1)
    idx = jnp.argmax(g, axis=1)
    return x[jnp.arange(B), idx, :]


if __name__ == "__main__":
    key = jax.random.PRNGKey(0)
    B, T, D = 256, 8, 128        # batch, atp_frames, embed_dim
    fc_dims = [64]               # visual_cfg.aggregation_fc_dim

    kx, kp = jax.random.split(key)
    x = jax.random.normal(kx, (B, T, D), jnp.float32)
    params = init_params(kp, D, T, fc_dims)

    # Default bf16-matmul path (training + eval), checked against a
    # bf16-matched reference (approx-reciprocal adds <= ~2.5e-4 abs error).
    y_train = jax.block_until_ready(atemporal_probe(x, params, training=True))
    y_eval = jax.block_until_ready(atemporal_probe(x, params, training=False))
    np.testing.assert_allclose(
        np.asarray(y_train),
        np.asarray(_reference(x, params, True, jnp.bfloat16)),
        rtol=2e-3, atol=2e-3)
    np.testing.assert_allclose(
        np.asarray(y_eval),
        np.asarray(_reference(x, params, False, jnp.bfloat16)),
        rtol=2e-3, atol=2e-3)

    # Exact-f32 path (precision tradeoff disabled, exact divide), tight tol.
    y_train32 = jax.block_until_ready(
        atemporal_probe(x, params, training=True, compute_dtype=jnp.float32))
    y_eval32 = jax.block_until_ready(
        atemporal_probe(x, params, training=False, compute_dtype=jnp.float32))
    np.testing.assert_allclose(
        np.asarray(y_train32), np.asarray(_reference(x, params, True)),
        rtol=1e-4, atol=1e-4)
    np.testing.assert_allclose(
        np.asarray(y_eval32), np.asarray(_reference(x, params, False)),
        rtol=1e-4, atol=1e-4)

    print("KERNEL_OK")
</pallas_src>

<mosaic_0001>
module attributes {stable_mosaic.version = 11 : i64} {
  func.func @_atp_kernel(%arg0: i32, %arg1: memref<64x1024xf32, #tpu.memory_space<vmem>>, %arg2: memref<1024x128xbf16, #tpu.memory_space<vmem>>, %arg3: memref<1x128xf32, #tpu.memory_space<vmem>>, %arg4: memref<128x8xbf16, #tpu.memory_space<vmem>>, %arg5: memref<1x8xf32, #tpu.memory_space<vmem>>, %arg6: memref<64x128xf32, #tpu.memory_space<vmem>>) attributes {dimension_semantics = [#tpu.dimension_semantics<parallel>], iteration_bounds = array<i64: 4>, scalar_prefetch = 0 : i64, scratch_operands = 0 : i64, tpu.core_type = #tpu.core_type<tc>, window_params = [{transform_indices = @transform_0, window_bounds = array<i64: 64, 1024>}, {pipeline_mode = #tpu.pipeline_mode<synchronous>, transform_indices = @transform_1, window_bounds = array<i64: 1024, 128>}, {pipeline_mode = #tpu.pipeline_mode<synchronous>, transform_indices = @transform_2, window_bounds = array<i64: 1, 128>}, {pipeline_mode = #tpu.pipeline_mode<synchronous>, transform_indices = @transform_3, window_bounds = array<i64: 128, 8>}, {pipeline_mode = #tpu.pipeline_mode<synchronous>, transform_indices = @transform_4, window_bounds = array<i64: 1, 8>}, {transform_indices = @transform_5, window_bounds = array<i64: 64, 128>}]} {
    %c0 = arith.constant 0 : index
    %c0_0 = arith.constant 0 : index
    %0 = vector.load %arg1[%c0, %c0_0] : memref<64x1024xf32, #tpu.memory_space<vmem>>, vector<64x1024xf32>
    %1 = arith.truncf %0 : vector<64x1024xf32> to vector<64x1024xbf16>
    %c0_1 = arith.constant 0 : index
    %c0_2 = arith.constant 0 : index
    %2 = vector.load %arg2[%c0_1, %c0_2] : memref<1024x128xbf16, #tpu.memory_space<vmem>>, vector<1024x128xbf16>
    %c0_3 = arith.constant 0 : index
    %c0_4 = arith.constant 0 : index
    %3 = vector.load %arg3[%c0_3, %c0_4] : memref<1x128xf32, #tpu.memory_space<vmem>>, vector<1x128xf32>
    %cst = arith.constant dense<0.000000e+00> : vector<64x128xf32>
    %4 = tpu.matmul %1, %2, %cst {dimension_numbers = #tpu.dot_dimension_numbers<[1], [0], [0], [1], [0, 0, 1, 1], [], []>} : vector<64x1024xbf16>, vector<1024x128xbf16>, vector<64x128xf32> -> vector<64x128xf32>
    %5 = vector.broadcast %3 : vector<1x128xf32> to vector<64x128xf32>
    %6 = arith.addf %4, %5 : vector<64x128xf32>
    %cst_5 = arith.constant 0.000000e+00 : f32
    %7 = vector.broadcast %cst_5 : f32 to vector<64x128xf32>
    %8 = arith.maximumf %6, %7 : vector<64x128xf32>
    %9 = arith.truncf %8 : vector<64x128xf32> to vector<64x128xbf16>
    %c0_6 = arith.constant 0 : index
    %c0_7 = arith.constant 0 : index
    %10 = vector.load %arg4[%c0_6, %c0_7] : memref<128x8xbf16, #tpu.memory_space<vmem>>, vector<128x8xbf16>
    %cst_8 = arith.constant dense<0.000000e+00> : vector<64x8xf32>
    %11 = tpu.matmul %9, %10, %cst_8 {dimension_numbers = #tpu.dot_dimension_numbers<[1], [0], [0], [1], [0, 0, 1, 1], [], []>} : vector<64x128xbf16>, vector<128x8xbf16>, vector<64x8xf32> -> vector<64x8xf32>
    %c0_9 = arith.constant 0 : index
    %c0_10 = arith.constant 0 : index
    %12 = vector.load %arg5[%c0_9, %c0_10] : memref<1x8xf32, #tpu.memory_space<vmem>>, vector<1x8xf32>
    %13 = vector.broadcast %12 : vector<1x8xf32> to vector<64x8xf32>
    %14 = arith.addf %11, %13 : vector<64x8xf32>
    %cst_11 = arith.constant dense<0xFF800000> : vector<64xf32>
    %15 = vector.multi_reduction <maximumf>, %14, %cst_11 [1] : vector<64x8xf32> to vector<64xf32>
    %16 = vector.shape_cast %15 : vector<64xf32> to vector<64x1xf32>
    %17 = vector.broadcast %16 : vector<64x1xf32> to vector<64x8xf32>
    %18 = arith.subf %14, %17 : vector<64x8xf32>
    %19 = math.exp %18 : vector<64x8xf32>
    %cst_12 = arith.constant dense<0.000000e+00> : vector<64xf32>
    %20 = vector.multi_reduction <add>, %19, %cst_12 [1] : vector<64x8xf32> to vector<64xf32>
    %21 = vector.shape_cast %20 : vector<64xf32> to vector<64x1xf32>
    %22 = tpu.reciprocal %21 {approx = true} : vector<64x1xf32> -> vector<64x1xf32>
    %23 = vector.broadcast %22 : vector<64x1xf32> to vector<64x8xf32>
    %24 = arith.mulf %19, %23 : vector<64x8xf32>
    %cst_13 = arith.constant 0.000000e+00 : f32
    %25 = vector.broadcast %cst_13 : f32 to vector<64x128xf32>
    %c0_14 = arith.constant 0 : index
    %c0_15 = arith.constant 0 : index
    %26 = vector.load %arg1[%c0_14, %c0_15] : memref<64x1024xf32, #tpu.memory_space<vmem>>, vector<64x128xf32>
    %27 = vector.extract_strided_slice %24 {offsets = [0, 0], sizes = [64, 1], strides = [1, 1]} : vector<64x8xf32> to vector<64x1xf32>
    %28 = vector.broadcast %27 : vector<64x1xf32> to vector<64x128xf32>
    %29 = arith.mulf %26, %28 : vector<64x128xf32>
    %30 = arith.addf %25, %29 : vector<64x128xf32>
    %c0_16 = arith.constant 0 : index
    %c128 = arith.constant 128 : index
    %31 = vector.load %arg1[%c0_16, %c128] : memref<64x1024xf32, #tpu.memory_space<vmem>>, vector<64x128xf32>
    %32 = vector.extract_strided_slice %24 {offsets = [0, 1], sizes = [64, 1], strides = [1, 1]} : vector<64x8xf32> to vector<64x1xf32>
    %33 = vector.broadcast %32 : vector<64x1xf32> to vector<64x128xf32>
    %34 = arith.mulf %31, %33 : vector<64x128xf32>
    %35 = arith.addf %30, %34 : vector<64x128xf32>
    %c0_17 = arith.constant 0 : index
    %c256 = arith.constant 256 : index
    %36 = vector.load %arg1[%c0_17, %c256] : memref<64x1024xf32, #tpu.memory_space<vmem>>, vector<64x128xf32>
    %37 = vector.extract_strided_slice %24 {offsets = [0, 2], sizes = [64, 1], strides = [1, 1]} : vector<64x8xf32> to vector<64x1xf32>
    %38 = vector.broadcast %37 : vector<64x1xf32> to vector<64x128xf32>
    %39 = arith.mulf %36, %38 : vector<64x128xf32>
    %40 = arith.addf %35, %39 : vector<64x128xf32>
    %c0_18 = arith.constant 0 : index
    %c384 = arith.constant 384 : index
    %41 = vector.load %arg1[%c0_18, %c384] : memref<64x1024xf32, #tpu.memory_space<vmem>>, vector<64x128xf32>
    %42 = vector.extract_strided_slice %24 {offsets = [0, 3], sizes = [64, 1], strides = [1, 1]} : vector<64x8xf32> to vector<64x1xf32>
    %43 = vector.broadcast %42 : vector<64x1xf32> to vector<64x128xf32>
    %44 = arith.mulf %41, %43 : vector<64x128xf32>
    %45 = arith.addf %40, %44 : vector<64x128xf32>
    %c0_19 = arith.constant 0 : index
    %c512 = arith.constant 512 : index
    %46 = vector.load %arg1[%c0_19, %c512] : memref<64x1024xf32, #tpu.memory_space<vmem>>, vector<64x128xf32>
    %47 = vector.extract_strided_slice %24 {offsets = [0, 4], sizes = [64, 1], strides = [1, 1]} : vector<64x8xf32> to vector<64x1xf32>
    %48 = vector.broadcast %47 : vector<64x1xf32> to vector<64x128xf32>
    %49 = arith.mulf %46, %48 : vector<64x128xf32>
    %50 = arith.addf %45, %49 : vector<64x128xf32>
    %c0_20 = arith.constant 0 : index
    %c640 = arith.constant 640 : index
    %51 = vector.load %arg1[%c0_20, %c640] : memref<64x1024xf32, #tpu.memory_space<vmem>>, vector<64x128xf32>
    %52 = vector.extract_strided_slice %24 {offsets = [0, 5], sizes = [64, 1], strides = [1, 1]} : vector<64x8xf32> to vector<64x1xf32>
    %53 = vector.broadcast %52 : vector<64x1xf32> to vector<64x128xf32>
    %54 = arith.mulf %51, %53 : vector<64x128xf32>
    %55 = arith.addf %50, %54 : vector<64x128xf32>
    %c0_21 = arith.constant 0 : index
    %c768 = arith.constant 768 : index
    %56 = vector.load %arg1[%c0_21, %c768] : memref<64x1024xf32, #tpu.memory_space<vmem>>, vector<64x128xf32>
    %57 = vector.extract_strided_slice %24 {offsets = [0, 6], sizes = [64, 1], strides = [1, 1]} : vector<64x8xf32> to vector<64x1xf32>
    %58 = vector.broadcast %57 : vector<64x1xf32> to vector<64x128xf32>
    %59 = arith.mulf %56, %58 : vector<64x128xf32>
    %60 = arith.addf %55, %59 : vector<64x128xf32>
    %c0_22 = arith.constant 0 : index
    %c896 = arith.constant 896 : index
    %61 = vector.load %arg1[%c0_22, %c896] : memref<64x1024xf32, #tpu.memory_space<vmem>>, vector<64x128xf32>
    %62 = vector.extract_strided_slice %24 {offsets = [0, 7], sizes = [64, 1], strides = [1, 1]} : vector<64x8xf32> to vector<64x1xf32>
    %63 = vector.broadcast %62 : vector<64x1xf32> to vector<64x128xf32>
    %64 = arith.mulf %61, %63 : vector<64x128xf32>
    %65 = arith.addf %60, %64 : vector<64x128xf32>
    %c0_23 = arith.constant 0 : index
    %c0_24 = arith.constant 0 : index
    %66 = vector.load %arg6[%c0_23, %c0_24] : memref<64x128xf32, #tpu.memory_space<vmem>>, vector<64x128xf32>
    tpu.vector_store %arg6[%c0_23, %c0_24], %65 {strides = array<i32>} : memref<64x128xf32, #tpu.memory_space<vmem>>, vector<64x128xf32>,
    return
  }
  func.func @transform_0(%arg0: i32) -> (i32, i32) {
    %c0_i32 = arith.constant 0 : i32
    %c0_i32_0 = arith.constant 0 : i32
    return %arg0, %c0_i32 : i32, i32
  }
  func.func @transform_1(%arg0: i32) -> (i32, i32) {
    %c0_i32 = arith.constant 0 : i32
    %c0_i32_0 = arith.constant 0 : i32
    %c0_i32_1 = arith.constant 0 : i32
    return %c0_i32, %c0_i32_0 : i32, i32
  }
  func.func @transform_2(%arg0: i32) -> (i32, i32) {
    %c0_i32 = arith.constant 0 : i32
    %c0_i32_0 = arith.constant 0 : i32
    %c0_i32_1 = arith.constant 0 : i32
    return %c0_i32, %c0_i32_0 : i32, i32
  }
  func.func @transform_3(%arg0: i32) -> (i32, i32) {
    %c0_i32 = arith.constant 0 : i32
    %c0_i32_0 = arith.constant 0 : i32
    %c0_i32_1 = arith.constant 0 : i32
    return %c0_i32, %c0_i32_0 : i32, i32
  }
  func.func @transform_4(%arg0: i32) -> (i32, i32) {
    %c0_i32 = arith.constant 0 : i32
    %c0_i32_0 = arith.constant 0 : i32
    %c0_i32_1 = arith.constant 0 : i32
    return %c0_i32, %c0_i32_0 : i32, i32
  }
  func.func @transform_5(%arg0: i32) -> (i32, i32) {
    %c0_i32 = arith.constant 0 : i32
    %c0_i32_0 = arith.constant 0 : i32
    return %arg0, %c0_i32 : i32, i32
  }
}

module attributes {stable_mosaic.version = 11 : i64} {
  func.func @_atp_kernel(%arg0: i32, %arg1: memref<64x1024xf32, #tpu.memory_space<vmem>>, %arg2: memref<1024x128xbf16, #tpu.memory_space<vmem>>, %arg3: memref<1x128xf32, #tpu.memory_space<vmem>>, %arg4: memref<128x8xbf16, #tpu.memory_space<vmem>>, %arg5: memref<1x8xf32, #tpu.memory_space<vmem>>, %arg6: memref<64x128xf32, #tpu.memory_space<vmem>>) attributes {dimension_semantics = [#tpu.dimension_semantics<parallel>], iteration_bounds = array<i64: 4>, scalar_prefetch = 0 : i64, scratch_operands = 0 : i64, tpu.core_type = #tpu.core_type<tc>, window_params = [{transform_indices = @transform_0, window_bounds = array<i64: 64, 1024>}, {pipeline_mode = #tpu.pipeline_mode<synchronous>, transform_indices = @transform_1, window_bounds = array<i64: 1024, 128>}, {pipeline_mode = #tpu.pipeline_mode<synchronous>, transform_indices = @transform_2, window_bounds = array<i64: 1, 128>}, {pipeline_mode = #tpu.pipeline_mode<synchronous>, transform_indices = @transform_3, window_bounds = array<i64: 128, 8>}, {pipeline_mode = #tpu.pipeline_mode<synchronous>, transform_indices = @transform_4, window_bounds = array<i64: 1, 8>}, {transform_indices = @transform_5, window_bounds = array<i64: 64, 128>}]} {
    %c0 = arith.constant 0 : index
    %c0_0 = arith.constant 0 : index
    %0 = vector.load %arg1[%c0, %c0_0] : memref<64x1024xf32, #tpu.memory_space<vmem>>, vector<64x1024xf32>
    %1 = arith.truncf %0 : vector<64x1024xf32> to vector<64x1024xbf16>
    %c0_1 = arith.constant 0 : index
    %c0_2 = arith.constant 0 : index
    %2 = vector.load %arg2[%c0_1, %c0_2] : memref<1024x128xbf16, #tpu.memory_space<vmem>>, vector<1024x128xbf16>
    %c0_3 = arith.constant 0 : index
    %c0_4 = arith.constant 0 : index
    %3 = vector.load %arg3[%c0_3, %c0_4] : memref<1x128xf32, #tpu.memory_space<vmem>>, vector<1x128xf32>
    %cst = arith.constant dense<0.000000e+00> : vector<64x128xf32>
    %4 = tpu.matmul %1, %2, %cst {dimension_numbers = #tpu.dot_dimension_numbers<[1], [0], [0], [1], [0, 0, 1, 1], [], []>} : vector<64x1024xbf16>, vector<1024x128xbf16>, vector<64x128xf32> -> vector<64x128xf32>
    %5 = vector.broadcast %3 : vector<1x128xf32> to vector<64x128xf32>
    %6 = arith.addf %4, %5 : vector<64x128xf32>
    %cst_5 = arith.constant 0.000000e+00 : f32
    %7 = vector.broadcast %cst_5 : f32 to vector<64x128xf32>
    %8 = arith.maximumf %6, %7 : vector<64x128xf32>
    %9 = arith.truncf %8 : vector<64x128xf32> to vector<64x128xbf16>
    %c0_6 = arith.constant 0 : index
    %c0_7 = arith.constant 0 : index
    %10 = vector.load %arg4[%c0_6, %c0_7] : memref<128x8xbf16, #tpu.memory_space<vmem>>, vector<128x8xbf16>
    %cst_8 = arith.constant dense<0.000000e+00> : vector<64x8xf32>
    %11 = tpu.matmul %9, %10, %cst_8 {dimension_numbers = #tpu.dot_dimension_numbers<[1], [0], [0], [1], [0, 0, 1, 1], [], []>} : vector<64x128xbf16>, vector<128x8xbf16>, vector<64x8xf32> -> vector<64x8xf32>
    %c0_9 = arith.constant 0 : index
    %c0_10 = arith.constant 0 : index
    %12 = vector.load %arg5[%c0_9, %c0_10] : memref<1x8xf32, #tpu.memory_space<vmem>>, vector<1x8xf32>
    %13 = vector.broadcast %12 : vector<1x8xf32> to vector<64x8xf32>
    %14 = arith.addf %11, %13 : vector<64x8xf32>
    %cst_11 = arith.constant dense<0xFF800000> : vector<64xf32>
    %15 = vector.multi_reduction <maximumf>, %14, %cst_11 [1] : vector<64x8xf32> to vector<64xf32>
    %16 = vector.shape_cast %15 : vector<64xf32> to vector<64x1xf32>
    %17 = vector.broadcast %16 : vector<64x1xf32> to vector<64x8xf32>
    %18 = arith.subf %14, %17 : vector<64x8xf32>
    %19 = math.exp %18 : vector<64x8xf32>
    %cst_12 = arith.constant dense<0.000000e+00> : vector<64xf32>
    %20 = vector.multi_reduction <add>, %19, %cst_12 [1] : vector<64x8xf32> to vector<64xf32>
    %21 = vector.shape_cast %20 : vector<64xf32> to vector<64x1xf32>
    %22 = tpu.reciprocal %21 {approx = true} : vector<64x1xf32> -> vector<64x1xf32>
    %23 = vector.broadcast %22 : vector<64x1xf32> to vector<64x8xf32>
    %24 = arith.mulf %19, %23 : vector<64x8xf32>
    %cst_13 = arith.constant 0.000000e+00 : f32
    %25 = vector.broadcast %cst_13 : f32 to vector<64x128xf32>
    %c0_14 = arith.constant 0 : index
    %c0_15 = arith.constant 0 : index
    %26 = vector.load %arg1[%c0_14, %c0_15] : memref<64x1024xf32, #tpu.memory_space<vmem>>, vector<64x128xf32>
    %27 = vector.extract_strided_slice %24 {offsets = [0, 0], sizes = [64, 1], strides = [1, 1]} : vector<64x8xf32> to vector<64x1xf32>
    %28 = vector.broadcast %27 : vector<64x1xf32> to vector<64x128xf32>
    %29 = arith.mulf %26, %28 : vector<64x128xf32>
    %30 = arith.addf %25, %29 : vector<64x128xf32>
    %c0_16 = arith.constant 0 : index
    %c128 = arith.constant 128 : index
    %31 = vector.load %arg1[%c0_16, %c128] : memref<64x1024xf32, #tpu.memory_space<vmem>>, vector<64x128xf32>
    %32 = vector.extract_strided_slice %24 {offsets = [0, 1], sizes = [64, 1], strides = [1, 1]} : vector<64x8xf32> to vector<64x1xf32>
    %33 = vector.broadcast %32 : vector<64x1xf32> to vector<64x128xf32>
    %34 = arith.mulf %31, %33 : vector<64x128xf32>
    %35 = arith.addf %30, %34 : vector<64x128xf32>
    %c0_17 = arith.constant 0 : index
    %c256 = arith.constant 256 : index
    %36 = vector.load %arg1[%c0_17, %c256] : memref<64x1024xf32, #tpu.memory_space<vmem>>, vector<64x128xf32>
    %37 = vector.extract_strided_slice %24 {offsets = [0, 2], sizes = [64, 1], strides = [1, 1]} : vector<64x8xf32> to vector<64x1xf32>
    %38 = vector.broadcast %37 : vector<64x1xf32> to vector<64x128xf32>
    %39 = arith.mulf %36, %38 : vector<64x128xf32>
    %40 = arith.addf %35, %39 : vector<64x128xf32>
    %c0_18 = arith.constant 0 : index
    %c384 = arith.constant 384 : index
    %41 = vector.load %arg1[%c0_18, %c384] : memref<64x1024xf32, #tpu.memory_space<vmem>>, vector<64x128xf32>
    %42 = vector.extract_strided_slice %24 {offsets = [0, 3], sizes = [64, 1], strides = [1, 1]} : vector<64x8xf32> to vector<64x1xf32>
    %43 = vector.broadcast %42 : vector<64x1xf32> to vector<64x128xf32>
    %44 = arith.mulf %41, %43 : vector<64x128xf32>
    %45 = arith.addf %40, %44 : vector<64x128xf32>
    %c0_19 = arith.constant 0 : index
    %c512 = arith.constant 512 : index
    %46 = vector.load %arg1[%c0_19, %c512] : memref<64x1024xf32, #tpu.memory_space<vmem>>, vector<64x128xf32>
    %47 = vector.extract_strided_slice %24 {offsets = [0, 4], sizes = [64, 1], strides = [1, 1]} : vector<64x8xf32> to vector<64x1xf32>
    %48 = vector.broadcast %47 : vector<64x1xf32> to vector<64x128xf32>
    %49 = arith.mulf %46, %48 : vector<64x128xf32>
    %50 = arith.addf %45, %49 : vector<64x128xf32>
    %c0_20 = arith.constant 0 : index
    %c640 = arith.constant 640 : index
    %51 = vector.load %arg1[%c0_20, %c640] : memref<64x1024xf32, #tpu.memory_space<vmem>>, vector<64x128xf32>
    %52 = vector.extract_strided_slice %24 {offsets = [0, 5], sizes = [64, 1], strides = [1, 1]} : vector<64x8xf32> to vector<64x1xf32>
    %53 = vector.broadcast %52 : vector<64x1xf32> to vector<64x128xf32>
    %54 = arith.mulf %51, %53 : vector<64x128xf32>
    %55 = arith.addf %50, %54 : vector<64x128xf32>
    %c0_21 = arith.constant 0 : index
    %c768 = arith.constant 768 : index
    %56 = vector.load %arg1[%c0_21, %c768] : memref<64x1024xf32, #tpu.memory_space<vmem>>, vector<64x128xf32>
    %57 = vector.extract_strided_slice %24 {offsets = [0, 6], sizes = [64, 1], strides = [1, 1]} : vector<64x8xf32> to vector<64x1xf32>
    %58 = vector.broadcast %57 : vector<64x1xf32> to vector<64x128xf32>
    %59 = arith.mulf %56, %58 : vector<64x128xf32>
    %60 = arith.addf %55, %59 : vector<64x128xf32>
    %c0_22 = arith.constant 0 : index
    %c896 = arith.constant 896 : index
    %61 = vector.load %arg1[%c0_22, %c896] : memref<64x1024xf32, #tpu.memory_space<vmem>>, vector<64x128xf32>
    %62 = vector.extract_strided_slice %24 {offsets = [0, 7], sizes = [64, 1], strides = [1, 1]} : vector<64x8xf32> to vector<64x1xf32>
    %63 = vector.broadcast %62 : vector<64x1xf32> to vector<64x128xf32>
    %64 = arith.mulf %61, %63 : vector<64x128xf32>
    %65 = arith.addf %60, %64 : vector<64x128xf32>
    %c0_23 = arith.constant 0 : index
    %c0_24 = arith.constant 0 : index
    %66 = vector.load %arg6[%c0_23, %c0_24] : memref<64x128xf32, #tpu.memory_space<vmem>>, vector<64x128xf32>
    tpu.vector_store %arg6[%c0_23, %c0_24], %65 {strides = array<i32>} : memref<64x128xf32, #tpu.memory_space<vmem>>, vector<64x128xf32>,
    return
  }
  func.func @transform_0(%arg0: i32) -> (i32, i32) {
    %c0_i32 = arith.constant 0 : i32
    %c0_i32_0 = arith.constant 0 : i32
    return %arg0, %c0_i32 : i32, i32
  }
  func.func @transform_1(%arg0: i32) -> (i32, i32) {
    %c0_i32 = arith.constant 0 : i32
    %c0_i32_0 = arith.constant 0 : i32
    %c0_i32_1 = arith.constant 0 : i32
    return %c0_i32, %c0_i32_0 : i32, i32
  }
  func.func @transform_2(%arg0: i32) -> (i32, i32) {
    %c0_i32 = arith.constant 0 : i32
    %c0_i32_0 = arith.constant 0 : i32
    %c0_i32_1 = arith.constant 0 : i32
    return %c0_i32, %c0_i32_0 : i32, i32
  }
  func.func @transform_3(%arg0: i32) -> (i32, i32) {
    %c0_i32 = arith.constant 0 : i32
    %c0_i32_0 = arith.constant 0 : i32
    %c0_i32_1 = arith.constant 0 : i32
    return %c0_i32, %c0_i32_0 : i32, i32
  }
  func.func @transform_4(%arg0: i32) -> (i32, i32) {
    %c0_i32 = arith.constant 0 : i32
    %c0_i32_0 = arith.constant 0 : i32
    %c0_i32_1 = arith.constant 0 : i32
    return %c0_i32, %c0_i32_0 : i32, i32
  }
  func.func @transform_5(%arg0: i32) -> (i32, i32) {
    %c0_i32 = arith.constant 0 : i32
    %c0_i32_0 = arith.constant 0 : i32
    return %arg0, %c0_i32 : i32, i32
  }
}

</mosaic_0001>

<bundles_post_ra>
// kernel: tpu_custom_call.1
= control target key start
LH: loop header
LB: loop body
LE: loop exit
PB: predicated region body
PF: predicated region fallthrough
CT: control target
= control target key end

     0   :  { %10 = vsyncpa [#allocation3], 0  ;;  %s3176_s0 = inlined_call_operand.hbm [shape: f32[256,1024], index: 0, kind: input, shape index: {}]   ;;  %s3177_s1 = inlined_call_operand.hbm [shape: bf16[1024,128], index: 1, kind: input, shape index: {}]   ;;  %s3178_s2 = inlined_call_operand.vmem [shape: f32[1,128], index: 2, kind: input, shape index: {}]   ;;  %s3179_s3 = inlined_call_operand.vmem [shape: bf16[128,8], index: 3, kind: input, shape index: {}]   ;;  %s3180_s4 = inlined_call_operand.vmem [shape: f32[1,8], index: 4, kind: input, shape index: {}]   ;;  %s3181_s5 = inlined_call_operand.hbm [shape: f32[256,128], index: 5, kind: output, shape index: {}]  }
   0x1   :  { %12 = vsyncpa [#allocation3 + $0x1], 0 }
   0x2   :  { %13 = vsyncpa [#allocation6], 0 }
   0x3   :  { %14 = vsyncpa [#allocation4], 0 }
   0x4   :  { %16 = vsyncpa [#allocation4 + $0x1], 0  ;;  %s2611_s18 = smov 0   ;;  %s2613_s19 = smov 0  }
   0x5   :  { %s2615_s20 = smov 0   ;;  %s2617_s21 = smov 0  }
   0x6 LB: > { %s2632_s22 = sadd.s32 4294967295, %s2565_s21   ;;  %s1862_s23 = sadd.s32 4294967294, %s2565_s21   ;;  %s2565_s21 = sphi %s2617_s21, %s3190_s21   ;;  %s2561_s20 = sphi %s2615_s20, %s3189_s20   ;;  %s2557_s19 = sphi %s2613_s19, %s3188_s19   ;;  %s2553_s18 = sphi %s2611_s18, %s3187_s18  }
   0x7   : > { %p42_p0 = scmp.ne.s32.totalorder %s2557_s19, %s2553_s18  ;;  %p43_p1 = scmp.eq.s32.totalorder %s2632_s22, 0 }
   0x8   : > { %p150_p2 = scmp.eq.s32.totalorder %s2632_s22, 3  ;;  %p156_p3 = scmp.eq.s32.totalorder %s1862_s23, 3 }
   0x9   : > { %p2641_p4 = por %p43_p1, %p42_p0  ;;  %p1863_p5 = scmp.ge.s32.totalorder %s2565_s21, 1 }
   0xa   : > { %p2646_p6 = por %p156_p3, %p42_p0  ;;  %p163_p7 = scmp.lt.s32.totalorder %s2565_s21, 5 }
   0xb   : > { %s174_s28 = sshll.u32 %s3177_s1, 4  ;;  %s2567_s30 = smov [#allocation5]   ;;  %s175_s28 = int_to_ptr.hbm [resolvable:$true] %s174_s28 }
   0xc   : > { %p2654_p8 = pnand %p1863_p5, %p163_p7  ;;  %s176_s6 = sshll.u32 %s2567_s30, 4  ;;  %s177_s6 = int_to_ptr.vmem [resolvable:$true] %s176_s6 }
   0xd   : > { %s2663_s7 = sadd.s32 1, %s2565_s21   ;;  %s2568_s8 = smov 64  }
   0xe   : > { %p2266_p9 = pneg %p2654_p8  ;;  %s2569_s9 = smov 4  }
   0xf   : > { %s26_s10 = ssub.s32 %s2565_s21, %s2663_s7  ;;  %s29_s11 = sadd.s32 1, %s2561_s20 }
  0x10   : > { %p2267_p10 = pnand %p2266_p9, %p43_p1  ;;  %p27_p11 = scmp.eq.s32.totalorder %s26_s10, 0 }
  0x11   : > { %p36_p12 = scmp.ne.s32.totalorder %s2561_s20, %s2557_s19  ;;  %p37_p13 = scmp.eq.s32.totalorder %s2565_s21, 0 }
  0x12   : > { %2269 = dma.hbm_to_vmem [thread:$0]  (!%p2267_p10), %s175_s28, 8192, %s177_s6, [#allocation6], %s2568_s8, %s2568_s8, %s2569_s9  }
  0x13   : > { %p2279_p0 = scmp.lt.s32.totalorder %s2565_s21, 4  ;;  %p38_p3 = por %p37_p13, %p36_p12 }
  0x14   : > { %s2675_s12 = scalar_select %p27_p11, %s2561_s20, %s29_s11  }
  0x15   : > { %p2679_p5 = por %p150_p2, %p36_p12  ;;  %s199_s14 = sand.u32 1, %s2561_s20  }
  0x16   : > { %s2168_s15 = sshll.u32 %s2565_s21, 9  ;;  %s1866_s16 = sshll.u32 %s199_s14, 9 }
  0x17   : > { %s209_s26 = scalar_lea.hbm %s3176_s0, %s2168_s15  ;;  %s203_s28 = scalar_lea.vmem [#allocation2], %s1866_s16 }
  0x18   : > { %s210_s27 = sshll.u32 %s209_s26, 4  ;;  %s212_s30 = sshll.u32 %s203_s28, 4  ;;  %s211_s27 = int_to_ptr.hbm [resolvable:$true] %s210_s27  ;;  %s213_s30 = int_to_ptr.vmem [resolvable:$true] %s212_s30 }
  0x19   : > { %p2690_p7 = pnand %p2279_p0, %p38_p3  ;;  %s200_s9 = scalar_lea.sflag [#allocation3], %s199_s14 }
  0x1a   : > { %s2465_s10 = sshra.s32 %s211_s27, 4  ;;  %s2472_s17 = scalar_lea.hbm %s3176_s0, 2048  ;;  %s2466_s10 = int_to_ptr.hbm [resolvable:$true] %s2465_s10 }
  0x1b   : > { %s2467_s11 = scalar_lea.hbm %s2466_s10, 512  ;;  %p2469_p9 = pneg %p2690_p7 }
  0x1c   : > { %p2468_p2 = scmp.ne.s32.totalorder %s2466_s10, %s2467_s11  ;;  %p2473_p12 = scmp.lt.s32.totalorder %s2466_s10, %s3176_s0 }
  0x1d   : > { %p2474_p13 = scmp.lt.s32.totalorder %s2472_s17, %s2467_s11 }
  0x1e   : > { %p2470_p10 = pnand %p2469_p9, %p2468_p2 }
  0x1f   : > { %p2475_p0 = por %p2474_p13, %p2473_p12 }
  0x20   : > { %p2471_p11 = pneg %p2470_p10 }
  0x22   : > { %p2476_p3 = pnand %p2475_p0, %p2471_p11 }
  0x24   : > { %2479 = shalt.err (!%p2476_p3)
}
  0x25   : > { %s2570_s14 = smov 1024   ;;  %224 = sbr.rel (%p2654_p8) target bundleno = 1036 (0x40c), region = 40 }
  0x26   : > { %2273 = dma.hbm_to_vmem [thread:$0]  (!%p2690_p7), %s211_s27, 8192, %s213_s30, %s200_s9, %s2570_s14, %s2570_s14, %s2568_s8  }
  0x27   : > { %s2708_s28 = sand.u32 (!%p2654_p8), 1, %s2557_s19  }
  0x28   : > { %s1871_s15 = sshll.u32 (!%p2654_p8), %s2708_s28, 9  ;;  %s227_s10 = scalar_lea.sflag (!%p2654_p8), [#allocation3], %s2708_s28 }
  0x29   : > { %s2712_s11 = scalar_lea.vmem (!%p2654_p8), [#allocation2], %s1871_s15 }
  0x2a   : > { %2540 = dma.done.wait (%p2641_p4), %s227_s10, 8192  }
  0x2b   : > { %2542 = vsyncadd (%p2641_p4), %s227_s10, 4294959104 }
  0x2c   : > { %2544 = dma.done.wait (%p43_p1), [#allocation6], 8192  }
  0x2d   : > { %2546 = vsyncadd (%p43_p1), [#allocation6], 4294959104  ;;  %v2176_v0 = vld [vmem:[#allocation5 + $0x38] sm:$0xff]  ;;  %v2175_v1 = vld [vmem:[#allocation5 + $0x30] sm:$0xff]  ;;  %vm1218_vm0 = vcmask 64512   ;;  %s1873_s9 = sshll.u32 %s2708_s28, 6 }
  0x2e   : > { %2242 = vmatpush.bf16.msra.mxu1 %v2176_v0  ;;  %877 = vmatpush.bf16.msra.mxu0 %v2176_v0  ;;  %v2192_v2 = vld [vmem:[#allocation5 + $0xb8] sm:$0xff]  ;;  %v2191_v4 = vld [vmem:[#allocation5 + $0xb0] sm:$0xff]  ;;  %v2174_v6 = vld [vmem:[#allocation5 + $0x28] sm:$0xff]  ;;  %s3044_s16 = scalar_lea.vmem [#allocation7], %s1873_s9  ;;  %s2241_s17 = sshll.u32 %s2632_s22, 6 }
  0x2f   : > { %v2200_v3 = vld [vmem:[#allocation5 + $0xf8] sm:$0xff]  ;;  %935 = vmatpush.bf16.msra.mxu2 %v2192_v2  ;;  %v2199_v5 = vld [vmem:[#allocation5 + $0xf0] sm:$0xff]  ;;  %v2190_v7 = vld [vmem:[#allocation5 + $0xa8] sm:$0xff]  ;;  %s1775_s26 = scalar_lea.hbm %s3181_s5, %s2241_s17  ;;  %s1776_s14 = sshll.u32 %s3044_s16, 4  ;;  %s1777_s14 = int_to_ptr.vmem [resolvable:$true] %s1776_s14 }
  0x30   : > { %964 = vmatpush.bf16.msra.mxu3 %v2200_v3  ;;  %v2198_v8 = vld [vmem:[#allocation5 + $0xe8] sm:$0xff]  ;;  %v2173_v9 = vld [vmem:[#allocation5 + $0x20] sm:$0xff]  ;;  %v2172_v12 = vld [vmem:[#allocation5 + $0x18] sm:$0xff]  ;;  %s1778_s15 = sshll.u32 %s1775_s26, 4  ;;  %s1764_s10 = scalar_lea.sflag [#allocation4], %s2708_s28  ;;  %s1779_s15 = int_to_ptr.hbm [resolvable:$true] %s1778_s15 }
  0x31   : > { %v2189_v10 = vld [vmem:[#allocation5 + $0xa0] sm:$0xff]  ;;  %v2188_v13 = vld [vmem:[#allocation5 + $0x98] sm:$0xff]  ;;  %v2171_v15 = vld [vmem:[#allocation5 + $0x10] sm:$0xff]  ;;  %s2509_s24 = sshra.s32 %s1779_s15, 4  ;;  %s2515_s30 = scalar_lea.hbm %s3181_s5, 256  ;;  %s2510_s24 = int_to_ptr.hbm [resolvable:$true] %s2509_s24 }
  0x32   : > { %2243 = vmatpush.bf16.msra.mxu1 %v2175_v1  ;;  %878 = vmatpush.bf16.msra.mxu0 %v2175_v1  ;;  %v2197_v11 = vld [vmem:[#allocation5 + $0xe0] sm:$0xff]  ;;  %v2196_v14 = vld [vmem:[#allocation5 + $0xd8] sm:$0xff]  ;;  %v2187_v16 = vld [vmem:[#allocation5 + $0x90] sm:$0xff]  ;;  %s2511_s29 = scalar_lea.hbm %s2510_s24, 64  ;;  %p2516_p7 = scmp.lt.s32.totalorder %s2510_s24, %s3181_s5 }
  0x33   : > { %936 = vmatpush.bf16.msra.mxu2 %v2191_v4  ;;  %v2195_v17 = vld [vmem:[#allocation5 + $0xd0] sm:$0xff]  ;;  %v2170_v18 = vld [vmem:[#allocation5 + $0x8] sm:$0xff]  ;;  %v2169_v21 = vld [vmem:[#allocation5] sm:$0xff]  ;;  %p2512_p1 = scmp.ne.s32.totalorder %s2510_s24, %s2511_s29  ;;  %p2517_p2 = scmp.lt.s32.totalorder %s2515_s30, %s2511_s29 }
  0x34   : > { %965 = vmatpush.bf16.msra.mxu3 %v2199_v5  ;;  %v2186_v19 = vld [vmem:[#allocation5 + $0x88] sm:$0xff]  ;;  %v297_v22 = vld [vmem:[%s2712_s11 + $0x100] sm:$0xff]  ;;  %v2184_v26 = vld [vmem:[#allocation5 + $0x78] sm:$0xff] }
  0x35   : > { %v2194_v20 = vld [vmem:[#allocation5 + $0xc8] sm:$0xff]  ;;  %v305_v23 = vld [vmem:[%s2712_s11 + $0x140] sm:$0xff]  ;;  %v2208_v27 = vld [vmem:[#allocation5 + $0x138] sm:$0xff]  ;;  %p2513_p4 = pnand %p2512_p1, %p2679_p5  ;;  %p2518_p9 = por %p2517_p2, %p2516_p7 }
  0x36   : > { %2244 = vmatpush.bf16.msra.mxu1 %v2174_v6  ;;  %879 = vmatpush.bf16.msra.mxu0 %v2174_v6  ;;  %v265_v24 = vld [vmem:[%s2712_s11] sm:$0xff]  ;;  %v267_v30 = vld [vmem:[%s2712_s11 + $0x10] sm:$0xff]  ;;  %v345_v31 = vpack.c.bf16 %v305_v23, %v297_v22  ;;  %v268_v34 = vld [vmem:[%s2712_s11 + $0x18] sm:$0xff] }
  0x37   : > { %937 = vmatpush.bf16.msra.mxu2 %v2190_v7  ;;  %v273_v25 = vld [vmem:[%s2712_s11 + $0x40] sm:$0xff]  ;;  %v275_v33 = vld [vmem:[%s2712_s11 + $0x50] sm:$0xff]  ;;  %v276_v35 = vld [vmem:[%s2712_s11 + $0x58] sm:$0xff]  ;;  %p2514_p8 = pneg %p2513_p4 }
  0x38   : > { %966 = vmatpush.bf16.msra.mxu3 %v2198_v8  ;;  %v2185_v28 = vld [vmem:[#allocation5 + $0x80] sm:$0xff]  ;;  %v329_v32 = vpack.c.bf16 %v273_v25, %v265_v24  ;;  %v2224_v36 = vld [vmem:[#allocation5 + $0x1b8] sm:$0xff]  ;;  %v2183_v38 = vld [vmem:[#allocation5 + $0x70] sm:$0xff]  ;;  %v331_v40 = vpack.c.bf16 %v275_v33, %v267_v30  ;;  %v332_v41 = vpack.c.bf16 %v276_v35, %v268_v34 }
  0x39   : > { %v2193_v29 = vld [vmem:[#allocation5 + $0xc0] sm:$0xff]  ;;  %v2232_v37 = vld [vmem:[#allocation5 + $0x1f8] sm:$0xff]  ;;  %v2207_v39 = vld [vmem:[#allocation5 + $0x130] sm:$0xff]  ;;  %p2519_p10 = pnand %p2518_p9, %p2514_p8 }
  0x3a   : > { %2245 = vmatpush.bf16.msra.mxu1 %v2173_v9  ;;  %880 = vmatpush.bf16.msra.mxu0 %v2173_v9  ;;  %v2223_v42 = vld [vmem:[#allocation5 + $0x1b0] sm:$0xff]  ;;  %v2182_v43 = vld [vmem:[#allocation5 + $0x68] sm:$0xff]  ;;  %v2181_v48 = vld [vmem:[#allocation5 + $0x60] sm:$0xff] }
  0x3b   : > { %938 = vmatpush.bf16.msra.mxu2 %v2189_v10  ;;  %v2206_v44 = vld [vmem:[#allocation5 + $0x128] sm:$0xff]  ;;  %v2231_v45 = vld [vmem:[#allocation5 + $0x1f0] sm:$0xff]  ;;  %v2205_v49 = vld [vmem:[#allocation5 + $0x120] sm:$0xff] }
  0x3c   : > { %967 = vmatpush.bf16.msra.mxu3 %v2197_v11  ;;  %v2222_v46 = vld [vmem:[#allocation5 + $0x1a8] sm:$0xff]  ;;  %v313_v50 = vld [vmem:[%s2712_s11 + $0x180] sm:$0xff]  ;;  %v2180_v54 = vld [vmem:[#allocation5 + $0x58] sm:$0xff] }
  0x3d   : > { %v2230_v47 = vld [vmem:[#allocation5 + $0x1e8] sm:$0xff]  ;;  %v321_v51 = vld [vmem:[%s2712_s11 + $0x1c0] sm:$0xff]  ;;  %v2204_v55 = vld [vmem:[#allocation5 + $0x118] sm:$0xff] }
  0x3e   : > { %2246 = vmatpush.bf16.msra.mxu1 %v2172_v12  ;;  %881 = vmatpush.bf16.msra.mxu0 %v2172_v12  ;;  %v281_v52 = vld [vmem:[%s2712_s11 + $0x80] sm:$0xff]  ;;  %v283_v56 = vld [vmem:[%s2712_s11 + $0x90] sm:$0xff]  ;;  %v353_v57 = vpack.c.bf16 %v321_v51, %v313_v50  ;;  %v284_v60 = vld [vmem:[%s2712_s11 + $0x98] sm:$0xff] }
  0x3f   : > { %939 = vmatpush.bf16.msra.mxu2 %v2188_v13  ;;  %v289_v53 = vld [vmem:[%s2712_s11 + $0xc0] sm:$0xff]  ;;  %v291_v59 = vld [vmem:[%s2712_s11 + $0xd0] sm:$0xff]  ;;  %v292_v61 = vld [vmem:[%s2712_s11 + $0xd8] sm:$0xff] }
  0x40   : > { %968 = vmatpush.bf16.msra.mxu3 %v2196_v14  ;;  %v337_v58 = vpack.c.bf16 %v289_v53, %v281_v52  ;;  %v2179_v62 = vld [vmem:[#allocation5 + $0x50] sm:$0xff]  ;;  %v339_v0 = vpack.c.bf16 %v291_v59, %v283_v56  ;;  %v340_v1 = vpack.c.bf16 %v292_v61, %v284_v60  ;;  %v2221_v2 = vld [vmem:[#allocation5 + $0x1a0] sm:$0xff]  ;;  %v2178_v3 = vld [vmem:[#allocation5 + $0x48] sm:$0xff] }
  0x41   : > { %v2203_v63 = vld [vmem:[#allocation5 + $0x110] sm:$0xff]  ;;  %v2202_v4 = vld [vmem:[#allocation5 + $0x108] sm:$0xff]  ;;  %v2229_v5 = vld [vmem:[#allocation5 + $0x1e0] sm:$0xff] }
  0x42   : > { %2247 = vmatpush.bf16.msra.mxu1 %v2171_v15  ;;  %882 = vmatpush.bf16.msra.mxu0 %v2171_v15  ;;  %v2220_v6 = vld [vmem:[#allocation5 + $0x198] sm:$0xff]  ;;  %v2177_v8 = vld [vmem:[#allocation5 + $0x40] sm:$0xff]  ;;  %v266_v11 = vld [vmem:[%s2712_s11 + $0x8] sm:$0xff] }
  0x43   : > { %940 = vmatpush.bf16.msra.mxu2 %v2187_v16  ;;  %v2228_v7 = vld [vmem:[#allocation5 + $0x1d8] sm:$0xff]  ;;  %v2201_v9 = vld [vmem:[#allocation5 + $0x100] sm:$0xff]  ;;  %v274_v12 = vld [vmem:[%s2712_s11 + $0x48] sm:$0xff] }
  0x44   : > { %969 = vmatpush.bf16.msra.mxu3 %v2195_v17  ;;  %v2216_v10 = vld [vmem:[#allocation5 + $0x178] sm:$0xff]  ;;  %v269_v13 = vld [vmem:[%s2712_s11 + $0x20] sm:$0xff]  ;;  %v2215_v15 = vld [vmem:[#allocation5 + $0x170] sm:$0xff]  ;;  %v330_v16 = vpack.c.bf16 %v274_v12, %v266_v11 }
  0x45   : > { %v277_v14 = vld [vmem:[%s2712_s11 + $0x60] sm:$0xff]  ;;  %v2214_v22 = vld [vmem:[#allocation5 + $0x168] sm:$0xff]  ;;  %v2219_v25 = vld [vmem:[#allocation5 + $0x190] sm:$0xff] }
  0x46   : > { %2248 = vmatpush.bf16.msra.mxu1 %v2170_v18  ;;  %883 = vmatpush.bf16.msra.mxu0 %v2170_v18  ;;  %v333_v17 = vpack.c.bf16 %v277_v14, %v269_v13  ;;  %v299_v18 = vld [vmem:[%s2712_s11 + $0x110] sm:$0xff]  ;;  %v2212_v30 = vld [vmem:[#allocation5 + $0x158] sm:$0xff]  ;;  %v285_v33 = vld [vmem:[%s2712_s11 + $0xa0] sm:$0xff] }
  0x47   : > { %941 = vmatpush.bf16.msra.mxu2 %v2186_v19  ;;  %v307_v19 = vld [vmem:[%s2712_s11 + $0x150] sm:$0xff]  ;;  %v293_v34 = vld [vmem:[%s2712_s11 + $0xe0] sm:$0xff]  ;;  %v272_v56 = vld [vmem:[%s2712_s11 + $0x38] sm:$0xff] }
  0x48   : > { %970 = vmatpush.bf16.msra.mxu3 %v2194_v20  ;;  %v300_v20 = vld [vmem:[%s2712_s11 + $0x118] sm:$0xff]  ;;  %v347_v23 = vpack.c.bf16 %v307_v19, %v299_v18  ;;  %v2211_v35 = vld [vmem:[#allocation5 + $0x150] sm:$0xff]  ;;  %v301_v50 = vld [vmem:[%s2712_s11 + $0x120] sm:$0xff] }
  0x49   : > { %v309_v51 = vld [vmem:[%s2712_s11 + $0x160] sm:$0xff]  ;;  %v314_v60 = vld [vmem:[%s2712_s11 + $0x188] sm:$0xff]  ;;  %v303_v11 = vld [vmem:[%s2712_s11 + $0x130] sm:$0xff] }
  0x4a   : > { %2249 = vmatpush.bf16.msra.mxu1 %v2169_v21  ;;  %884 = vmatpush.bf16.msra.mxu0 %v2169_v21  ;;  %v308_v21 = vld [vmem:[%s2712_s11 + $0x158] sm:$0xff]  ;;  %v349_v53 = vpack.c.bf16 %v309_v51, %v301_v50  ;;  %v322_v61 = vld [vmem:[%s2712_s11 + $0x1c8] sm:$0xff]  ;;  %v311_v12 = vld [vmem:[%s2712_s11 + $0x170] sm:$0xff] }
  0x4b   : > { %942 = vmatpush.bf16.msra.mxu2 %v2185_v28  ;;  %v348_v24 = vpack.c.bf16 %v308_v21, %v300_v20  ;;  %v2218_v28 = vld [vmem:[#allocation5 + $0x188] sm:$0xff]  ;;  %v304_v13 = vld [vmem:[%s2712_s11 + $0x138] sm:$0xff]  ;;  %v319_v20 = vld [vmem:[%s2712_s11 + $0x1b0] sm:$0xff] }
  0x4c   : > { %971 = vmatpush.bf16.msra.mxu3 %v2193_v29  ;;  %v2226_v29 = vld [vmem:[#allocation5 + $0x1c8] sm:$0xff]  ;;  %v312_v14 = vld [vmem:[%s2712_s11 + $0x178] sm:$0xff]  ;;  %v327_v21 = vld [vmem:[%s2712_s11 + $0x1f0] sm:$0xff] }
  0x4d   : > { %895 = vmatmul.bf16.vlgmr.msra.gmra.mxu1 %v345_v31  ;;  %885 = vmatmul.bf16.vlgmr.msra.gmra.mxu0 %v329_v32  ;;  %v282_v31 = vld [vmem:[%s2712_s11 + $0x88] sm:$0xff] }
  0x4e   : > { %906 = vmatpush.bf16.msrb.mxu1 %v2184_v26  ;;  %993 = vmatpush.bf16.msrb.mxu0 %v2208_v27  ;;  %v2227_v26 = vld [vmem:[#allocation5 + $0x1d0] sm:$0xff]  ;;  %v2213_v27 = vld [vmem:[#allocation5 + $0x160] sm:$0xff]  ;;  %v290_v32 = vld [vmem:[%s2712_s11 + $0xc8] sm:$0xff] }
  0x4f   : > { %1051 = vmatpush.bf16.msrb.mxu2 %v2224_v36  ;;  %972 = vmatmul.bf16.vlgmr.msra.gmra.mxu3 %v332_v41  ;;  %v338_v36 = vpack.c.bf16 %v290_v32, %v282_v31  ;;  %v324_v41 = vld [vmem:[%s2712_s11 + $0x1d8] sm:$0xff]  ;;  %v294_v18 = vld [vmem:[%s2712_s11 + $0xe8] sm:$0xff] }
  0x50   : > { %1080 = vmatpush.bf16.msrb.mxu3 %v2232_v37  ;;  %943 = vmatmul.bf16.vlgmr.msra.gmra.mxu2 %v331_v40  ;;  %v341_v37 = vpack.c.bf16 %v293_v34, %v285_v33  ;;  %v316_v40 = vld [vmem:[%s2712_s11 + $0x198] sm:$0xff]  ;;  %v318_v33 = vld [vmem:[%s2712_s11 + $0x1a8] sm:$0xff] }
  0x51   : > { %v326_v34 = vld [vmem:[%s2712_s11 + $0x1e8] sm:$0xff] }
  0x52   : > { %907 = vmatpush.bf16.msrb.mxu1 %v2183_v38  ;;  %994 = vmatpush.bf16.msrb.mxu0 %v2207_v39  ;;  %v315_v38 = vld [vmem:[%s2712_s11 + $0x190] sm:$0xff] }
  0x53   : > { %1052 = vmatpush.bf16.msrb.mxu2 %v2223_v42  ;;  %v323_v39 = vld [vmem:[%s2712_s11 + $0x1d0] sm:$0xff] }
  0x54   : > { %1081 = vmatpush.bf16.msrb.mxu3 %v2231_v45  ;;  %v355_v42 = vpack.c.bf16 %v323_v39, %v315_v38  ;;  %v2210_v45 = vld [vmem:[#allocation5 + $0x148] sm:$0xff]  ;;  %v2240_v39 = vld [vmem:[%s3179_s3 + $0x38] sm:$0xff] }
  0x56   : > { %908 = vmatpush.bf16.msrb.mxu1 %v2182_v43  ;;  %995 = vmatpush.bf16.msrb.mxu0 %v2206_v44  ;;  %v2217_v43 = vld [vmem:[#allocation5 + $0x180] sm:$0xff]  ;;  %v356_v44 = vpack.c.bf16 %v324_v41, %v316_v40 }
  0x57   : > { %1053 = vmatpush.bf16.msrb.mxu2 %v2222_v46  ;;  %v2225_v46 = vld [vmem:[#allocation5 + $0x1c0] sm:$0xff] }
  0x58   : > { %1082 = vmatpush.bf16.msrb.mxu3 %v2230_v47  ;;  %v2209_v47 = vld [vmem:[#allocation5 + $0x140] sm:$0xff] }
  0x5a   : > { %909 = vmatpush.bf16.msrb.mxu1 %v2181_v48  ;;  %996 = vmatpush.bf16.msrb.mxu0 %v2205_v49  ;;  %v298_v48 = vld [vmem:[%s2712_s11 + $0x108] sm:$0xff] }
  0x5b   : > { %1054 = vmatpush.bf16.msrb.mxu2 %v2221_v2  ;;  %v306_v49 = vld [vmem:[%s2712_s11 + $0x148] sm:$0xff]  ;;  %v287_v2 = vld [vmem:[%s2712_s11 + $0xb0] sm:$0xff] }
  0x5c   : > { %1083 = vmatpush.bf16.msrb.mxu3 %v2229_v5  ;;  %v346_v52 = vpack.c.bf16 %v306_v49, %v298_v48  ;;  %v296_v5 = vld [vmem:[%s2712_s11 + $0xf8] sm:$0xff] }
  0x5d   : > { %900 = vmatmul.bf16.gmra.mxu1 %v353_v57  ;;  %890 = vmatmul.bf16.gmra.mxu0 %v337_v58  ;;  %v280_v57 = vld [vmem:[%s2712_s11 + $0x78] sm:$0xff] }
  0x5e   : > { %910 = vmatpush.bf16.msrb.mxu1 %v2180_v54  ;;  %997 = vmatpush.bf16.msrb.mxu0 %v2204_v55  ;;  %v271_v54 = vld [vmem:[%s2712_s11 + $0x30] sm:$0xff]  ;;  %v336_v59 = vpack.c.bf16 %v280_v57, %v272_v56  ;;  %v2237_v56 = vld [vmem:[%s3179_s3 + $0x20] sm:$0xff] }
  0x5f   : > { %977 = vmatmul.bf16.gmra.mxu3 %v340_v1  ;;  %1055 = vmatpush.bf16.msrb.mxu2 %v2220_v6  ;;  %v279_v55 = vld [vmem:[%s2712_s11 + $0x70] sm:$0xff] }
  0x60   : > { %948 = vmatmul.bf16.gmra.mxu2 %v339_v0  ;;  %1084 = vmatpush.bf16.msrb.mxu3 %v2228_v7  ;;  %v335_v58 = vpack.c.bf16 %v279_v55, %v271_v54  ;;  %v354_v0 = vpack.c.bf16 %v322_v61, %v314_v60 }
  0x62   : > { %911 = vmatpush.bf16.msrb.mxu1 %v2179_v62  ;;  %998 = vmatpush.bf16.msrb.mxu0 %v2203_v63  ;;  %v317_v62 = vld [vmem:[%s2712_s11 + $0x1a0] sm:$0xff] }
  0x63   : > { %1056 = vmatpush.bf16.msrb.mxu2 %v2219_v25  ;;  %v325_v63 = vld [vmem:[%s2712_s11 + $0x1e0] sm:$0xff] }
  0x64   : > { %1085 = vmatpush.bf16.msrb.mxu3 %v2227_v26  ;;  %v357_v1 = vpack.c.bf16 %v325_v63, %v317_v62  ;;  %v302_v26 = vld [vmem:[%s2712_s11 + $0x128] sm:$0xff] }
  0x66   : > { %912 = vmatpush.bf16.msrb.mxu1 %v2178_v3  ;;  %999 = vmatpush.bf16.msrb.mxu0 %v2202_v4  ;;  %v295_v3 = vld [vmem:[%s2712_s11 + $0xf0] sm:$0xff]  ;;  %v288_v4 = vld [vmem:[%s2712_s11 + $0xb8] sm:$0xff] }
  0x67   : > { %1057 = vmatpush.bf16.msrb.mxu2 %v2218_v28  ;;  %v343_v6 = vpack.c.bf16 %v295_v3, %v287_v2  ;;  %v344_v7 = vpack.c.bf16 %v296_v5, %v288_v4  ;;  %v2235_v5 = vld [vmem:[%s3179_s3 + $0x10] sm:$0xff] }
  0x68   : > { %1086 = vmatpush.bf16.msrb.mxu3 %v2226_v29 }
  0x6a   : > { %913 = vmatpush.bf16.msrb.mxu1 %v2177_v8  ;;  %1000 = vmatpush.bf16.msrb.mxu0 %v2201_v9  ;;  %v2771_v8 = vld [vmem:[%s2712_s11 + $0x28] sm:$0xff] }
  0x6b   : > { %1058 = vmatpush.bf16.msrb.mxu2 %v2217_v43  ;;  %v2774_v9 = vld [vmem:[%s2712_s11 + $0x68] sm:$0xff] }
  0x6c   : > { %1087 = vmatpush.bf16.msrb.mxu3 %v2225_v46 }
  0x6d   : > { %914 = vmatmul.bf16.vlgmr.msrb.gmra.mxu1 %v330_v16  ;;  %1001 = vmatmul.bf16.vlgmr.msrb.gmra.mxu0 %v333_v17  ;;  %v352_v16 = vpack.c.bf16 %v312_v14, %v304_v13  ;;  %v286_v17 = vld [vmem:[%s2712_s11 + $0xa8] sm:$0xff] }
  0x6e   : > { %1022 = vmatpush.bf16.msra.mxu1 %v2216_v10  ;;  %v334_v10 = vpack.c.bf16 %v2774_v9, %v2771_v8  ;;  %v342_v19 = vpack.c.bf16 %v294_v18, %v286_v17  ;;  %1189 = vmatpush.bf16.msra.mxu0 %v2240_v39 }
  0x6f   : > { %982 = vmatmul.bf16.gmra.mxu3 %v348_v24  ;;  %v359_v24 = vpack.c.bf16 %v327_v21, %v319_v20  ;;  %2250 = vmatpush.bf16.msra.mxu2 %v2240_v39  ;;  %v2233_v21 = vld [vmem:[%s3179_s3] sm:$0xff] }
  0x70   : > { %953 = vmatmul.bf16.gmra.mxu2 %v347_v23  ;;  %v328_v23 = vld [vmem:[%s2712_s11 + $0x1f8] sm:$0xff] }
  0x72   : > { %1023 = vmatpush.bf16.msra.mxu1 %v2215_v15  ;;  %v351_v15 = vpack.c.bf16 %v311_v12, %v303_v11 }
  0x76   : > { %1024 = vmatpush.bf16.msra.mxu1 %v2214_v22  ;;  %v320_v22 = vld [vmem:[%s2712_s11 + $0x1b8] sm:$0xff] }
  0x77   : > { %v360_v25 = vpack.c.bf16 %v328_v23, %v320_v22 }
  0x7a   : > { %1025 = vmatpush.bf16.msra.mxu1 %v2213_v27  ;;  %v310_v27 = vld [vmem:[%s2712_s11 + $0x168] sm:$0xff] }
  0x7b   : > { %v350_v28 = vpack.c.bf16 %v310_v27, %v302_v26 }
  0x7d   : > { %919 = vmatmul.bf16.gmra.mxu1 %v338_v36  ;;  %1006 = vmatmul.bf16.gmra.mxu0 %v341_v37 }
  0x7e   : > { %1026 = vmatpush.bf16.msra.mxu1 %v2212_v30 }
  0x7f   : > { %987 = vmatmul.bf16.gmra.mxu3 %v356_v44  ;;  %v2808_v44 = vld [vmem:[%s3178_s2] ss:$0 sm:$0xff] }
  0x80   : > { %958 = vmatmul.bf16.gmra.mxu2 %v355_v42 }
  0x82   : > { %1027 = vmatpush.bf16.msra.mxu1 %v2211_v35  ;;  %v358_v35 = vpack.c.bf16 %v326_v34, %v318_v33 }
  0x86   : > { %1028 = vmatpush.bf16.msra.mxu1 %v2210_v45  ;;  %v2239_v45 = vld [vmem:[%s3179_s3 + $0x30] sm:$0xff] }
  0x87   : > { %1190 = vmatpush.bf16.msra.mxu0 %v2239_v45  ;;  %2251 = vmatpush.bf16.msra.mxu2 %v2239_v45 }
  0x8a   : > { %1029 = vmatpush.bf16.msra.mxu1 %v2209_v47 }
  0x8d   : > { %924 = vmatmul.bf16.gmra.mxu1 %v346_v52  ;;  %1011 = vmatmul.bf16.gmra.mxu0 %v349_v53  ;;  %v2238_v52 = vld [vmem:[%s3179_s3 + $0x28] sm:$0xff] }
  0x8e   : > { %1191 = vmatpush.bf16.msra.mxu0 %v2238_v52  ;;  %2252 = vmatpush.bf16.msra.mxu2 %v2238_v52 }
  0x8f   : > { %1088 = vmatmul.bf16.vlgmr.msrb.gmra.mxu3 %v336_v59 }
  0x90   : > { %1059 = vmatmul.bf16.vlgmr.msrb.gmra.mxu2 %v335_v58 }
  0x92   : > { %1192 = vmatpush.bf16.msra.mxu0 %v2237_v56  ;;  %2253 = vmatpush.bf16.msra.mxu2 %v2237_v56 }
  0x9d   : > { %929 = vmatmul.bf16.gmra.mxu1 %v354_v0  ;;  %1016 = vmatmul.bf16.gmra.mxu0 %v357_v1  ;;  %v2236_v0 = vld [vmem:[%s3179_s3 + $0x18] sm:$0xff] }
  0x9e   : > { %1193 = vmatpush.bf16.msra.mxu0 %v2236_v0  ;;  %2254 = vmatpush.bf16.msra.mxu2 %v2236_v0 }
  0x9f   : > { %1093 = vmatmul.bf16.gmra.mxu3 %v344_v7 }
  0xa0   : > { %1064 = vmatmul.bf16.gmra.mxu2 %v343_v6 }
  0xa2   : > { %1194 = vmatpush.bf16.msra.mxu0 %v2235_v5  ;;  %2255 = vmatpush.bf16.msra.mxu2 %v2235_v5 }
  0xad   : > { %1030 = vmatmul.bf16.vlgmr.msra.gmra.mxu1 %v334_v10 }
  0xaf   : > { %1098 = vmatmul.bf16.gmra.mxu3 %v352_v16  ;;  %v2234_v16 = vld [vmem:[%s3179_s3 + $0x8] sm:$0xff] }
  0xb0   : > { %1069 = vmatmul.bf16.gmra.mxu2 %v351_v15  ;;  %1195 = vmatpush.bf16.msra.mxu0 %v2234_v16 }
  0xb1   : > { %2256 = vmatpush.bf16.msra.mxu2 %v2234_v16 }
  0xb4   : > { %1196 = vmatpush.bf16.msra.mxu0 %v2233_v21 }
  0xb5   : > { %2257 = vmatpush.bf16.msra.mxu2 %v2233_v21 }
  0xbd   : > { %1035 = vmatmul.bf16.gmra.mxu1 %v342_v19 }
  0xbf   : > { %1103 = vmatmul.bf16.gmra.mxu3 %v360_v25 }
  0xc0   : > { %1074 = vmatmul.bf16.gmra.mxu2 %v359_v24 }
  0xca   : > { %v896_v29 = vpop.f32.mrf.mxu1  ;;  %v886_v40 = vpop.f32.mrf.mxu0 }
  0xcb   : > { %v887_v46 = vadd.f32 %v2808_v44, %v886_v40  ;;  %v897_v6 = vadd.f32 %v2808_v44, %v896_v29 }
  0xcd   : > { %1040 = vmatmul.bf16.gmra.mxu1 %v350_v28 }
  0xd2   : > { %v2790_v30 = vpop.f32.mrf.mxu1  ;;  %v973_v32 = vpop.f32.mrf.mxu3 }
  0xd3   : > { %v944_v31 = vpop.f32.mrf.mxu2  ;;  %v888_v49 = vpop.f32.mrf.mxu0 }
  0xd4   : > { %v889_v29 = vadd.f32 %v2808_v44, %v888_v49 }
  0xda   : > { %v2794_v36 = vpop.f32.mrf.mxu1  ;;  %v2798_v38 = vpop.f32.mrf.mxu3 }
  0xdb   : > { %v2796_v37 = vpop.f32.mrf.mxu2  ;;  %v891_v57 = vpop.f32.mrf.mxu0  ;;  %v902_v22 = vadd.f32 %v2808_v44, %v2794_v36 }
  0xdc   : > { %v892_v59 = vadd.f32 %v2808_v44, %v891_v57 }
  0xdd   : > { %1045 = vmatmul.bf16.gmra.mxu1 %v358_v35 }
  0xe2   : > { %v2803_v41 = vpop.f32.mrf.mxu1  ;;  %v978_v43 = vpop.f32.mrf.mxu3 }
  0xe3   : > { %v949_v42 = vpop.f32.mrf.mxu2  ;;  %v893_v14 = vpop.f32.mrf.mxu0 }
  0xea   : > { %v915_v47 = vpop.f32.mrf.mxu1  ;;  %v2819_v53 = vpop.f32.mrf.mxu3 }
  0xeb   : > { %v916_v48 = vadd.f32 %v915_v47, %v887_v46  ;;  %v2814_v50 = vpop.f32.mrf.mxu2  ;;  %v1002_v20 = vpop.f32.mrf.mxu0  ;;  %v894_v47 = vadd.f32 %v2808_v44, %v893_v14 }
  0xed   : > { %v945_v51 = vadd.f32 %v944_v31, %v916_v48 }
  0xef   : > { %v974_v54 = vadd.f32 %v973_v32, %v945_v51 }
  0xf1   : > { %v1003_v40 = vadd.f32 %v1002_v20, %v974_v54 }
  0xf2   : > { %v917_v55 = vpop.f32.mrf.mxu1  ;;  %v983_v60 = vpop.f32.mrf.mxu3 }
  0xf3   : > { %v954_v58 = vpop.f32.mrf.mxu2  ;;  %v1004_v31 = vpop.f32.mrf.mxu0  ;;  %v918_v33 = vadd.f32 %v917_v55, %v889_v29 }
  0xf5   : > { %v947_v35 = vadd.f32 %v2796_v37, %v918_v33 }
  0xfa   : > { %v920_v61 = vpop.f32.mrf.mxu1  ;;  %v2832_v4 = vpop.f32.mrf.mxu3 }
  0xfb   : > { %v921_v62 = vadd.f32 %v920_v61, %v892_v59  ;;  %v2830_v2 = vpop.f32.mrf.mxu2 }
  0xfd   : > { %v950_v63 = vadd.f32 %v949_v42, %v921_v62  ;;  %v1007_v42 = vpop.f32.mrf.mxu0 }
  0xff   : > { %v2828_v1 = vadd.f32 %v978_v43, %v950_v63  ;;  %v976_v43 = vadd.f32 %v2798_v38, %v947_v35 }
 0x101   : > { %v1005_v48 = vadd.f32 %v1004_v31, %v976_v43  ;;  %v1008_v63 = vadd.f32 %v1007_v42, %v2828_v1 }
 0x102   : > { %v922_v3 = vpop.f32.mrf.mxu1  ;;  %v988_v12 = vpop.f32.mrf.mxu3 }
 0x103   : > { %v959_v10 = vpop.f32.mrf.mxu2  ;;  %v923_v57 = vadd.f32 %v922_v3, %v894_v47 }
 0x105   : > { %v1009_v59 = vpop.f32.mrf.mxu0 }
 0x10a   : > { %v925_v7 = vpop.f32.mrf.mxu1  ;;  %v2845_v19 = vpop.f32.mrf.mxu3 }
 0x10b   : > { %v926_v11 = vadd.f32 %v925_v7, %v897_v6  ;;  %v2843_v18 = vpop.f32.mrf.mxu2 }
 0x10d   : > { %v955_v13 = vadd.f32 %v954_v58, %v926_v11 }
 0x10f   : > { %v2838_v15 = vadd.f32 %v983_v60, %v955_v13  ;;  %v952_v60 = vadd.f32 %v2814_v50, %v923_v57  ;;  %v899_v13 = vadd.f32 %v2808_v44, %v2790_v30 }
 0x111   : > { %v981_v6 = vadd.f32 %v2819_v53, %v952_v60 }
 0x112   : > { %v927_v17 = vpop.f32.mrf.mxu1  ;;  %v1089_v28 = vpop.f32.mrf.mxu3 }
 0x113   : > { %v1060_v26 = vpop.f32.mrf.mxu2  ;;  %v1010_v3 = vadd.f32 %v1009_v59, %v981_v6  ;;  %v928_v16 = vadd.f32 %v927_v17, %v899_v13 }
 0x11a   : > { %v930_v23 = vpop.f32.mrf.mxu1  ;;  %v1091_v36 = vpop.f32.mrf.mxu3 }
 0x11b   : > { %v931_v24 = vadd.f32 %v930_v23, %v902_v22  ;;  %v1062_v34 = vpop.f32.mrf.mxu2  ;;  %v957_v23 = vadd.f32 %v2830_v2, %v928_v16 }
 0x11d   : > { %v960_v25 = vadd.f32 %v959_v10, %v931_v24  ;;  %v1012_v10 = vpop.f32.mrf.mxu0  ;;  %v986_v31 = vadd.f32 %v2832_v4, %v957_v23 }
 0x11f   : > { %v2852_v27 = vadd.f32 %v988_v12, %v960_v25 }
 0x122   : > { %v2855_v32 = vpop.f32.mrf.mxu1  ;;  %v1094_v52 = vpop.f32.mrf.mxu3 }
 0x123   : > { %v1065_v46 = vpop.f32.mrf.mxu2 }
 0x125   : > { %v1014_v25 = vpop.f32.mrf.mxu0 }
 0x126   : > { %v1015_v17 = vadd.f32 %v1014_v25, %v986_v31 }
 0x12a   : > { %v1031_v39 = vpop.f32.mrf.mxu1  ;;  %v1096_v5 = vpop.f32.mrf.mxu3 }
 0x12b   : > { %v1032_v45 = vadd.f32 %v1031_v39, %v1003_v40  ;;  %v1067_v38 = vpop.f32.mrf.mxu2 }
 0x12d   : > { %v1061_v51 = vadd.f32 %v1060_v26, %v1032_v45  ;;  %v1017_v40 = vpop.f32.mrf.mxu0 }
 0x12f   : > { %v1090_v55 = vadd.f32 %v1089_v28, %v1061_v51  ;;  %v1013_v28 = vadd.f32 %v1012_v10, %v2838_v15 }
 0x131   : > { %v1109_v54 = vmax.f32 %v1090_v55, 0.0 }
 0x132   : > { %v1033_v49 = vpop.f32.mrf.mxu1  ;;  %v1099_v22 = vpop.f32.mrf.mxu3 }
 0x133   : > { %v1034_v56 = vadd.f32 %v1033_v49, %v1005_v48  ;;  %v1070_v14 = vpop.f32.mrf.mxu2 }
 0x135   : > { %v1063_v58 = vadd.f32 %v1062_v34, %v1034_v56 }
 0x137   : > { %v1092_v37 = vadd.f32 %v1091_v36, %v1063_v58  ;;  %v904_v36 = vadd.f32 %v2808_v44, %v2803_v41  ;;  %v1019_v44 = vpop.f32.mrf.mxu0 }
 0x139   : > { %v1110_v61 = vmax.f32 %v1092_v37, 0.0  ;;  %v933_v42 = vadd.f32 %v2855_v32, %v904_v36 }
 0x13a   : > { %v1036_v62 = vpop.f32.mrf.mxu1  ;;  %v1101_v34 = vpop.f32.mrf.mxu3 }
 0x13b   : > { %v1117_v0 = vpack.c.bf16 %v1110_v61, %v1109_v54  ;;  %v1037_v7 = vadd.f32 %v1036_v62, %v1008_v63  ;;  %v1072_v30 = vpop.f32.mrf.mxu2  ;;  %v962_v4 = vadd.f32 %v2843_v18, %v933_v42 }
 0x13d   : > { %1197 = vmatmul.bf16.vlgmr.msra.gmra.mxu0 %v1117_v0  ;;  %v1066_v11 = vadd.f32 %v1065_v46, %v1037_v7  ;;  %v991_v57 = vadd.f32 %v2845_v19, %v962_v4  ;;  %v2392_v19 = vld [vmem:[%s3180_s4] ss:$0 sm:$0xff] }
 0x13f   : > { %v1095_v20 = vadd.f32 %v1094_v52, %v1066_v11  ;;  %v1018_v52 = vadd.f32 %v1017_v40, %v2852_v27  ;;  %v1020_v55 = vadd.f32 %v1019_v44, %v991_v57 }
 0x141   : > { %v1111_v24 = vmax.f32 %v1095_v20, 0.0 }
 0x142   : > { %v1038_v12 = vpop.f32.mrf.mxu1  ;;  %v1104_v49 = vpop.f32.mrf.mxu3 }
 0x143   : > { %v1039_v50 = vadd.f32 %v1038_v12, %v1010_v3  ;;  %v1075_v46 = vpop.f32.mrf.mxu2 }
 0x145   : > { %v1068_v21 = vadd.f32 %v1067_v38, %v1039_v50 }
 0x147   : > { %v1097_v1 = vadd.f32 %v1096_v5, %v1068_v21 }
 0x149   : > { %v1112_v53 = vmax.f32 %v1097_v1, 0.0 }
 0x14a   : > { %v1041_v26 = vpop.f32.mrf.mxu1  ;;  %v1106_v60 = vpop.f32.mrf.mxu3 }
 0x14b   : > { %v1118_v29 = vpack.c.bf16 %v1112_v53, %v1111_v24  ;;  %v1042_v33 = vadd.f32 %v1041_v26, %v1013_v28  ;;  %v1077_v59 = vpop.f32.mrf.mxu2 }
 0x14d   : > { %1202 = vmatmul.bf16.gmra.mxu0 %v1118_v29  ;;  %v1071_v35 = vadd.f32 %v1070_v14, %v1042_v33 }
 0x14f   : > { %v1100_v43 = vadd.f32 %v1099_v22, %v1071_v35 }
 0x151   : > { %v1113_v47 = vmax.f32 %v1100_v43, 0.0 }
 0x152   : > { %v1043_v39 = vpop.f32.mrf.mxu1 }
 0x153   : > { %v1044_v2 = vadd.f32 %v1043_v39, %v1015_v17 }
 0x155   : > { %v1073_v45 = vadd.f32 %v1072_v30, %v1044_v2 }
 0x157   : > { %v1102_v15 = vadd.f32 %v1101_v34, %v1073_v45 }
 0x159   : > { %v1114_v48 = vmax.f32 %v1102_v15, 0.0 }
 0x15a   : > { %v1046_v51 = vpop.f32.mrf.mxu1 }
 0x15b   : > { %v1119_v56 = vpack.c.bf16 %v1114_v48, %v1113_v47  ;;  %v1047_v41 = vadd.f32 %v1046_v51, %v1018_v52 }
 0x15d   : > { %1207 = vmatmul.bf16.gmra.mxu0 %v1119_v56  ;;  %v1076_v32 = vadd.f32 %v1075_v46, %v1047_v41 }
 0x15f   : > { %v1105_v54 = vadd.f32 %v1104_v49, %v1076_v32 }
 0x161   : > { %v1115_v62 = vmax.f32 %v1105_v54, 0.0 }
 0x162   : > { %v1048_v58 = vpop.f32.mrf.mxu1 }
 0x163   : > { %v1049_v37 = vadd.f32 %v1048_v58, %v1020_v55 }
 0x165   : > { %v1078_v18 = vadd.f32 %v1077_v59, %v1049_v37 }
 0x167   : > { %v1107_v61 = vadd.f32 %v1106_v60, %v1078_v18 }
 0x169   : > { %v1116_v38 = vmax.f32 %v1107_v61, 0.0 }
 0x16b   : > { %v1120_v63 = vpack.c.bf16 %v1116_v38, %v1115_v62 }
 0x16d   : > { %1212 = vmatmul.bf16.vlgmr.msra.gmra.mxu2 %v1120_v63 }
 0x1ba   : > { %v1198_v27 = vpop.f32.mrf.mxu0 }
 0x1bb   : > { %v1199_v0 = vadd.f32 %v2392_v19, %v1198_v27 }
 0x1bd   : > { %v1219_v5 = vsel %vm1218_vm0, %v1199_v0, -inf }
 0x1be   : > { %1220 = vmax.xlane.f32.xlu0 %v1219_v5  ;;  %v2571_v5 = vmov 0  }
 0x1bf   : > { %2328 = vset.pattern.permute.xlu1 %v2571_v5  ;;  %2336 = vset.pattern.permute.xlu2 %v2571_v5 }
 0x1c2   : > { %v1200_v6 = vpop.f32.mrf.mxu0 }
 0x1c3   : > { %v1201_v7 = vadd.f32 %v2392_v19, %v1200_v6  ;;  %v2572_v6 = vmov 1  }
 0x1c4   : > { %2337 = vset.pattern.permute.xlu0 %v2572_v6 }
 0x1c5   : > { %v1222_v10 = vsel %vm1218_vm0, %v1201_v7, -inf }
 0x1c6   : > { %1223 = vmax.xlane.f32.xlu0 %v1222_v10 }
 0x1ca   : > { %v1203_v3 = vpop.f32.mrf.mxu0 }
 0x1cb   : > { %v1204_v11 = vadd.f32 %v2392_v19, %v1203_v3 }
 0x1cd   : > { %v1225_v12 = vsel %vm1218_vm0, %v1204_v11, -inf }
 0x1ce   : > { %1226 = vmax.xlane.f32.xlu1 %v1225_v12 }
 0x1d2   : > { %v1205_v13 = vpop.f32.mrf.mxu0 }
 0x1d3   : > { %v1206_v50 = vadd.f32 %v2392_v19, %v1205_v13 }
 0x1d5   : > { %v1228_v14 = vsel %vm1218_vm0, %v1206_v50, -inf }
 0x1d6   : > { %1229 = vmax.xlane.f32.xlu1 %v1228_v14 }
 0x1da   : > { %v1208_v16 = vpop.f32.mrf.mxu0 }
 0x1db   : > { %v1209_v20 = vadd.f32 %v2392_v19, %v1208_v16 }
 0x1dd   : > { %v1231_v21 = vsel %vm1218_vm0, %v1209_v20, -inf }
 0x1de   : > { %1232 = vmax.xlane.f32.xlu2 %v1231_v21  ;;  %v2574_v21 = vmov 3  }
 0x1e2   : > { %v1210_v22 = vpop.f32.mrf.mxu0 }
 0x1e3   : > { %v1211_v1 = vadd.f32 %v2392_v19, %v1210_v22  ;;  %v2575_v22 = vmov 4  }
 0x1e5   : > { %v1234_v23 = vsel %vm1218_vm0, %v1211_v1, -inf }
 0x1e6   : > { %1235 = vmax.xlane.f32.xlu2 %v1234_v23  ;;  %v2577_v23 = vmov 6  }
 0x1f0   : > { %v1213_v24 = vpop.f32.mrf.mxu2 }
 0x1f1   : > { %v1214_v53 = vadd.f32 %v2392_v19, %v1213_v24 }
 0x1f3   : > { %v1237_v25 = vsel %vm1218_vm0, %v1214_v53, -inf }
 0x1f4   : > { %1238 = vmax.xlane.f32.xlu0 %v1237_v25 }
 0x1f8   : > { %v1215_v26 = vpop.f32.mrf.mxu2 }
 0x1f9   : > { %v1216_v28 = vadd.f32 %v2392_v19, %v1215_v26 }
 0x1fb   : > { %v1240_v29 = vsel %vm1218_vm0, %v1216_v28, -inf }
 0x1fc   : > { %1241 = vmax.xlane.f32.xlu1 %v1240_v29 }
 0x231   : > { %v1221_v31 = vpop.xlane.xlu0 %1220 }
 0x232   : > { %v1243_v33 = vsub.f32 %v1199_v0, %v1221_v31 }
 0x234   : > { %v1251_v30 = vmul.f32 1.442695, %v1243_v33 }
 0x236   : > { %2393 = vpow2.f32 %v1251_v30 }
 0x239   : > { %v1224_v34 = vpop.xlane.xlu0 %1223 }
 0x23a   : > { %v1244_v17 = vsub.f32 %v1201_v7, %v1224_v34 }
 0x23c   : > { %v2394_v35 = vpop.eup %2393  ;;  %v1253_v39 = vmul.f32 1.442695, %v1244_v17 }
 0x23d   : > { %v1267_v36 = vsel %vm1218_vm0, %v2394_v35, 0.0 }
 0x23e   : > { %2395 = vpow2.f32 %v1253_v39  ;;  %1268 = vadd.xlane.f32.xlu2 %v1267_v36 }
 0x241   : > { %v1227_v2 = vpop.xlane.xlu1 %1226 }
 0x242   : > { %v1245_v40 = vsub.f32 %v1204_v11, %v1227_v2 }
 0x244   : > { %v2396_v42 = vpop.eup %2395  ;;  %v1255_v43 = vmul.f32 1.442695, %v1245_v40 }
 0x245   : > { %v1270_v45 = vsel %vm1218_vm0, %v2396_v42, 0.0 }
 0x246   : > { %2397 = vpow2.f32 %v1255_v43  ;;  %1271 = vadd.xlane.f32.xlu0 %v1270_v45 }
 0x249   : > { %v1230_v15 = vpop.xlane.xlu1 %1229 }
 0x24a   : > { %v1246_v46 = vsub.f32 %v1206_v50, %v1230_v15 }
 0x24c   : > { %v2398_v4 = vpop.eup %2397  ;;  %v1257_v47 = vmul.f32 1.442695, %v1246_v46 }
 0x24d   : > { %v1273_v48 = vsel %vm1218_vm0, %v2398_v4, 0.0 }
 0x24e   : > { %2399 = vpow2.f32 %v1257_v47  ;;  %1274 = vadd.xlane.f32.xlu1 %v1273_v48 }
 0x251   : > { %v1233_v51 = vpop.xlane.xlu2 %1232 }
 0x252   : > { %v1247_v49 = vsub.f32 %v1209_v20, %v1233_v51  ;;  %v2573_v20 = vmov 2  }
 0x254   : > { %v2888_v52 = vpop.eup %2399  ;;  %v1259_v56 = vmul.f32 1.442695, %v1247_v49 }
 0x255   : > { %v1276_v57 = vsel %vm1218_vm0, %v2888_v52, 0.0 }
 0x256   : > { %2401 = vpow2.f32 %v1259_v56  ;;  %1277 = vadd.xlane.f32.xlu2 %v1276_v57 }
 0x259   : > { %v1236_v41 = vpop.xlane.xlu2 %1235 }
 0x25a   : > { %v1248_v44 = vsub.f32 %v1211_v1, %v1236_v41  ;;  %v2576_v1 = vmov 5  }
 0x25c   : > { %v2892_v55 = vpop.eup %2401  ;;  %v1261_v32 = vmul.f32 1.442695, %v1248_v44 }
 0x25d   : > { %v1279_v58 = vsel %vm1218_vm0, %v2892_v55, 0.0 }
 0x25e   : > { %2403 = vpow2.f32 %v1261_v32  ;;  %1280 = vadd.xlane.f32.xlu0 %v1279_v58  ;;  %v1372_v58 = vld [vmem:[%s2712_s11 + $0x48] sm:$0xff] }
 0x264   : > { %v2896_v59 = vpop.eup %2403 }
 0x265   : > { %v1282_v37 = vsel %vm1218_vm0, %v2896_v59, 0.0 }
 0x266   : > { %1283 = vadd.xlane.f32.xlu1 %v1282_v37  ;;  %v1308_v37 = vld [vmem:[%s2712_s11 + $0x40] sm:$0xff] }
 0x267   : > { %v1239_v60 = vpop.xlane.xlu0 %1238 }
 0x268   : > { %v1249_v54 = vsub.f32 %v1214_v53, %v1239_v60  ;;  %v2578_v53 = vmov 7   ;;  %v1428_v60 = vld [vmem:[%s2712_s11 + $0x50] sm:$0xff] }
 0x26a   : > { %v1263_v18 = vmul.f32 1.442695, %v1249_v54 }
 0x26c   : > { %2405 = vpow2.f32 %v1263_v18 }
 0x26f   : > { %v1242_v61 = vpop.xlane.xlu1 %1241 }
 0x270   : > { %v1250_v62 = vsub.f32 %v1216_v28, %v1242_v61  ;;  %v1307_v61 = vld [vmem:[%s2712_s11] sm:$0xff] }
 0x272   : > { %v2900_v38 = vpop.eup %2405  ;;  %v1265_v63 = vmul.f32 1.442695, %v1250_v62 }
 0x273   : > { %v1285_v19 = vsel %vm1218_vm0, %v2900_v38, 0.0 }
 0x274   : > { %2407 = vpow2.f32 %v1265_v63  ;;  %1286 = vadd.xlane.f32.xlu2 %v1285_v19  ;;  %v1484_v19 = vld [vmem:[%s2712_s11 + $0x58] sm:$0xff] }
 0x27a   : > { %v2904_v27 = vpop.eup %2407 }
 0x27b   : > { %v1288_v0 = vsel %vm1218_vm0, %v2904_v27, 0.0 }
 0x27c   : > { %1289 = vadd.xlane.f32.xlu0 %v1288_v0 }
 0x2b1   : > { %v1269_v7 = vpop.xlane.xlu2 %1268 }
 0x2b2   : > { %2409 = vrcp.f32 %v1269_v7 }
 0x2b8   : > { %v2410_v10 = vpop.eup %2409 }
 0x2b9   : > { %v1299_v3 = vmul.f32 %v2410_v10, %v2394_v35  ;;  %v1272_v11 = vpop.xlane.xlu0 %1271  ;;  %v1483_v10 = vld [vmem:[%s2712_s11 + $0x18] sm:$0xff] }
 0x2ba   : > { %2411 = vrcp.f32 %v1272_v11 }
 0x2bb   : > { %1317 = vperm.xlu1 %2328, %v1299_v3  }
 0x2c0   : > { %v2412_v12 = vpop.eup %2411 }
 0x2c1   : > { %v1300_v13 = vmul.f32 %v2412_v12, %v2396_v42  ;;  %v1275_v50 = vpop.xlane.xlu1 %1274 }
 0x2c2   : > { %2413 = vrcp.f32 %v1275_v50  ;;  %v1539_v50 = vld [vmem:[%s2712_s11 + $0x20] sm:$0xff] }
 0x2c3   : > { %2329 = vset.pattern.permute.xlu1 %v2572_v6  ;;  %1384 = vperm.xlu0 %2337, %v1300_v13  }
 0x2c4   : > { %1322 = vperm.xlu2 %2336, %v1300_v13   ;;  %1380 = vperm.xlu1 %2329, %v1299_v3  }
 0x2c8   : > { %v2414_v14 = vpop.eup %2413 }
 0x2c9   : > { %v1301_v16 = vmul.f32 %v2414_v14, %v2398_v4  ;;  %v1278_v24 = vpop.xlane.xlu2 %1277 }
 0x2ca   : > { %2415 = vrcp.f32 %v1278_v24 }
 0x2cb   : > { %2338 = vset.pattern.permute.xlu0 %v2573_v20 }
 0x2cc   : > { %2345 = vset.pattern.permute.xlu2 %v2572_v6  ;;  %2330 = vset.pattern.permute.xlu1 %v2573_v20 }
 0x2cd   : > { %1440 = vperm.xlu0 %2338, %v1300_v13   ;;  %1388 = vperm.xlu2 %2345, %v1301_v16  }
 0x2ce   : > { %1436 = vperm.xlu1 %2330, %v1299_v3  }
 0x2d0   : > { %v2416_v26 = vpop.eup %2415 }
 0x2d1   : > { %v2932_v28 = vmul.f32 %v2416_v26, %v2888_v52  ;;  %v1281_v31 = vpop.xlane.xlu0 %1280 }
 0x2d5   : > { %2339 = vset.pattern.permute.xlu0 %v2574_v21  ;;  %2346 = vset.pattern.permute.xlu2 %v2573_v20 }
 0x2d6   : > { %2331 = vset.pattern.permute.xlu1 %v2574_v21  ;;  %1496 = vperm.xlu0 %2339, %v1300_v13  }
 0x2d7   : > { %1444 = vperm.xlu2 %2346, %v1301_v16   ;;  %1492 = vperm.xlu1 %2331, %v1299_v3  }
 0x2d9   : > { %v1284_v35 = vpop.xlane.xlu1 %1283 }
 0x2de   : > { %2340 = vset.pattern.permute.xlu0 %v2575_v22 }
 0x2df   : > { %2347 = vset.pattern.permute.xlu2 %v2574_v21  ;;  %2332 = vset.pattern.permute.xlu1 %v2575_v22 }
 0x2e0   : > { %1552 = vperm.xlu0 %2340, %v1300_v13   ;;  %1500 = vperm.xlu2 %2347, %v1301_v16  }
 0x2e1   : > { %1548 = vperm.xlu1 %2332, %v1299_v3  }
 0x2e7   : > { %v1287_v25 = vpop.xlane.xlu2 %1286 }
 0x2e8   : > { %2341 = vset.pattern.permute.xlu0 %v2576_v1  ;;  %2348 = vset.pattern.permute.xlu2 %v2575_v22  ;;  %2417 = vrcp.f32 %v1287_v25 }
 0x2e9   : > { %2333 = vset.pattern.permute.xlu1 %v2576_v1  ;;  %1608 = vperm.xlu0 %2341, %v1300_v13   ;;  %2419 = vrcp.f32 %v1281_v31 }
 0x2ea   : > { %1556 = vperm.xlu2 %2348, %v1301_v16   ;;  %1604 = vperm.xlu1 %2333, %v1299_v3   ;;  %2421 = vrcp.f32 %v1284_v35 }
 0x2ee   : > { %v2418_v29 = vpop.eup %2417 }
 0x2ef   : > { %v2938_v33 = vmul.f32 %v2418_v29, %v2900_v38  ;;  %v2420_v30 = vpop.eup %2419  ;;  %v1290_v36 = vpop.xlane.xlu0 %1289  ;;  %v1427_v38 = vld [vmem:[%s2712_s11 + $0x10] sm:$0xff] }
 0x2f0   : > { %v2947_v34 = vmul.f32 %v2420_v30, %v2892_v55  ;;  %v2422_v47 = vpop.eup %2421  ;;  %2423 = vrcp.f32 %v1290_v36  ;;  %v1651_v36 = vld [vmem:[%s2712_s11 + $0x30] sm:$0xff] }
 0x2f1   : > { %2342 = vset.pattern.permute.xlu0 %v2577_v23  ;;  %v2994_v48 = vmul.f32 %v2422_v47, %v2896_v59  ;;  %v1371_v59 = vld [vmem:[%s2712_s11 + $0x8] sm:$0xff] }
 0x2f2   : > { %2349 = vset.pattern.permute.xlu2 %v2576_v1  ;;  %2334 = vset.pattern.permute.xlu1 %v2577_v23 }
 0x2f3   : > { %1664 = vperm.xlu0 %2342, %v1300_v13   ;;  %1612 = vperm.xlu2 %2349, %v1301_v16  }
 0x2f4   : > { %1660 = vperm.xlu1 %2334, %v1299_v3  }
 0x2f6   : > { %v2424_v32 = vpop.eup %2423 }
 0x2f7   : > { %v3019_v18 = vmul.f32 %v2424_v32, %v2904_v27  ;;  %v1540_v27 = vld [vmem:[%s2712_s11 + $0x60] sm:$0xff]  ;;  %v2426_v32 = vld [vmem:[%s2712_s11 + $0x38] sm:$0xff] }
 0x2fb   : > { %2343 = vset.pattern.permute.xlu0 %v2578_v53  ;;  %2350 = vset.pattern.permute.xlu2 %v2577_v23 }
 0x2fc   : > { %2335 = vset.pattern.permute.xlu1 %v2578_v53  ;;  %1712 = vperm.xlu0 %2343, %v1300_v13  }
 0x2fd   : > { %1668 = vperm.xlu2 %2350, %v1301_v16   ;;  %1708 = vperm.xlu1 %2335, %v1299_v3  }
 0x304   : > { %2344 = vset.pattern.permute.xlu0 %v2571_v5 }
 0x305   : > { %2351 = vset.pattern.permute.xlu2 %v2578_v53  ;;  %2353 = vset.pattern.permute.xlu1 %v2572_v6 }
 0x306   : > { %1327 = vperm.xlu0 %2344, %v1301_v16   ;;  %1716 = vperm.xlu2 %2351, %v1301_v16  }
 0x307   : > { %1392 = vperm.xlu1 %2353, %v2932_v28  }
 0x30e   : > { %2376 = vset.pattern.permute.xlu0 %v2572_v6  ;;  %2352 = vset.pattern.permute.xlu2 %v2571_v5 }
 0x30f   : > { %2354 = vset.pattern.permute.xlu1 %v2573_v20  ;;  %1404 = vperm.xlu0 %2376, %v2938_v33  }
 0x310   : > { %1332 = vperm.xlu2 %2352, %v2932_v28   ;;  %1448 = vperm.xlu1 %2354, %v2932_v28  }
 0x317   : > { %2377 = vset.pattern.permute.xlu0 %v2573_v20 }
 0x318   : > { %2360 = vset.pattern.permute.xlu2 %v2572_v6  ;;  %2355 = vset.pattern.permute.xlu1 %v2574_v21 }
 0x319   : > { %1460 = vperm.xlu0 %2377, %v2938_v33   ;;  %1396 = vperm.xlu2 %2360, %v2947_v34  }
 0x31a   : > { %1504 = vperm.xlu1 %2355, %v2932_v28  }
 0x31e   : > { %v2955_v17 = vpop.permute.xlu2 %1322 }
 0x31f   : > { %v1356_v0 = vmul.f32 %v2955_v17, %v1308_v37 }
 0x321   : > { %2378 = vset.pattern.permute.xlu0 %v2574_v21  ;;  %2361 = vset.pattern.permute.xlu2 %v2573_v20 }
 0x322   : > { %2356 = vset.pattern.permute.xlu1 %v2575_v22  ;;  %1516 = vperm.xlu0 %2378, %v2938_v33  }
 0x323   : > { %1452 = vperm.xlu2 %2361, %v2947_v34   ;;  %1560 = vperm.xlu1 %2356, %v2932_v28  }
 0x327   : > { %v2963_v39 = vpop.permute.xlu2 %1388 }
 0x32a   : > { %2379 = vset.pattern.permute.xlu0 %v2575_v22 }
 0x32b   : > { %2362 = vset.pattern.permute.xlu2 %v2574_v21  ;;  %2357 = vset.pattern.permute.xlu1 %v2576_v1 }
 0x32c   : > { %1572 = vperm.xlu0 %2379, %v2938_v33   ;;  %1508 = vperm.xlu2 %2362, %v2947_v34  }
 0x32d   : > { %1616 = vperm.xlu1 %2357, %v2932_v28   ;;  %v2971_v2 = vpop.permute.xlu1 %1317 }
 0x32e   : > { %v1355_v3 = vmul.f32 %v2971_v2, %v1307_v61  ;;  %v1373_v61 = vld [vmem:[%s2712_s11 + $0x88] sm:$0xff] }
 0x331   : > { %v2973_v40 = vpop.permute.xlu2 %1444 }
 0x334   : > { %2380 = vset.pattern.permute.xlu0 %v2576_v1  ;;  %2363 = vset.pattern.permute.xlu2 %v2575_v22 }
 0x335   : > { %2358 = vset.pattern.permute.xlu1 %v2577_v23  ;;  %1628 = vperm.xlu0 %2380, %v2938_v33   ;;  %v1385_v42 = vpop.permute.xlu0 %1384 }
 0x336   : > { %1564 = vperm.xlu2 %2363, %v2947_v34   ;;  %1672 = vperm.xlu1 %2358, %v2932_v28   ;;  %v1381_v43 = vpop.permute.xlu1 %1380  ;;  %v1412_v62 = vmul.f32 %v1385_v42, %v1372_v58 }
 0x337   : > { %v1411_v63 = vmul.f32 %v1381_v43, %v1371_v59 }
 0x338   : > { %v1420_v12 = vadd.f32 %v1412_v62, %v1356_v0  ;;  %v1309_v62 = vld [vmem:[%s2712_s11 + $0x80] sm:$0xff] }
 0x339   : > { %v1419_v16 = vadd.f32 %v1411_v63, %v1355_v3  ;;  %v1374_v63 = vld [vmem:[%s2712_s11 + $0xc8] sm:$0xff] }
 0x33a   : > { %v2981_v45 = vpop.permute.xlu2 %1500 }
 0x33d   : > { %2381 = vset.pattern.permute.xlu0 %v2577_v23 }
 0x33e   : > { %2364 = vset.pattern.permute.xlu2 %v2576_v1  ;;  %2359 = vset.pattern.permute.xlu1 %v2571_v5 }
 0x33f   : > { %1684 = vperm.xlu0 %2381, %v2938_v33   ;;  %1620 = vperm.xlu2 %2364, %v2947_v34   ;;  %v1441_v15 = vpop.permute.xlu0 %1440 }
 0x340   : > { %1337 = vperm.xlu1 %2359, %v2947_v34   ;;  %v1437_v46 = vpop.permute.xlu1 %1436  ;;  %v1468_v7 = vmul.f32 %v1441_v15, %v1428_v60 }
 0x341   : > { %v1467_v11 = vmul.f32 %v1437_v46, %v1427_v38  ;;  %v1310_v38 = vld [vmem:[%s2712_s11 + $0xc0] sm:$0xff] }
 0x342   : > { %v1476_v26 = vadd.f32 %v1468_v7, %v1420_v12  ;;  %v1413_v7 = vmul.f32 %v2963_v39, %v1373_v61  ;;  %v1487_v61 = vld [vmem:[%s2712_s11 + $0x118] sm:$0xff] }
 0x343   : > { %v1475_v31 = vadd.f32 %v1467_v11, %v1419_v16  ;;  %v1485_v11 = vld [vmem:[%s2712_s11 + $0x98] sm:$0xff] }
 0x344   : > { %v2989_v4 = vpop.permute.xlu2 %1556  ;;  %v1525_v16 = vmul.f32 %v2981_v45, %v1485_v11  ;;  %v1655_v11 = vld [vmem:[%s2712_s11 + $0x130] sm:$0xff] }
 0x347   : > { %2389 = vset.pattern.permute.xlu0 %v2578_v53  ;;  %2365 = vset.pattern.permute.xlu2 %v2577_v23 }
 0x348   : > { %1732 = vperm.xlu0 %2389, %v2938_v33   ;;  %1676 = vperm.xlu2 %2365, %v2947_v34   ;;  %v1497_v51 = vpop.permute.xlu0 %1496 }
 0x349   : > { %2367 = vset.pattern.permute.xlu1 %v2572_v6  ;;  %v1493_v49 = vpop.permute.xlu1 %1492  ;;  %v1524_v13 = vmul.f32 %v1497_v51, %v1484_v19  ;;  %v1429_v19 = vld [vmem:[%s2712_s11 + $0x90] sm:$0xff] }
 0x34a   : > { %1400 = vperm.xlu1 %2367, %v2994_v48   ;;  %v1523_v24 = vmul.f32 %v1493_v49, %v1483_v10  ;;  %v1469_v12 = vmul.f32 %v2973_v40, %v1429_v19  ;;  %v1430_v40 = vld [vmem:[%s2712_s11 + $0xd0] sm:$0xff] }
 0x34b   : > { %v1532_v17 = vadd.f32 %v1524_v13, %v1476_v26 }
 0x34c   : > { %v1531_v2 = vadd.f32 %v1523_v24, %v1475_v31 }
 0x34d   : > { %v3000_v52 = vpop.permute.xlu2 %1612 }
 0x350   : > { %2366 = vset.pattern.permute.xlu2 %v2571_v5 }
 0x351   : > { %1342 = vperm.xlu2 %2366, %v2994_v48  }
 0x352   : > { %2368 = vset.pattern.permute.xlu1 %v2573_v20  ;;  %v1553_v56 = vpop.permute.xlu0 %1552 }
 0x353   : > { %1456 = vperm.xlu1 %2368, %v2994_v48   ;;  %v1549_v57 = vpop.permute.xlu1 %1548  ;;  %v1580_v29 = vmul.f32 %v1553_v56, %v1540_v27 }
 0x354   : > { %v1579_v30 = vmul.f32 %v1549_v57, %v1539_v50  ;;  %v2425_v57 = vld [vmem:[%s2712_s11 + $0x78] sm:$0xff]  ;;  %v1541_v50 = vld [vmem:[%s2712_s11 + $0xa0] sm:$0xff] }
 0x355   : > { %v1588_v15 = vadd.f32 %v1580_v29, %v1532_v17  ;;  %v2427_v29 = vld [vmem:[%s2712_s11 + $0xa8] sm:$0xff] }
 0x356   : > { %v1587_v47 = vadd.f32 %v1579_v30, %v1531_v2  ;;  %v1637_v31 = vmul.f32 %v2427_v29, %v3000_v52  ;;  %v1486_v52 = vld [vmem:[%s2712_s11 + $0xd8] sm:$0xff] }
 0x357   : > { %v3006_v41 = vpop.permute.xlu2 %1668 }
 0x359   : > { %2375 = vset.pattern.permute.xlu2 %v2578_v53 }
 0x35a   : > { %1724 = vperm.xlu2 %2375, %v2947_v34   ;;  %v1652_v34 = vld [vmem:[%s2712_s11 + $0x70] sm:$0xff] }
 0x35b   : > { %2369 = vset.pattern.permute.xlu1 %v2574_v21  ;;  %v1609_v44 = vpop.permute.xlu0 %1608 }
 0x35c   : > { %1512 = vperm.xlu1 %2369, %v2994_v48   ;;  %v1605_v55 = vpop.permute.xlu1 %1604  ;;  %v1636_v35 = vmul.f32 %v1609_v44, %v2774_v9 }
 0x35d   : > { %v1635_v42 = vmul.f32 %v1605_v55, %v2771_v8 }
 0x35e   : > { %v1644_v49 = vadd.f32 %v1636_v35, %v1588_v15 }
 0x35f   : > { %v1643_v9 = vadd.f32 %v1635_v42, %v1587_v47 }
 0x360   : > { %v3016_v54 = vpop.permute.xlu2 %1716 }
 0x362   : > { %2382 = vset.pattern.permute.xlu2 %v2571_v5 }
 0x363   : > { %1352 = vperm.xlu2 %2382, %v3019_v18  }
 0x364   : > { %2370 = vset.pattern.permute.xlu1 %v2575_v22 }
 0x365   : > { %1568 = vperm.xlu1 %2370, %v2994_v48   ;;  %v1665_v14 = vpop.permute.xlu0 %1664 }
 0x366   : > { %v1661_v25 = vpop.permute.xlu1 %1660  ;;  %v1692_v46 = vmul.f32 %v1665_v14, %v1652_v34 }
 0x367   : > { %v1691_v51 = vmul.f32 %v1661_v25, %v1651_v36  ;;  %v1581_v25 = vmul.f32 %v2989_v4, %v1541_v50  ;;  %v2429_v36 = vld [vmem:[%s2712_s11 + $0xb8] sm:$0xff] }
 0x368   : > { %v1700_v8 = vadd.f32 %v1692_v46, %v1644_v49  ;;  %v1741_v4 = vmul.f32 %v2429_v36, %v3016_v54  ;;  %v1598_v49 = vld [vmem:[%s2712_s11 + $0xe8] sm:$0xff] }
 0x36a   : > { %v1333_v43 = vpop.permute.xlu2 %1332 }
 0x36b   : > { %2383 = vset.pattern.permute.xlu2 %v2572_v6  ;;  %v1699_v6 = vadd.f32 %v1691_v51, %v1643_v9 }
 0x36c   : > { %1408 = vperm.xlu2 %2383, %v3019_v18  }
 0x36d   : > { %2371 = vset.pattern.permute.xlu1 %v2576_v1 }
 0x36e   : > { %1624 = vperm.xlu1 %2371, %v2994_v48   ;;  %v1713_v56 = vpop.permute.xlu0 %1712 }
 0x36f   : > { %v1740_v44 = vmul.f32 %v2425_v57, %v1713_v56  ;;  %v1709_v55 = vpop.permute.xlu1 %1708 }
 0x370   : > { %v1739_v58 = vmul.f32 %v2426_v32, %v1709_v55  ;;  %v1311_v32 = vld [vmem:[%s2712_s11 + $0x100] sm:$0xff] }
 0x371   : > { %v1748_v59 = vadd.f32 %v1740_v44, %v1700_v8  ;;  %v1654_v8 = vld [vmem:[%s2712_s11 + $0xf0] sm:$0xff] }
 0x372   : > { %v1747_v37 = vadd.f32 %v1739_v58, %v1699_v6  ;;  %v1375_v6 = vld [vmem:[%s2712_s11 + $0x108] sm:$0xff]  ;;  %v1431_v58 = vld [vmem:[%s2712_s11 + $0x110] sm:$0xff] }
 0x373   : > { %1756 = vst [vmem:[%s3044_s16 + $0x8] sm:$0xff] %v1748_v59  ;;  %v3047_v60 = vpop.permute.xlu2 %1396 }
 0x374   : > { %1755 = vst [vmem:[%s3044_s16] sm:$0xff] %v1747_v37  ;;  %2384 = vset.pattern.permute.xlu2 %v2573_v20  ;;  %v1358_v20 = vmul.f32 %v1333_v43, %v1310_v38 }
 0x375   : > { %1464 = vperm.xlu2 %2384, %v3019_v18  }
 0x376   : > { %2372 = vset.pattern.permute.xlu1 %v2577_v23 }
 0x377   : > { %1680 = vperm.xlu1 %2372, %v2994_v48  }
 0x378   : > { %v1328_v0 = vpop.permute.xlu0 %1327 }
 0x379   : > { %v1357_v10 = vmul.f32 %v1328_v0, %v1309_v62  ;;  %v1393_v3 = vpop.permute.xlu1 %1392 }
 0x37a   : > { %v1414_v27 = vmul.f32 %v1393_v3, %v1374_v63  ;;  %v1543_v63 = vld [vmem:[%s2712_s11 + $0x120] sm:$0xff] }
 0x37b   : > { %v1421_v13 = vadd.f32 %v1413_v7, %v1357_v10  ;;  %v1599_v7 = vld [vmem:[%s2712_s11 + $0x128] sm:$0xff] }
 0x37c   : > { %v1422_v14 = vadd.f32 %v1414_v27, %v1358_v20 }
 0x37d   : > { %v1477_v24 = vadd.f32 %v1469_v12, %v1421_v13  ;;  %2385 = vset.pattern.permute.xlu2 %v2574_v21  ;;  %v1453_v39 = vpop.permute.xlu2 %1452  ;;  %v2428_v21 = vld [vmem:[%s2712_s11 + $0xb0] sm:$0xff] }
 0x37e   : > { %1520 = vperm.xlu2 %2385, %v3019_v18   ;;  %v1693_v34 = vmul.f32 %v2428_v21, %v3006_v41 }
 0x37f   : > { %v1533_v26 = vadd.f32 %v1525_v16, %v1477_v24  ;;  %2373 = vset.pattern.permute.xlu1 %v2571_v5  ;;  %v2430_v16 = vld [vmem:[%s2712_s11 + $0x138] sm:$0xff] }
 0x380   : > { %1347 = vperm.xlu1 %2373, %v2938_v33  }
 0x381   : > { %v1589_v45 = vadd.f32 %v1581_v25, %v1533_v26 }
 0x382   : > { %v1449_v30 = vpop.permute.xlu1 %1448 }
 0x383   : > { %v1645_v17 = vadd.f32 %v1637_v31, %v1589_v45  ;;  %v1470_v35 = vmul.f32 %v1449_v30, %v1430_v40 }
 0x385   : > { %v1701_v2 = vadd.f32 %v1693_v34, %v1645_v17  ;;  %v1478_v5 = vadd.f32 %v1470_v35, %v1422_v14 }
 0x386   : > { %2386 = vset.pattern.permute.xlu2 %v2575_v22  ;;  %v1509_v33 = vpop.permute.xlu2 %1508  ;;  %v1542_v22 = vld [vmem:[%s2712_s11 + $0xe0] sm:$0xff] }
 0x387   : > { %v1749_v42 = vadd.f32 %v1741_v4, %v1701_v2  ;;  %1576 = vperm.xlu2 %2386, %v3019_v18   ;;  %v1527_v19 = vmul.f32 %v1509_v33, %v1487_v61  ;;  %v1378_v33 = vld [vmem:[%s2712_s11 + $0x1c8] sm:$0xff] }
 0x388   : > { %2374 = vset.pattern.permute.xlu1 %v2578_v53 }
 0x389   : > { %1757 = vst [vmem:[%s3044_s16 + $0x10] sm:$0xff] %v1749_v42  ;;  %1720 = vperm.xlu1 %2374, %v2932_v28   ;;  %v1314_v42 = vld [vmem:[%s2712_s11 + $0x1c0] sm:$0xff] }
 0x38c   : > { %v1505_v41 = vpop.permute.xlu1 %1504 }
 0x38d   : > { %v1526_v43 = vmul.f32 %v1505_v41, %v1486_v52  ;;  %v1434_v52 = vld [vmem:[%s2712_s11 + $0x1d0] sm:$0xff] }
 0x38f   : > { %v1534_v15 = vadd.f32 %v1526_v43, %v1478_v5  ;;  %2387 = vset.pattern.permute.xlu2 %v2576_v1  ;;  %v1377_v43 = vld [vmem:[%s2712_s11 + $0x188] sm:$0xff] }
 0x390   : > { %v1565_v54 = vpop.permute.xlu2 %1564  ;;  %1632 = vperm.xlu2 %2387, %v3019_v18  }
 0x391   : > { %1728 = vperm.xlu1 %2374, %v2994_v48   ;;  %v1583_v10 = vmul.f32 %v1565_v54, %v1543_v63  ;;  %v1313_v54 = vld [vmem:[%s2712_s11 + $0x180] sm:$0xff] }
 0x395   : > { %v1561_v46 = vpop.permute.xlu1 %1560 }
 0x396   : > { %v1582_v47 = vmul.f32 %v1561_v46, %v1542_v22 }
 0x398   : > { %v1590_v51 = vadd.f32 %v1582_v47, %v1534_v15  ;;  %2388 = vset.pattern.permute.xlu2 %v2577_v23  ;;  %v1490_v15 = vld [vmem:[%s2712_s11 + $0x1d8] sm:$0xff]  ;;  %v1433_v47 = vld [vmem:[%s2712_s11 + $0x190] sm:$0xff] }
 0x399   : > { %v1621_v28 = vpop.permute.xlu2 %1620  ;;  %1688 = vperm.xlu2 %2388, %v3019_v18  }
 0x39a   : > { %v1639_v20 = vmul.f32 %v1621_v28, %v1599_v7  ;;  %v1546_v28 = vld [vmem:[%s2712_s11 + $0x1e0] sm:$0xff] }
 0x39f   : > { %v1617_v1 = vpop.permute.xlu1 %1616 }
 0x3a0   : > { %v1638_v9 = vmul.f32 %v1617_v1, %v1598_v49 }
 0x3a1   : > { %2390 = vset.pattern.permute.xlu2 %v2578_v53  ;;  %v1415_v53 = vmul.f32 %v3047_v60, %v1375_v6  ;;  %v1602_v6 = vld [vmem:[%s2712_s11 + $0x1e8] sm:$0xff] }
 0x3a2   : > { %v1646_v56 = vadd.f32 %v1638_v9, %v1590_v51  ;;  %v1677_v48 = vpop.permute.xlu2 %1676  ;;  %1736 = vperm.xlu2 %2390, %v3019_v18   ;;  %v1471_v18 = vmul.f32 %v1453_v39, %v1431_v58  ;;  %v1405_v39 = vpop.permute.xlu0 %1404  ;;  %v1376_v9 = vld [vmem:[%s2712_s11 + $0x148] sm:$0xff]  ;;  %v1312_v58 = vld [vmem:[%s2712_s11 + $0x140] sm:$0xff] }
 0x3a3   : > { %v1695_v13 = vmul.f32 %v1677_v48, %v1655_v11  ;;  %v1417_v1 = vmul.f32 %v1405_v39, %v1377_v43 }
 0x3a8   : > { %v1673_v57 = vpop.permute.xlu1 %1672 }
 0x3a9   : > { %v1694_v44 = vmul.f32 %v1673_v57, %v1654_v8 }
 0x3aa   : > { %v1461_v29 = vpop.permute.xlu0 %1460 }
 0x3ab   : > { %v3092_v23 = vadd.f32 %v1694_v44, %v1646_v56  ;;  %v3094_v55 = vpop.permute.xlu2 %1342  ;;  %v1489_v44 = vld [vmem:[%s2712_s11 + $0x198] sm:$0xff] }
 0x3ac   : > { %v1360_v11 = vmul.f32 %v3094_v55, %v1312_v58 }
 0x3b2   : > { %v1338_v59 = vpop.permute.xlu1 %1337  ;;  %v1517_v30 = vpop.permute.xlu0 %1516 }
 0x3b3   : > { %v1359_v37 = vmul.f32 %v1338_v59, %v1311_v32  ;;  %v1473_v32 = vmul.f32 %v1461_v29, %v1433_v47  ;;  %v1432_v59 = vld [vmem:[%s2712_s11 + $0x150] sm:$0xff]  ;;  %v1529_v63 = vmul.f32 %v1517_v30, %v1489_v44 }
 0x3b4   : > { %v1725_v62 = vpop.permute.xlu2 %1724 }
 0x3b5   : > { %v1423_v38 = vadd.f32 %v1415_v53, %v1359_v37  ;;  %v1743_v24 = vmul.f32 %v2430_v16, %v1725_v62  ;;  %v1545_v62 = vld [vmem:[%s2712_s11 + $0x1a0] sm:$0xff]  ;;  %v1657_v16 = vld [vmem:[%s2712_s11 + $0x1b0] sm:$0xff] }
 0x3b7   : > { %v1479_v0 = vadd.f32 %v1471_v18, %v1423_v38  ;;  %v1658_v38 = vld [vmem:[%s2712_s11 + $0x1f0] sm:$0xff] }
 0x3b9   : > { %v1535_v3 = vadd.f32 %v1527_v19, %v1479_v0  ;;  %v1488_v19 = vld [vmem:[%s2712_s11 + $0x158] sm:$0xff] }
 0x3ba   : > { %v1573_v17 = vpop.permute.xlu0 %1572 }
 0x3bb   : > { %v1591_v27 = vadd.f32 %v1583_v10, %v1535_v3  ;;  %v1601_v3 = vld [vmem:[%s2712_s11 + $0x1a8] sm:$0xff] }
 0x3bc   : > { %v1401_v12 = vpop.permute.xlu1 %1400 }
 0x3bd   : > { %v1647_v50 = vadd.f32 %v1639_v20, %v1591_v27  ;;  %v1353_v60 = vpop.permute.xlu2 %1352  ;;  %v1416_v18 = vmul.f32 %v1401_v12, %v1376_v9  ;;  %v1585_v27 = vmul.f32 %v1573_v17, %v1545_v62 }
 0x3be   : > { %v1362_v22 = vmul.f32 %v1353_v60, %v1314_v42 }
 0x3bf   : > { %v1703_v14 = vadd.f32 %v1695_v13, %v1647_v50  ;;  %v1544_v13 = vld [vmem:[%s2712_s11 + $0x160] sm:$0xff]  ;;  %v1424_v12 = vadd.f32 %v1416_v18, %v1360_v11 }
 0x3c1   : > { %v1751_v25 = vadd.f32 %v1743_v24, %v1703_v14 }
 0x3c2   : > { %v1629_v4 = vpop.permute.xlu0 %1628 }
 0x3c3   : > { %1759 = vst [vmem:[%s3044_s16 + $0x20] sm:$0xff] %v1751_v25  ;;  %v1641_v39 = vmul.f32 %v1629_v4, %v1601_v3  ;;  %v1600_v25 = vld [vmem:[%s2712_s11 + $0x168] sm:$0xff]  ;;  %v2432_v4 = vld [vmem:[%s2712_s11 + $0x1f8] sm:$0xff] }
 0x3c5   : > { %v1457_v26 = vpop.permute.xlu1 %1456 }
 0x3c6   : > { %v1409_v40 = vpop.permute.xlu2 %1408  ;;  %v1472_v20 = vmul.f32 %v1457_v26, %v1432_v59 }
 0x3c7   : > { %v1418_v41 = vmul.f32 %v1409_v40, %v1378_v33  ;;  %v1656_v33 = vld [vmem:[%s2712_s11 + $0x170] sm:$0xff] }
 0x3c8   : > { %v1480_v55 = vadd.f32 %v1472_v20, %v1424_v12 }
 0x3c9   : > { %v1426_v56 = vadd.f32 %v1418_v41, %v1362_v22 }
 0x3ca   : > { %v1685_v51 = vpop.permute.xlu0 %1684 }
 0x3ce   : > { %v1513_v31 = vpop.permute.xlu1 %1512 }
 0x3cf   : > { %v1465_v45 = vpop.permute.xlu2 %1464  ;;  %v1528_v24 = vmul.f32 %v1513_v31, %v1488_v19 }
 0x3d0   : > { %v1474_v46 = vmul.f32 %v1465_v45, %v1434_v52 }
 0x3d1   : > { %v1536_v41 = vadd.f32 %v1528_v24, %v1480_v55 }
 0x3d2   : > { %v1482_v53 = vadd.f32 %v1474_v46, %v1426_v56  ;;  %v1733_v30 = vpop.permute.xlu0 %1732 }
 0x3d7   : > { %v1569_v21 = vpop.permute.xlu1 %1568 }
 0x3d8   : > { %v1521_v34 = vpop.permute.xlu2 %1520  ;;  %v1584_v26 = vmul.f32 %v1569_v21, %v1544_v13  ;;  %v2433_v21 = vld [vmem:[%s2712_s11 + $0x1b8] sm:$0xff] }
 0x3d9   : > { %v1530_v48 = vmul.f32 %v1521_v34, %v1490_v15  ;;  %v2431_v34 = vld [vmem:[%s2712_s11 + $0xf8] sm:$0xff] }
 0x3da   : > { %v1592_v47 = vadd.f32 %v1584_v26, %v1536_v41 }
 0x3db   : > { %v1538_v0 = vadd.f32 %v1530_v48, %v1482_v53 }
 0x3e0   : > { %v3106_v35 = vpop.permute.xlu1 %1624 }
 0x3e1   : > { %v1577_v36 = vpop.permute.xlu2 %1576  ;;  %v1640_v43 = vmul.f32 %v3106_v35, %v1600_v25 }
 0x3e2   : > { %v1586_v37 = vmul.f32 %v1577_v36, %v1546_v28 }
 0x3e3   : > { %v1648_v35 = vadd.f32 %v1640_v43, %v1592_v47 }
 0x3e4   : > { %v1594_v50 = vadd.f32 %v1586_v37, %v1538_v0 }
 0x3e9   : > { %v3108_v2 = vpop.permute.xlu1 %1680 }
 0x3ea   : > { %v1633_v5 = vpop.permute.xlu2 %1632 }
 0x3eb   : > { %v1642_v7 = vmul.f32 %v1633_v5, %v1602_v6  ;;  %v1697_v5 = vmul.f32 %v1685_v51, %v1657_v16  ;;  %v1696_v51 = vmul.f32 %v3108_v2, %v1656_v33 }
 0x3ed   : > { %v1650_v40 = vadd.f32 %v1642_v7, %v1594_v50 }
 0x3f2   : > { %v1348_v49 = vpop.permute.xlu1 %1347 }
 0x3f3   : > { %v1361_v8 = vmul.f32 %v1348_v49, %v1313_v54  ;;  %v1689_v57 = vpop.permute.xlu2 %1688  ;;  %v1745_v54 = vmul.f32 %v2433_v21, %v1733_v30  ;;  %v1704_v49 = vadd.f32 %v1696_v51, %v1648_v35 }
 0x3f4   : > { %v1698_v14 = vmul.f32 %v1689_v57, %v1658_v38 }
 0x3f5   : > { %v1425_v61 = vadd.f32 %v1417_v1, %v1361_v8  ;;  %v2434_v1 = vld [vmem:[%s2712_s11 + $0x178] sm:$0xff] }
 0x3f6   : > { %v1706_v31 = vadd.f32 %v1698_v14, %v1650_v40 }
 0x3f7   : > { %v1481_v10 = vadd.f32 %v1473_v32, %v1425_v61 }
 0x3f9   : > { %v1537_v60 = vadd.f32 %v1529_v63, %v1481_v10 }
 0x3fb   : > { %v1593_v29 = vadd.f32 %v1585_v27, %v1537_v60  ;;  %v1721_v45 = vpop.permute.xlu1 %1720 }
 0x3fc   : > { %v1742_v17 = vmul.f32 %v2431_v34, %v1721_v45  ;;  %v1737_v36 = vpop.permute.xlu2 %1736 }
 0x3fd   : > { %v1649_v42 = vadd.f32 %v1641_v39, %v1593_v29  ;;  %v1746_v52 = vmul.f32 %v2432_v4, %v1737_v36 }
 0x3fe   : > { %v1750_v15 = vadd.f32 %v1742_v17, %v3092_v23 }
 0x3ff   : > { %v1705_v22 = vadd.f32 %v1697_v5, %v1649_v42  ;;  %v1754_v46 = vadd.f32 %v1746_v52, %v1706_v31 }
 0x400   : > { %1758 = vst [vmem:[%s3044_s16 + $0x18] sm:$0xff] %v1750_v15 }
 0x401   : > { %v1753_v28 = vadd.f32 %v1745_v54, %v1705_v22  ;;  %1762 = vst [vmem:[%s3044_s16 + $0x38] sm:$0xff] %v1754_v46 }
 0x403   : > { %1761 = vst [vmem:[%s3044_s16 + $0x30] sm:$0xff] %v1753_v28  ;;  %v1729_v23 = vpop.permute.xlu1 %1728 }
 0x404   : > { %v1744_v9 = vmul.f32 %v2434_v1, %v1729_v23 }
 0x406   : > { %v1752_v56 = vadd.f32 %v1744_v9, %v1704_v49 }
 0x408   : > { %1760 = vst [vmem:[%s3044_s16 + $0x28] sm:$0xff] %v1752_v56 }
 0x409   : > { %2522 = shalt.err (!%p2519_p10)
}
 0x40a   : > { %s2579_s28 = smov 128   ;;  %s2580_s11 = smov 8  }
 0x40b   : > { %2264 = dma.vmem_to_hbm [thread:$0]  (%p2679_p5), %s1777_s14, 1024, %s1779_s15, %s1764_s10, %s2579_s28, %s2579_s28, %s2580_s11  }
 0x40c PF: > { %p2281_p11 = scmp.ge.s32.totalorder %s2565_s21, 2  ;;  %s1793_s16 = sand.u32 1, %s2553_s18  }
 0x40d   : > { %s1794_s17 = scalar_lea.sflag [#allocation4], %s1793_s16 }
 0x40e   : > { %p2275_p12 = pnand %p2281_p11, %p2646_p6 }
 0x410   : > { %p2276_p13 = pneg %p2275_p12 }
 0x412   : > { %2548 = dma.done.wait (%p2276_p13), %s1794_s17, 1024  }
 0x413   : > { %2550 = vsyncadd (%p2276_p13), %s1794_s17, 4294966272  ;;  %p19_p0 = scmp.ge.s32.totalorder %s2663_s7, 6   ;;  %s3187_s18 = smov %s2557_s19 }
 0x414   : > { %s3188_s19 = smov %s2561_s20  ;;  %s3189_s20 = smov %s2675_s12 }
 0x415   : > { %s3190_s21 = smov %s2663_s7  ;;  %21 = sbr.rel (!%p19_p0) target bundleno = 6 (0x6), region = 89 }
 0x41a   :  { %1800 = vsyncpa [#allocation3], 1 }
 0x41b   :  { %1802 = vsyncpa [#allocation3 + $0x1], 1 }
 0x41c   :  { %1803 = vsyncpa [#allocation6], 1 }
 0x41d   :  { %1804 = vsyncpa [#allocation4], 1 }
 0x41e   :  { %1806 = vsyncpa [#allocation4 + $0x1], 1 }

// kernel: tpu_custom_call.1
= control target key start
LH: loop header
LB: loop body
LE: loop exit
PB: predicated region body
PF: predicated region fallthrough
CT: control target
= control target key end

     0   :  { %10 = vsyncpa [#allocation3], 0  ;;  %s3176_s0 = inlined_call_operand.hbm [shape: f32[256,1024], index: 0, kind: input, shape index: {}]   ;;  %s3177_s1 = inlined_call_operand.hbm [shape: bf16[1024,128], index: 1, kind: input, shape index: {}]   ;;  %s3178_s2 = inlined_call_operand.vmem [shape: f32[1,128], index: 2, kind: input, shape index: {}]   ;;  %s3179_s3 = inlined_call_operand.vmem [shape: bf16[128,8], index: 3, kind: input, shape index: {}]   ;;  %s3180_s4 = inlined_call_operand.vmem [shape: f32[1,8], index: 4, kind: input, shape index: {}]   ;;  %s3181_s5 = inlined_call_operand.hbm [shape: f32[256,128], index: 5, kind: output, shape index: {}]  }
   0x1   :  { %12 = vsyncpa [#allocation3 + $0x1], 0 }
   0x2   :  { %13 = vsyncpa [#allocation6], 0 }
   0x3   :  { %14 = vsyncpa [#allocation4], 0 }
   0x4   :  { %16 = vsyncpa [#allocation4 + $0x1], 0  ;;  %s2611_s18 = smov 0   ;;  %s2613_s19 = smov 0  }
   0x5   :  { %s2615_s20 = smov 0   ;;  %s2617_s21 = smov 0  }
   0x6 LB: > { %s2632_s22 = sadd.s32 4294967295, %s2565_s21   ;;  %s1862_s23 = sadd.s32 4294967294, %s2565_s21   ;;  %s2565_s21 = sphi %s2617_s21, %s3190_s21   ;;  %s2561_s20 = sphi %s2615_s20, %s3189_s20   ;;  %s2557_s19 = sphi %s2613_s19, %s3188_s19   ;;  %s2553_s18 = sphi %s2611_s18, %s3187_s18  }
   0x7   : > { %p42_p0 = scmp.ne.s32.totalorder %s2557_s19, %s2553_s18  ;;  %p43_p1 = scmp.eq.s32.totalorder %s2632_s22, 0 }
   0x8   : > { %p150_p2 = scmp.eq.s32.totalorder %s2632_s22, 3  ;;  %p156_p3 = scmp.eq.s32.totalorder %s1862_s23, 3 }
   0x9   : > { %p2641_p4 = por %p43_p1, %p42_p0  ;;  %p1863_p5 = scmp.ge.s32.totalorder %s2565_s21, 1 }
   0xa   : > { %p2646_p6 = por %p156_p3, %p42_p0  ;;  %p163_p7 = scmp.lt.s32.totalorder %s2565_s21, 5 }
   0xb   : > { %s174_s28 = sshll.u32 %s3177_s1, 4  ;;  %s2567_s30 = smov [#allocation5]   ;;  %s175_s28 = int_to_ptr.hbm [resolvable:$true] %s174_s28 }
   0xc   : > { %p2654_p8 = pnand %p1863_p5, %p163_p7  ;;  %s176_s6 = sshll.u32 %s2567_s30, 4  ;;  %s177_s6 = int_to_ptr.vmem [resolvable:$true] %s176_s6 }
   0xd   : > { %s2663_s7 = sadd.s32 1, %s2565_s21   ;;  %s2568_s8 = smov 64  }
   0xe   : > { %p2266_p9 = pneg %p2654_p8  ;;  %s2569_s9 = smov 4  }
   0xf   : > { %s26_s10 = ssub.s32 %s2565_s21, %s2663_s7  ;;  %s29_s11 = sadd.s32 1, %s2561_s20 }
  0x10   : > { %p2267_p10 = pnand %p2266_p9, %p43_p1  ;;  %p27_p11 = scmp.eq.s32.totalorder %s26_s10, 0 }
  0x11   : > { %p36_p12 = scmp.ne.s32.totalorder %s2561_s20, %s2557_s19  ;;  %p37_p13 = scmp.eq.s32.totalorder %s2565_s21, 0 }
  0x12   : > { %2269 = dma.hbm_to_vmem [thread:$0]  (!%p2267_p10), %s175_s28, 8192, %s177_s6, [#allocation6], %s2568_s8, %s2568_s8, %s2569_s9  }
  0x13   : > { %p2279_p0 = scmp.lt.s32.totalorder %s2565_s21, 4  ;;  %p38_p3 = por %p37_p13, %p36_p12 }
  0x14   : > { %s2675_s12 = scalar_select %p27_p11, %s2561_s20, %s29_s11  }
  0x15   : > { %p2679_p5 = por %p150_p2, %p36_p12  ;;  %s199_s14 = sand.u32 1, %s2561_s20  }
  0x16   : > { %s2168_s15 = sshll.u32 %s2565_s21, 9  ;;  %s1866_s16 = sshll.u32 %s199_s14, 9 }
  0x17   : > { %s209_s26 = scalar_lea.hbm %s3176_s0, %s2168_s15  ;;  %s203_s28 = scalar_lea.vmem [#allocation2], %s1866_s16 }
  0x18   : > { %s210_s27 = sshll.u32 %s209_s26, 4  ;;  %s212_s30 = sshll.u32 %s203_s28, 4  ;;  %s211_s27 = int_to_ptr.hbm [resolvable:$true] %s210_s27  ;;  %s213_s30 = int_to_ptr.vmem [resolvable:$true] %s212_s30 }
  0x19   : > { %p2690_p7 = pnand %p2279_p0, %p38_p3  ;;  %s200_s9 = scalar_lea.sflag [#allocation3], %s199_s14 }
  0x1a   : > { %s2465_s10 = sshra.s32 %s211_s27, 4  ;;  %s2472_s17 = scalar_lea.hbm %s3176_s0, 2048  ;;  %s2466_s10 = int_to_ptr.hbm [resolvable:$true] %s2465_s10 }
  0x1b   : > { %s2467_s11 = scalar_lea.hbm %s2466_s10, 512  ;;  %p2469_p9 = pneg %p2690_p7 }
  0x1c   : > { %p2468_p2 = scmp.ne.s32.totalorder %s2466_s10, %s2467_s11  ;;  %p2473_p12 = scmp.lt.s32.totalorder %s2466_s10, %s3176_s0 }
  0x1d   : > { %p2474_p13 = scmp.lt.s32.totalorder %s2472_s17, %s2467_s11 }
  0x1e   : > { %p2470_p10 = pnand %p2469_p9, %p2468_p2 }
  0x1f   : > { %p2475_p0 = por %p2474_p13, %p2473_p12 }
  0x20   : > { %p2471_p11 = pneg %p2470_p10 }
  0x22   : > { %p2476_p3 = pnand %p2475_p0, %p2471_p11 }
  0x24   : > { %2479 = shalt.err (!%p2476_p3)
}
  0x25   : > { %s2570_s14 = smov 1024   ;;  %224 = sbr.rel (%p2654_p8) target bundleno = 1036 (0x40c), region = 40 }
  0x26   : > { %2273 = dma.hbm_to_vmem [thread:$0]  (!%p2690_p7), %s211_s27, 8192, %s213_s30, %s200_s9, %s2570_s14, %s2570_s14, %s2568_s8  }
  0x27   : > { %s2708_s28 = sand.u32 (!%p2654_p8), 1, %s2557_s19  }
  0x28   : > { %s1871_s15 = sshll.u32 (!%p2654_p8), %s2708_s28, 9  ;;  %s227_s10 = scalar_lea.sflag (!%p2654_p8), [#allocation3], %s2708_s28 }
  0x29   : > { %s2712_s11 = scalar_lea.vmem (!%p2654_p8), [#allocation2], %s1871_s15 }
  0x2a   : > { %2540 = dma.done.wait (%p2641_p4), %s227_s10, 8192  }
  0x2b   : > { %2542 = vsyncadd (%p2641_p4), %s227_s10, 4294959104 }
  0x2c   : > { %2544 = dma.done.wait (%p43_p1), [#allocation6], 8192  }
  0x2d   : > { %2546 = vsyncadd (%p43_p1), [#allocation6], 4294959104  ;;  %v2176_v0 = vld [vmem:[#allocation5 + $0x38] sm:$0xff]  ;;  %v2175_v1 = vld [vmem:[#allocation5 + $0x30] sm:$0xff]  ;;  %vm1218_vm0 = vcmask 64512   ;;  %s1873_s9 = sshll.u32 %s2708_s28, 6 }
  0x2e   : > { %2242 = vmatpush.bf16.msra.mxu1 %v2176_v0  ;;  %877 = vmatpush.bf16.msra.mxu0 %v2176_v0  ;;  %v2192_v2 = vld [vmem:[#allocation5 + $0xb8] sm:$0xff]  ;;  %v2191_v4 = vld [vmem:[#allocation5 + $0xb0] sm:$0xff]  ;;  %v2174_v6 = vld [vmem:[#allocation5 + $0x28] sm:$0xff]  ;;  %s3044_s16 = scalar_lea.vmem [#allocation7], %s1873_s9  ;;  %s2241_s17 = sshll.u32 %s2632_s22, 6 }
  0x2f   : > { %v2200_v3 = vld [vmem:[#allocation5 + $0xf8] sm:$0xff]  ;;  %935 = vmatpush.bf16.msra.mxu2 %v2192_v2  ;;  %v2199_v5 = vld [vmem:[#allocation5 + $0xf0] sm:$0xff]  ;;  %v2190_v7 = vld [vmem:[#allocation5 + $0xa8] sm:$0xff]  ;;  %s1775_s26 = scalar_lea.hbm %s3181_s5, %s2241_s17  ;;  %s1776_s14 = sshll.u32 %s3044_s16, 4  ;;  %s1777_s14 = int_to_ptr.vmem [resolvable:$true] %s1776_s14 }
  0x30   : > { %964 = vmatpush.bf16.msra.mxu3 %v2200_v3  ;;  %v2198_v8 = vld [vmem:[#allocation5 + $0xe8] sm:$0xff]  ;;  %v2173_v9 = vld [vmem:[#allocation5 + $0x20] sm:$0xff]  ;;  %v2172_v12 = vld [vmem:[#allocation5 + $0x18] sm:$0xff]  ;;  %s1778_s15 = sshll.u32 %s1775_s26, 4  ;;  %s1764_s10 = scalar_lea.sflag [#allocation4], %s2708_s28  ;;  %s1779_s15 = int_to_ptr.hbm [resolvable:$true] %s1778_s15 }
  0x31   : > { %v2189_v10 = vld [vmem:[#allocation5 + $0xa0] sm:$0xff]  ;;  %v2188_v13 = vld [vmem:[#allocation5 + $0x98] sm:$0xff]  ;;  %v2171_v15 = vld [vmem:[#allocation5 + $0x10] sm:$0xff]  ;;  %s2509_s24 = sshra.s32 %s1779_s15, 4  ;;  %s2515_s30 = scalar_lea.hbm %s3181_s5, 256  ;;  %s2510_s24 = int_to_ptr.hbm [resolvable:$true] %s2509_s24 }
  0x32   : > { %2243 = vmatpush.bf16.msra.mxu1 %v2175_v1  ;;  %878 = vmatpush.bf16.msra.mxu0 %v2175_v1  ;;  %v2197_v11 = vld [vmem:[#allocation5 + $0xe0] sm:$0xff]  ;;  %v2196_v14 = vld [vmem:[#allocation5 + $0xd8] sm:$0xff]  ;;  %v2187_v16 = vld [vmem:[#allocation5 + $0x90] sm:$0xff]  ;;  %s2511_s29 = scalar_lea.hbm %s2510_s24, 64  ;;  %p2516_p7 = scmp.lt.s32.totalorder %s2510_s24, %s3181_s5 }
  0x33   : > { %936 = vmatpush.bf16.msra.mxu2 %v2191_v4  ;;  %v2195_v17 = vld [vmem:[#allocation5 + $0xd0] sm:$0xff]  ;;  %v2170_v18 = vld [vmem:[#allocation5 + $0x8] sm:$0xff]  ;;  %v2169_v21 = vld [vmem:[#allocation5] sm:$0xff]  ;;  %p2512_p1 = scmp.ne.s32.totalorder %s2510_s24, %s2511_s29  ;;  %p2517_p2 = scmp.lt.s32.totalorder %s2515_s30, %s2511_s29 }
  0x34   : > { %965 = vmatpush.bf16.msra.mxu3 %v2199_v5  ;;  %v2186_v19 = vld [vmem:[#allocation5 + $0x88] sm:$0xff]  ;;  %v297_v22 = vld [vmem:[%s2712_s11 + $0x100] sm:$0xff]  ;;  %v2184_v26 = vld [vmem:[#allocation5 + $0x78] sm:$0xff] }
  0x35   : > { %v2194_v20 = vld [vmem:[#allocation5 + $0xc8] sm:$0xff]  ;;  %v305_v23 = vld [vmem:[%s2712_s11 + $0x140] sm:$0xff]  ;;  %v2208_v27 = vld [vmem:[#allocation5 + $0x138] sm:$0xff]  ;;  %p2513_p4 = pnand %p2512_p1, %p2679_p5  ;;  %p2518_p9 = por %p2517_p2, %p2516_p7 }
  0x36   : > { %2244 = vmatpush.bf16.msra.mxu1 %v2174_v6  ;;  %879 = vmatpush.bf16.msra.mxu0 %v2174_v6  ;;  %v265_v24 = vld [vmem:[%s2712_s11] sm:$0xff]  ;;  %v267_v30 = vld [vmem:[%s2712_s11 + $0x10] sm:$0xff]  ;;  %v345_v31 = vpack.c.bf16 %v305_v23, %v297_v22  ;;  %v268_v34 = vld [vmem:[%s2712_s11 + $0x18] sm:$0xff] }
  0x37   : > { %937 = vmatpush.bf16.msra.mxu2 %v2190_v7  ;;  %v273_v25 = vld [vmem:[%s2712_s11 + $0x40] sm:$0xff]  ;;  %v275_v33 = vld [vmem:[%s2712_s11 + $0x50] sm:$0xff]  ;;  %v276_v35 = vld [vmem:[%s2712_s11 + $0x58] sm:$0xff]  ;;  %p2514_p8 = pneg %p2513_p4 }
  0x38   : > { %966 = vmatpush.bf16.msra.mxu3 %v2198_v8  ;;  %v2185_v28 = vld [vmem:[#allocation5 + $0x80] sm:$0xff]  ;;  %v329_v32 = vpack.c.bf16 %v273_v25, %v265_v24  ;;  %v2224_v36 = vld [vmem:[#allocation5 + $0x1b8] sm:$0xff]  ;;  %v2183_v38 = vld [vmem:[#allocation5 + $0x70] sm:$0xff]  ;;  %v331_v40 = vpack.c.bf16 %v275_v33, %v267_v30  ;;  %v332_v41 = vpack.c.bf16 %v276_v35, %v268_v34 }
  0x39   : > { %v2193_v29 = vld [vmem:[#allocation5 + $0xc0] sm:$0xff]  ;;  %v2232_v37 = vld [vmem:[#allocation5 + $0x1f8] sm:$0xff]  ;;  %v2207_v39 = vld [vmem:[#allocation5 + $0x130] sm:$0xff]  ;;  %p2519_p10 = pnand %p2518_p9, %p2514_p8 }
  0x3a   : > { %2245 = vmatpush.bf16.msra.mxu1 %v2173_v9  ;;  %880 = vmatpush.bf16.msra.mxu0 %v2173_v9  ;;  %v2223_v42 = vld [vmem:[#allocation5 + $0x1b0] sm:$0xff]  ;;  %v2182_v43 = vld [vmem:[#allocation5 + $0x68] sm:$0xff]  ;;  %v2181_v48 = vld [vmem:[#allocation5 + $0x60] sm:$0xff] }
  0x3b   : > { %938 = vmatpush.bf16.msra.mxu2 %v2189_v10  ;;  %v2206_v44 = vld [vmem:[#allocation5 + $0x128] sm:$0xff]  ;;  %v2231_v45 = vld [vmem:[#allocation5 + $0x1f0] sm:$0xff]  ;;  %v2205_v49 = vld [vmem:[#allocation5 + $0x120] sm:$0xff] }
  0x3c   : > { %967 = vmatpush.bf16.msra.mxu3 %v2197_v11  ;;  %v2222_v46 = vld [vmem:[#allocation5 + $0x1a8] sm:$0xff]  ;;  %v313_v50 = vld [vmem:[%s2712_s11 + $0x180] sm:$0xff]  ;;  %v2180_v54 = vld [vmem:[#allocation5 + $0x58] sm:$0xff] }
  0x3d   : > { %v2230_v47 = vld [vmem:[#allocation5 + $0x1e8] sm:$0xff]  ;;  %v321_v51 = vld [vmem:[%s2712_s11 + $0x1c0] sm:$0xff]  ;;  %v2204_v55 = vld [vmem:[#allocation5 + $0x118] sm:$0xff] }
  0x3e   : > { %2246 = vmatpush.bf16.msra.mxu1 %v2172_v12  ;;  %881 = vmatpush.bf16.msra.mxu0 %v2172_v12  ;;  %v281_v52 = vld [vmem:[%s2712_s11 + $0x80] sm:$0xff]  ;;  %v283_v56 = vld [vmem:[%s2712_s11 + $0x90] sm:$0xff]  ;;  %v353_v57 = vpack.c.bf16 %v321_v51, %v313_v50  ;;  %v284_v60 = vld [vmem:[%s2712_s11 + $0x98] sm:$0xff] }
  0x3f   : > { %939 = vmatpush.bf16.msra.mxu2 %v2188_v13  ;;  %v289_v53 = vld [vmem:[%s2712_s11 + $0xc0] sm:$0xff]  ;;  %v291_v59 = vld [vmem:[%s2712_s11 + $0xd0] sm:$0xff]  ;;  %v292_v61 = vld [vmem:[%s2712_s11 + $0xd8] sm:$0xff] }
  0x40   : > { %968 = vmatpush.bf16.msra.mxu3 %v2196_v14  ;;  %v337_v58 = vpack.c.bf16 %v289_v53, %v281_v52  ;;  %v2179_v62 = vld [vmem:[#allocation5 + $0x50] sm:$0xff]  ;;  %v339_v0 = vpack.c.bf16 %v291_v59, %v283_v56  ;;  %v340_v1 = vpack.c.bf16 %v292_v61, %v284_v60  ;;  %v2221_v2 = vld [vmem:[#allocation5 + $0x1a0] sm:$0xff]  ;;  %v2178_v3 = vld [vmem:[#allocation5 + $0x48] sm:$0xff] }
  0x41   : > { %v2203_v63 = vld [vmem:[#allocation5 + $0x110] sm:$0xff]  ;;  %v2202_v4 = vld [vmem:[#allocation5 + $0x108] sm:$0xff]  ;;  %v2229_v5 = vld [vmem:[#allocation5 + $0x1e0] sm:$0xff] }
  0x42   : > { %2247 = vmatpush.bf16.msra.mxu1 %v2171_v15  ;;  %882 = vmatpush.bf16.msra.mxu0 %v2171_v15  ;;  %v2220_v6 = vld [vmem:[#allocation5 + $0x198] sm:$0xff]  ;;  %v2177_v8 = vld [vmem:[#allocation5 + $0x40] sm:$0xff]  ;;  %v266_v11 = vld [vmem:[%s2712_s11 + $0x8] sm:$0xff] }
  0x43   : > { %940 = vmatpush.bf16.msra.mxu2 %v2187_v16  ;;  %v2228_v7 = vld [vmem:[#allocation5 + $0x1d8] sm:$0xff]  ;;  %v2201_v9 = vld [vmem:[#allocation5 + $0x100] sm:$0xff]  ;;  %v274_v12 = vld [vmem:[%s2712_s11 + $0x48] sm:$0xff] }
  0x44   : > { %969 = vmatpush.bf16.msra.mxu3 %v2195_v17  ;;  %v2216_v10 = vld [vmem:[#allocation5 + $0x178] sm:$0xff]  ;;  %v269_v13 = vld [vmem:[%s2712_s11 + $0x20] sm:$0xff]  ;;  %v2215_v15 = vld [vmem:[#allocation5 + $0x170] sm:$0xff]  ;;  %v330_v16 = vpack.c.bf16 %v274_v12, %v266_v11 }
  0x45   : > { %v277_v14 = vld [vmem:[%s2712_s11 + $0x60] sm:$0xff]  ;;  %v2214_v22 = vld [vmem:[#allocation5 + $0x168] sm:$0xff]  ;;  %v2219_v25 = vld [vmem:[#allocation5 + $0x190] sm:$0xff] }
  0x46   : > { %2248 = vmatpush.bf16.msra.mxu1 %v2170_v18  ;;  %883 = vmatpush.bf16.msra.mxu0 %v2170_v18  ;;  %v333_v17 = vpack.c.bf16 %v277_v14, %v269_v13  ;;  %v299_v18 = vld [vmem:[%s2712_s11 + $0x110] sm:$0xff]  ;;  %v2212_v30 = vld [vmem:[#allocation5 + $0x158] sm:$0xff]  ;;  %v285_v33 = vld [vmem:[%s2712_s11 + $0xa0] sm:$0xff] }
  0x47   : > { %941 = vmatpush.bf16.msra.mxu2 %v2186_v19  ;;  %v307_v19 = vld [vmem:[%s2712_s11 + $0x150] sm:$0xff]  ;;  %v293_v34 = vld [vmem:[%s2712_s11 + $0xe0] sm:$0xff]  ;;  %v272_v56 = vld [vmem:[%s2712_s11 + $0x38] sm:$0xff] }
  0x48   : > { %970 = vmatpush.bf16.msra.mxu3 %v2194_v20  ;;  %v300_v20 = vld [vmem:[%s2712_s11 + $0x118] sm:$0xff]  ;;  %v347_v23 = vpack.c.bf16 %v307_v19, %v299_v18  ;;  %v2211_v35 = vld [vmem:[#allocation5 + $0x150] sm:$0xff]  ;;  %v301_v50 = vld [vmem:[%s2712_s11 + $0x120] sm:$0xff] }
  0x49   : > { %v309_v51 = vld [vmem:[%s2712_s11 + $0x160] sm:$0xff]  ;;  %v314_v60 = vld [vmem:[%s2712_s11 + $0x188] sm:$0xff]  ;;  %v303_v11 = vld [vmem:[%s2712_s11 + $0x130] sm:$0xff] }
  0x4a   : > { %2249 = vmatpush.bf16.msra.mxu1 %v2169_v21  ;;  %884 = vmatpush.bf16.msra.mxu0 %v2169_v21  ;;  %v308_v21 = vld [vmem:[%s2712_s11 + $0x158] sm:$0xff]  ;;  %v349_v53 = vpack.c.bf16 %v309_v51, %v301_v50  ;;  %v322_v61 = vld [vmem:[%s2712_s11 + $0x1c8] sm:$0xff]  ;;  %v311_v12 = vld [vmem:[%s2712_s11 + $0x170] sm:$0xff] }
  0x4b   : > { %942 = vmatpush.bf16.msra.mxu2 %v2185_v28  ;;  %v348_v24 = vpack.c.bf16 %v308_v21, %v300_v20  ;;  %v2218_v28 = vld [vmem:[#allocation5 + $0x188] sm:$0xff]  ;;  %v304_v13 = vld [vmem:[%s2712_s11 + $0x138] sm:$0xff]  ;;  %v319_v20 = vld [vmem:[%s2712_s11 + $0x1b0] sm:$0xff] }
  0x4c   : > { %971 = vmatpush.bf16.msra.mxu3 %v2193_v29  ;;  %v2226_v29 = vld [vmem:[#allocation5 + $0x1c8] sm:$0xff]  ;;  %v312_v14 = vld [vmem:[%s2712_s11 + $0x178] sm:$0xff]  ;;  %v327_v21 = vld [vmem:[%s2712_s11 + $0x1f0] sm:$0xff] }
  0x4d   : > { %895 = vmatmul.bf16.vlgmr.msra.gmra.mxu1 %v345_v31  ;;  %885 = vmatmul.bf16.vlgmr.msra.gmra.mxu0 %v329_v32  ;;  %v282_v31 = vld [vmem:[%s2712_s11 + $0x88] sm:$0xff] }
  0x4e   : > { %906 = vmatpush.bf16.msrb.mxu1 %v2184_v26  ;;  %993 = vmatpush.bf16.msrb.mxu0 %v2208_v27  ;;  %v2227_v26 = vld [vmem:[#allocation5 + $0x1d0] sm:$0xff]  ;;  %v2213_v27 = vld [vmem:[#allocation5 + $0x160] sm:$0xff]  ;;  %v290_v32 = vld [vmem:[%s2712_s11 + $0xc8] sm:$0xff] }
  0x4f   : > { %1051 = vmatpush.bf16.msrb.mxu2 %v2224_v36  ;;  %972 = vmatmul.bf16.vlgmr.msra.gmra.mxu3 %v332_v41  ;;  %v338_v36 = vpack.c.bf16 %v290_v32, %v282_v31  ;;  %v324_v41 = vld [vmem:[%s2712_s11 + $0x1d8] sm:$0xff]  ;;  %v294_v18 = vld [vmem:[%s2712_s11 + $0xe8] sm:$0xff] }
  0x50   : > { %1080 = vmatpush.bf16.msrb.mxu3 %v2232_v37  ;;  %943 = vmatmul.bf16.vlgmr.msra.gmra.mxu2 %v331_v40  ;;  %v341_v37 = vpack.c.bf16 %v293_v34, %v285_v33  ;;  %v316_v40 = vld [vmem:[%s2712_s11 + $0x198] sm:$0xff]  ;;  %v318_v33 = vld [vmem:[%s2712_s11 + $0x1a8] sm:$0xff] }
  0x51   : > { %v326_v34 = vld [vmem:[%s2712_s11 + $0x1e8] sm:$0xff] }
  0x52   : > { %907 = vmatpush.bf16.msrb.mxu1 %v2183_v38  ;;  %994 = vmatpush.bf16.msrb.mxu0 %v2207_v39  ;;  %v315_v38 = vld [vmem:[%s2712_s11 + $0x190] sm:$0xff] }
  0x53   : > { %1052 = vmatpush.bf16.msrb.mxu2 %v2223_v42  ;;  %v323_v39 = vld [vmem:[%s2712_s11 + $0x1d0] sm:$0xff] }
  0x54   : > { %1081 = vmatpush.bf16.msrb.mxu3 %v2231_v45  ;;  %v355_v42 = vpack.c.bf16 %v323_v39, %v315_v38  ;;  %v2210_v45 = vld [vmem:[#allocation5 + $0x148] sm:$0xff]  ;;  %v2240_v39 = vld [vmem:[%s3179_s3 + $0x38] sm:$0xff] }
  0x56   : > { %908 = vmatpush.bf16.msrb.mxu1 %v2182_v43  ;;  %995 = vmatpush.bf16.msrb.mxu0 %v2206_v44  ;;  %v2217_v43 = vld [vmem:[#allocation5 + $0x180] sm:$0xff]  ;;  %v356_v44 = vpack.c.bf16 %v324_v41, %v316_v40 }
  0x57   : > { %1053 = vmatpush.bf16.msrb.mxu2 %v2222_v46  ;;  %v2225_v46 = vld [vmem:[#allocation5 + $0x1c0] sm:$0xff] }
  0x58   : > { %1082 = vmatpush.bf16.msrb.mxu3 %v2230_v47  ;;  %v2209_v47 = vld [vmem:[#allocation5 + $0x140] sm:$0xff] }
  0x5a   : > { %909 = vmatpush.bf16.msrb.mxu1 %v2181_v48  ;;  %996 = vmatpush.bf16.msrb.mxu0 %v2205_v49  ;;  %v298_v48 = vld [vmem:[%s2712_s11 + $0x108] sm:$0xff] }
  0x5b   : > { %1054 = vmatpush.bf16.msrb.mxu2 %v2221_v2  ;;  %v306_v49 = vld [vmem:[%s2712_s11 + $0x148] sm:$0xff]  ;;  %v287_v2 = vld [vmem:[%s2712_s11 + $0xb0] sm:$0xff] }
  0x5c   : > { %1083 = vmatpush.bf16.msrb.mxu3 %v2229_v5  ;;  %v346_v52 = vpack.c.bf16 %v306_v49, %v298_v48  ;;  %v296_v5 = vld [vmem:[%s2712_s11 + $0xf8] sm:$0xff] }
  0x5d   : > { %900 = vmatmul.bf16.gmra.mxu1 %v353_v57  ;;  %890 = vmatmul.bf16.gmra.mxu0 %v337_v58  ;;  %v280_v57 = vld [vmem:[%s2712_s11 + $0x78] sm:$0xff] }
  0x5e   : > { %910 = vmatpush.bf16.msrb.mxu1 %v2180_v54  ;;  %997 = vmatpush.bf16.msrb.mxu0 %v2204_v55  ;;  %v271_v54 = vld [vmem:[%s2712_s11 + $0x30] sm:$0xff]  ;;  %v336_v59 = vpack.c.bf16 %v280_v57, %v272_v56  ;;  %v2237_v56 = vld [vmem:[%s3179_s3 + $0x20] sm:$0xff] }
  0x5f   : > { %977 = vmatmul.bf16.gmra.mxu3 %v340_v1  ;;  %1055 = vmatpush.bf16.msrb.mxu2 %v2220_v6  ;;  %v279_v55 = vld [vmem:[%s2712_s11 + $0x70] sm:$0xff] }
  0x60   : > { %948 = vmatmul.bf16.gmra.mxu2 %v339_v0  ;;  %1084 = vmatpush.bf16.msrb.mxu3 %v2228_v7  ;;  %v335_v58 = vpack.c.bf16 %v279_v55, %v271_v54  ;;  %v354_v0 = vpack.c.bf16 %v322_v61, %v314_v60 }
  0x62   : > { %911 = vmatpush.bf16.msrb.mxu1 %v2179_v62  ;;  %998 = vmatpush.bf16.msrb.mxu0 %v2203_v63  ;;  %v317_v62 = vld [vmem:[%s2712_s11 + $0x1a0] sm:$0xff] }
  0x63   : > { %1056 = vmatpush.bf16.msrb.mxu2 %v2219_v25  ;;  %v325_v63 = vld [vmem:[%s2712_s11 + $0x1e0] sm:$0xff] }
  0x64   : > { %1085 = vmatpush.bf16.msrb.mxu3 %v2227_v26  ;;  %v357_v1 = vpack.c.bf16 %v325_v63, %v317_v62  ;;  %v302_v26 = vld [vmem:[%s2712_s11 + $0x128] sm:$0xff] }
  0x66   : > { %912 = vmatpush.bf16.msrb.mxu1 %v2178_v3  ;;  %999 = vmatpush.bf16.msrb.mxu0 %v2202_v4  ;;  %v295_v3 = vld [vmem:[%s2712_s11 + $0xf0] sm:$0xff]  ;;  %v288_v4 = vld [vmem:[%s2712_s11 + $0xb8] sm:$0xff] }
  0x67   : > { %1057 = vmatpush.bf16.msrb.mxu2 %v2218_v28  ;;  %v343_v6 = vpack.c.bf16 %v295_v3, %v287_v2  ;;  %v344_v7 = vpack.c.bf16 %v296_v5, %v288_v4  ;;  %v2235_v5 = vld [vmem:[%s3179_s3 + $0x10] sm:$0xff] }
  0x68   : > { %1086 = vmatpush.bf16.msrb.mxu3 %v2226_v29 }
  0x6a   : > { %913 = vmatpush.bf16.msrb.mxu1 %v2177_v8  ;;  %1000 = vmatpush.bf16.msrb.mxu0 %v2201_v9  ;;  %v2771_v8 = vld [vmem:[%s2712_s11 + $0x28] sm:$0xff] }
  0x6b   : > { %1058 = vmatpush.bf16.msrb.mxu2 %v2217_v43  ;;  %v2774_v9 = vld [vmem:[%s2712_s11 + $0x68] sm:$0xff] }
  0x6c   : > { %1087 = vmatpush.bf16.msrb.mxu3 %v2225_v46 }
  0x6d   : > { %914 = vmatmul.bf16.vlgmr.msrb.gmra.mxu1 %v330_v16  ;;  %1001 = vmatmul.bf16.vlgmr.msrb.gmra.mxu0 %v333_v17  ;;  %v352_v16 = vpack.c.bf16 %v312_v14, %v304_v13  ;;  %v286_v17 = vld [vmem:[%s2712_s11 + $0xa8] sm:$0xff] }
  0x6e   : > { %1022 = vmatpush.bf16.msra.mxu1 %v2216_v10  ;;  %v334_v10 = vpack.c.bf16 %v2774_v9, %v2771_v8  ;;  %v342_v19 = vpack.c.bf16 %v294_v18, %v286_v17  ;;  %1189 = vmatpush.bf16.msra.mxu0 %v2240_v39 }
  0x6f   : > { %982 = vmatmul.bf16.gmra.mxu3 %v348_v24  ;;  %v359_v24 = vpack.c.bf16 %v327_v21, %v319_v20  ;;  %2250 = vmatpush.bf16.msra.mxu2 %v2240_v39  ;;  %v2233_v21 = vld [vmem:[%s3179_s3] sm:$0xff] }
  0x70   : > { %953 = vmatmul.bf16.gmra.mxu2 %v347_v23  ;;  %v328_v23 = vld [vmem:[%s2712_s11 + $0x1f8] sm:$0xff] }
  0x72   : > { %1023 = vmatpush.bf16.msra.mxu1 %v2215_v15  ;;  %v351_v15 = vpack.c.bf16 %v311_v12, %v303_v11 }
  0x76   : > { %1024 = vmatpush.bf16.msra.mxu1 %v2214_v22  ;;  %v320_v22 = vld [vmem:[%s2712_s11 + $0x1b8] sm:$0xff] }
  0x77   : > { %v360_v25 = vpack.c.bf16 %v328_v23, %v320_v22 }
  0x7a   : > { %1025 = vmatpush.bf16.msra.mxu1 %v2213_v27  ;;  %v310_v27 = vld [vmem:[%s2712_s11 + $0x168] sm:$0xff] }
  0x7b   : > { %v350_v28 = vpack.c.bf16 %v310_v27, %v302_v26 }
  0x7d   : > { %919 = vmatmul.bf16.gmra.mxu1 %v338_v36  ;;  %1006 = vmatmul.bf16.gmra.mxu0 %v341_v37 }
  0x7e   : > { %1026 = vmatpush.bf16.msra.mxu1 %v2212_v30 }
  0x7f   : > { %987 = vmatmul.bf16.gmra.mxu3 %v356_v44  ;;  %v2808_v44 = vld [vmem:[%s3178_s2] ss:$0 sm:$0xff] }
  0x80   : > { %958 = vmatmul.bf16.gmra.mxu2 %v355_v42 }
  0x82   : > { %1027 = vmatpush.bf16.msra.mxu1 %v2211_v35  ;;  %v358_v35 = vpack.c.bf16 %v326_v34, %v318_v33 }
  0x86   : > { %1028 = vmatpush.bf16.msra.mxu1 %v2210_v45  ;;  %v2239_v45 = vld [vmem:[%s3179_s3 + $0x30] sm:$0xff] }
  0x87   : > { %1190 = vmatpush.bf16.msra.mxu0 %v2239_v45  ;;  %2251 = vmatpush.bf16.msra.mxu2 %v2239_v45 }
  0x8a   : > { %1029 = vmatpush.bf16.msra.mxu1 %v2209_v47 }
  0x8d   : > { %924 = vmatmul.bf16.gmra.mxu1 %v346_v52  ;;  %1011 = vmatmul.bf16.gmra.mxu0 %v349_v53  ;;  %v2238_v52 = vld [vmem:[%s3179_s3 + $0x28] sm:$0xff] }
  0x8e   : > { %1191 = vmatpush.bf16.msra.mxu0 %v2238_v52  ;;  %2252 = vmatpush.bf16.msra.mxu2 %v2238_v52 }
  0x8f   : > { %1088 = vmatmul.bf16.vlgmr.msrb.gmra.mxu3 %v336_v59 }
  0x90   : > { %1059 = vmatmul.bf16.vlgmr.msrb.gmra.mxu2 %v335_v58 }
  0x92   : > { %1192 = vmatpush.bf16.msra.mxu0 %v2237_v56  ;;  %2253 = vmatpush.bf16.msra.mxu2 %v2237_v56 }
  0x9d   : > { %929 = vmatmul.bf16.gmra.mxu1 %v354_v0  ;;  %1016 = vmatmul.bf16.gmra.mxu0 %v357_v1  ;;  %v2236_v0 = vld [vmem:[%s3179_s3 + $0x18] sm:$0xff] }
  0x9e   : > { %1193 = vmatpush.bf16.msra.mxu0 %v2236_v0  ;;  %2254 = vmatpush.bf16.msra.mxu2 %v2236_v0 }
  0x9f   : > { %1093 = vmatmul.bf16.gmra.mxu3 %v344_v7 }
  0xa0   : > { %1064 = vmatmul.bf16.gmra.mxu2 %v343_v6 }
  0xa2   : > { %1194 = vmatpush.bf16.msra.mxu0 %v2235_v5  ;;  %2255 = vmatpush.bf16.msra.mxu2 %v2235_v5 }
  0xad   : > { %1030 = vmatmul.bf16.vlgmr.msra.gmra.mxu1 %v334_v10 }
  0xaf   : > { %1098 = vmatmul.bf16.gmra.mxu3 %v352_v16  ;;  %v2234_v16 = vld [vmem:[%s3179_s3 + $0x8] sm:$0xff] }
  0xb0   : > { %1069 = vmatmul.bf16.gmra.mxu2 %v351_v15  ;;  %1195 = vmatpush.bf16.msra.mxu0 %v2234_v16 }
  0xb1   : > { %2256 = vmatpush.bf16.msra.mxu2 %v2234_v16 }
  0xb4   : > { %1196 = vmatpush.bf16.msra.mxu0 %v2233_v21 }
  0xb5   : > { %2257 = vmatpush.bf16.msra.mxu2 %v2233_v21 }
  0xbd   : > { %1035 = vmatmul.bf16.gmra.mxu1 %v342_v19 }
  0xbf   : > { %1103 = vmatmul.bf16.gmra.mxu3 %v360_v25 }
  0xc0   : > { %1074 = vmatmul.bf16.gmra.mxu2 %v359_v24 }
  0xca   : > { %v896_v29 = vpop.f32.mrf.mxu1  ;;  %v886_v40 = vpop.f32.mrf.mxu0 }
  0xcb   : > { %v887_v46 = vadd.f32 %v2808_v44, %v886_v40  ;;  %v897_v6 = vadd.f32 %v2808_v44, %v896_v29 }
  0xcd   : > { %1040 = vmatmul.bf16.gmra.mxu1 %v350_v28 }
  0xd2   : > { %v2790_v30 = vpop.f32.mrf.mxu1  ;;  %v973_v32 = vpop.f32.mrf.mxu3 }
  0xd3   : > { %v944_v31 = vpop.f32.mrf.mxu2  ;;  %v888_v49 = vpop.f32.mrf.mxu0 }
  0xd4   : > { %v889_v29 = vadd.f32 %v2808_v44, %v888_v49 }
  0xda   : > { %v2794_v36 = vpop.f32.mrf.mxu1  ;;  %v2798_v38 = vpop.f32.mrf.mxu3 }
  0xdb   : > { %v2796_v37 = vpop.f32.mrf.mxu2  ;;  %v891_v57 = vpop.f32.mrf.mxu0  ;;  %v902_v22 = vadd.f32 %v2808_v44, %v2794_v36 }
  0xdc   : > { %v892_v59 = vadd.f32 %v2808_v44, %v891_v57 }
  0xdd   : > { %1045 = vmatmul.bf16.gmra.mxu1 %v358_v35 }
  0xe2   : > { %v2803_v41 = vpop.f32.mrf.mxu1  ;;  %v978_v43 = vpop.f32.mrf.mxu3 }
  0xe3   : > { %v949_v42 = vpop.f32.mrf.mxu2  ;;  %v893_v14 = vpop.f32.mrf.mxu0 }
  0xea   : > { %v915_v47 = vpop.f32.mrf.mxu1  ;;  %v2819_v53 = vpop.f32.mrf.mxu3 }
  0xeb   : > { %v916_v48 = vadd.f32 %v915_v47, %v887_v46  ;;  %v2814_v50 = vpop.f32.mrf.mxu2  ;;  %v1002_v20 = vpop.f32.mrf.mxu0  ;;  %v894_v47 = vadd.f32 %v2808_v44, %v893_v14 }
  0xed   : > { %v945_v51 = vadd.f32 %v944_v31, %v916_v48 }
  0xef   : > { %v974_v54 = vadd.f32 %v973_v32, %v945_v51 }
  0xf1   : > { %v1003_v40 = vadd.f32 %v1002_v20, %v974_v54 }
  0xf2   : > { %v917_v55 = vpop.f32.mrf.mxu1  ;;  %v983_v60 = vpop.f32.mrf.mxu3 }
  0xf3   : > { %v954_v58 = vpop.f32.mrf.mxu2  ;;  %v1004_v31 = vpop.f32.mrf.mxu0  ;;  %v918_v33 = vadd.f32 %v917_v55, %v889_v29 }
  0xf5   : > { %v947_v35 = vadd.f32 %v2796_v37, %v918_v33 }
  0xfa   : > { %v920_v61 = vpop.f32.mrf.mxu1  ;;  %v2832_v4 = vpop.f32.mrf.mxu3 }
  0xfb   : > { %v921_v62 = vadd.f32 %v920_v61, %v892_v59  ;;  %v2830_v2 = vpop.f32.mrf.mxu2 }
  0xfd   : > { %v950_v63 = vadd.f32 %v949_v42, %v921_v62  ;;  %v1007_v42 = vpop.f32.mrf.mxu0 }
  0xff   : > { %v2828_v1 = vadd.f32 %v978_v43, %v950_v63  ;;  %v976_v43 = vadd.f32 %v2798_v38, %v947_v35 }
 0x101   : > { %v1005_v48 = vadd.f32 %v1004_v31, %v976_v43  ;;  %v1008_v63 = vadd.f32 %v1007_v42, %v2828_v1 }
 0x102   : > { %v922_v3 = vpop.f32.mrf.mxu1  ;;  %v988_v12 = vpop.f32.mrf.mxu3 }
 0x103   : > { %v959_v10 = vpop.f32.mrf.mxu2  ;;  %v923_v57 = vadd.f32 %v922_v3, %v894_v47 }
 0x105   : > { %v1009_v59 = vpop.f32.mrf.mxu0 }
 0x10a   : > { %v925_v7 = vpop.f32.mrf.mxu1  ;;  %v2845_v19 = vpop.f32.mrf.mxu3 }
 0x10b   : > { %v926_v11 = vadd.f32 %v925_v7, %v897_v6  ;;  %v2843_v18 = vpop.f32.mrf.mxu2 }
 0x10d   : > { %v955_v13 = vadd.f32 %v954_v58, %v926_v11 }
 0x10f   : > { %v2838_v15 = vadd.f32 %v983_v60, %v955_v13  ;;  %v952_v60 = vadd.f32 %v2814_v50, %v923_v57  ;;  %v899_v13 = vadd.f32 %v2808_v44, %v2790_v30 }
 0x111   : > { %v981_v6 = vadd.f32 %v2819_v53, %v952_v60 }
 0x112   : > { %v927_v17 = vpop.f32.mrf.mxu1  ;;  %v1089_v28 = vpop.f32.mrf.mxu3 }
 0x113   : > { %v1060_v26 = vpop.f32.mrf.mxu2  ;;  %v1010_v3 = vadd.f32 %v1009_v59, %v981_v6  ;;  %v928_v16 = vadd.f32 %v927_v17, %v899_v13 }
 0x11a   : > { %v930_v23 = vpop.f32.mrf.mxu1  ;;  %v1091_v36 = vpop.f32.mrf.mxu3 }
 0x11b   : > { %v931_v24 = vadd.f32 %v930_v23, %v902_v22  ;;  %v1062_v34 = vpop.f32.mrf.mxu2  ;;  %v957_v23 = vadd.f32 %v2830_v2, %v928_v16 }
 0x11d   : > { %v960_v25 = vadd.f32 %v959_v10, %v931_v24  ;;  %v1012_v10 = vpop.f32.mrf.mxu0  ;;  %v986_v31 = vadd.f32 %v2832_v4, %v957_v23 }
 0x11f   : > { %v2852_v27 = vadd.f32 %v988_v12, %v960_v25 }
 0x122   : > { %v2855_v32 = vpop.f32.mrf.mxu1  ;;  %v1094_v52 = vpop.f32.mrf.mxu3 }
 0x123   : > { %v1065_v46 = vpop.f32.mrf.mxu2 }
 0x125   : > { %v1014_v25 = vpop.f32.mrf.mxu0 }
 0x126   : > { %v1015_v17 = vadd.f32 %v1014_v25, %v986_v31 }
 0x12a   : > { %v1031_v39 = vpop.f32.mrf.mxu1  ;;  %v1096_v5 = vpop.f32.mrf.mxu3 }
 0x12b   : > { %v1032_v45 = vadd.f32 %v1031_v39, %v1003_v40  ;;  %v1067_v38 = vpop.f32.mrf.mxu2 }
 0x12d   : > { %v1061_v51 = vadd.f32 %v1060_v26, %v1032_v45  ;;  %v1017_v40 = vpop.f32.mrf.mxu0 }
 0x12f   : > { %v1090_v55 = vadd.f32 %v1089_v28, %v1061_v51  ;;  %v1013_v28 = vadd.f32 %v1012_v10, %v2838_v15 }
 0x131   : > { %v1109_v54 = vmax.f32 %v1090_v55, 0.0 }
 0x132   : > { %v1033_v49 = vpop.f32.mrf.mxu1  ;;  %v1099_v22 = vpop.f32.mrf.mxu3 }
 0x133   : > { %v1034_v56 = vadd.f32 %v1033_v49, %v1005_v48  ;;  %v1070_v14 = vpop.f32.mrf.mxu2 }
 0x135   : > { %v1063_v58 = vadd.f32 %v1062_v34, %v1034_v56 }
 0x137   : > { %v1092_v37 = vadd.f32 %v1091_v36, %v1063_v58  ;;  %v904_v36 = vadd.f32 %v2808_v44, %v2803_v41  ;;  %v1019_v44 = vpop.f32.mrf.mxu0 }
 0x139   : > { %v1110_v61 = vmax.f32 %v1092_v37, 0.0  ;;  %v933_v42 = vadd.f32 %v2855_v32, %v904_v36 }
 0x13a   : > { %v1036_v62 = vpop.f32.mrf.mxu1  ;;  %v1101_v34 = vpop.f32.mrf.mxu3 }
 0x13b   : > { %v1117_v0 = vpack.c.bf16 %v1110_v61, %v1109_v54  ;;  %v1037_v7 = vadd.f32 %v1036_v62, %v1008_v63  ;;  %v1072_v30 = vpop.f32.mrf.mxu2  ;;  %v962_v4 = vadd.f32 %v2843_v18, %v933_v42 }
 0x13d   : > { %1197 = vmatmul.bf16.vlgmr.msra.gmra.mxu0 %v1117_v0  ;;  %v1066_v11 = vadd.f32 %v1065_v46, %v1037_v7  ;;  %v991_v57 = vadd.f32 %v2845_v19, %v962_v4  ;;  %v2392_v19 = vld [vmem:[%s3180_s4] ss:$0 sm:$0xff] }
 0x13f   : > { %v1095_v20 = vadd.f32 %v1094_v52, %v1066_v11  ;;  %v1018_v52 = vadd.f32 %v1017_v40, %v2852_v27  ;;  %v1020_v55 = vadd.f32 %v1019_v44, %v991_v57 }
 0x141   : > { %v1111_v24 = vmax.f32 %v1095_v20, 0.0 }
 0x142   : > { %v1038_v12 = vpop.f32.mrf.mxu1  ;;  %v1104_v49 = vpop.f32.mrf.mxu3 }
 0x143   : > { %v1039_v50 = vadd.f32 %v1038_v12, %v1010_v3  ;;  %v1075_v46 = vpop.f32.mrf.mxu2 }
 0x145   : > { %v1068_v21 = vadd.f32 %v1067_v38, %v1039_v50 }
 0x147   : > { %v1097_v1 = vadd.f32 %v1096_v5, %v1068_v21 }
 0x149   : > { %v1112_v53 = vmax.f32 %v1097_v1, 0.0 }
 0x14a   : > { %v1041_v26 = vpop.f32.mrf.mxu1  ;;  %v1106_v60 = vpop.f32.mrf.mxu3 }
 0x14b   : > { %v1118_v29 = vpack.c.bf16 %v1112_v53, %v1111_v24  ;;  %v1042_v33 = vadd.f32 %v1041_v26, %v1013_v28  ;;  %v1077_v59 = vpop.f32.mrf.mxu2 }
 0x14d   : > { %1202 = vmatmul.bf16.gmra.mxu0 %v1118_v29  ;;  %v1071_v35 = vadd.f32 %v1070_v14, %v1042_v33 }
 0x14f   : > { %v1100_v43 = vadd.f32 %v1099_v22, %v1071_v35 }
 0x151   : > { %v1113_v47 = vmax.f32 %v1100_v43, 0.0 }
 0x152   : > { %v1043_v39 = vpop.f32.mrf.mxu1 }
 0x153   : > { %v1044_v2 = vadd.f32 %v1043_v39, %v1015_v17 }
 0x155   : > { %v1073_v45 = vadd.f32 %v1072_v30, %v1044_v2 }
 0x157   : > { %v1102_v15 = vadd.f32 %v1101_v34, %v1073_v45 }
 0x159   : > { %v1114_v48 = vmax.f32 %v1102_v15, 0.0 }
 0x15a   : > { %v1046_v51 = vpop.f32.mrf.mxu1 }
 0x15b   : > { %v1119_v56 = vpack.c.bf16 %v1114_v48, %v1113_v47  ;;  %v1047_v41 = vadd.f32 %v1046_v51, %v1018_v52 }
 0x15d   : > { %1207 = vmatmul.bf16.gmra.mxu0 %v1119_v56  ;;  %v1076_v32 = vadd.f32 %v1075_v46, %v1047_v41 }
 0x15f   : > { %v1105_v54 = vadd.f32 %v1104_v49, %v1076_v32 }
 0x161   : > { %v1115_v62 = vmax.f32 %v1105_v54, 0.0 }
 0x162   : > { %v1048_v58 = vpop.f32.mrf.mxu1 }
 0x163   : > { %v1049_v37 = vadd.f32 %v1048_v58, %v1020_v55 }
 0x165   : > { %v1078_v18 = vadd.f32 %v1077_v59, %v1049_v37 }
 0x167   : > { %v1107_v61 = vadd.f32 %v1106_v60, %v1078_v18 }
 0x169   : > { %v1116_v38 = vmax.f32 %v1107_v61, 0.0 }
 0x16b   : > { %v1120_v63 = vpack.c.bf16 %v1116_v38, %v1115_v62 }
 0x16d   : > { %1212 = vmatmul.bf16.vlgmr.msra.gmra.mxu2 %v1120_v63 }
 0x1ba   : > { %v1198_v27 = vpop.f32.mrf.mxu0 }
 0x1bb   : > { %v1199_v0 = vadd.f32 %v2392_v19, %v1198_v27 }
 0x1bd   : > { %v1219_v5 = vsel %vm1218_vm0, %v1199_v0, -inf }
 0x1be   : > { %1220 = vmax.xlane.f32.xlu0 %v1219_v5  ;;  %v2571_v5 = vmov 0  }
 0x1bf   : > { %2328 = vset.pattern.permute.xlu1 %v2571_v5  ;;  %2336 = vset.pattern.permute.xlu2 %v2571_v5 }
 0x1c2   : > { %v1200_v6 = vpop.f32.mrf.mxu0 }
 0x1c3   : > { %v1201_v7 = vadd.f32 %v2392_v19, %v1200_v6  ;;  %v2572_v6 = vmov 1  }
 0x1c4   : > { %2337 = vset.pattern.permute.xlu0 %v2572_v6 }
 0x1c5   : > { %v1222_v10 = vsel %vm1218_vm0, %v1201_v7, -inf }
 0x1c6   : > { %1223 = vmax.xlane.f32.xlu0 %v1222_v10 }
 0x1ca   : > { %v1203_v3 = vpop.f32.mrf.mxu0 }
 0x1cb   : > { %v1204_v11 = vadd.f32 %v2392_v19, %v1203_v3 }
 0x1cd   : > { %v1225_v12 = vsel %vm1218_vm0, %v1204_v11, -inf }
 0x1ce   : > { %1226 = vmax.xlane.f32.xlu1 %v1225_v12 }
 0x1d2   : > { %v1205_v13 = vpop.f32.mrf.mxu0 }
 0x1d3   : > { %v1206_v50 = vadd.f32 %v2392_v19, %v1205_v13 }
 0x1d5   : > { %v1228_v14 = vsel %vm1218_vm0, %v1206_v50, -inf }
 0x1d6   : > { %1229 = vmax.xlane.f32.xlu1 %v1228_v14 }
 0x1da   : > { %v1208_v16 = vpop.f32.mrf.mxu0 }
 0x1db   : > { %v1209_v20 = vadd.f32 %v2392_v19, %v1208_v16 }
 0x1dd   : > { %v1231_v21 = vsel %vm1218_vm0, %v1209_v20, -inf }
 0x1de   : > { %1232 = vmax.xlane.f32.xlu2 %v1231_v21  ;;  %v2574_v21 = vmov 3  }
 0x1e2   : > { %v1210_v22 = vpop.f32.mrf.mxu0 }
 0x1e3   : > { %v1211_v1 = vadd.f32 %v2392_v19, %v1210_v22  ;;  %v2575_v22 = vmov 4  }
 0x1e5   : > { %v1234_v23 = vsel %vm1218_vm0, %v1211_v1, -inf }
 0x1e6   : > { %1235 = vmax.xlane.f32.xlu2 %v1234_v23  ;;  %v2577_v23 = vmov 6  }
 0x1f0   : > { %v1213_v24 = vpop.f32.mrf.mxu2 }
 0x1f1   : > { %v1214_v53 = vadd.f32 %v2392_v19, %v1213_v24 }
 0x1f3   : > { %v1237_v25 = vsel %vm1218_vm0, %v1214_v53, -inf }
 0x1f4   : > { %1238 = vmax.xlane.f32.xlu0 %v1237_v25 }
 0x1f8   : > { %v1215_v26 = vpop.f32.mrf.mxu2 }
 0x1f9   : > { %v1216_v28 = vadd.f32 %v2392_v19, %v1215_v26 }
 0x1fb   : > { %v1240_v29 = vsel %vm1218_vm0, %v1216_v28, -inf }
 0x1fc   : > { %1241 = vmax.xlane.f32.xlu1 %v1240_v29 }
 0x231   : > { %v1221_v31 = vpop.xlane.xlu0 %1220 }
 0x232   : > { %v1243_v33 = vsub.f32 %v1199_v0, %v1221_v31 }
 0x234   : > { %v1251_v30 = vmul.f32 1.442695, %v1243_v33 }
 0x236   : > { %2393 = vpow2.f32 %v1251_v30 }
 0x239   : > { %v1224_v34 = vpop.xlane.xlu0 %1223 }
 0x23a   : > { %v1244_v17 = vsub.f32 %v1201_v7, %v1224_v34 }
 0x23c   : > { %v2394_v35 = vpop.eup %2393  ;;  %v1253_v39 = vmul.f32 1.442695, %v1244_v17 }
 0x23d   : > { %v1267_v36 = vsel %vm1218_vm0, %v2394_v35, 0.0 }
 0x23e   : > { %2395 = vpow2.f32 %v1253_v39  ;;  %1268 = vadd.xlane.f32.xlu2 %v1267_v36 }
 0x241   : > { %v1227_v2 = vpop.xlane.xlu1 %1226 }
 0x242   : > { %v1245_v40 = vsub.f32 %v1204_v11, %v1227_v2 }
 0x244   : > { %v2396_v42 = vpop.eup %2395  ;;  %v1255_v43 = vmul.f32 1.442695, %v1245_v40 }
 0x245   : > { %v1270_v45 = vsel %vm1218_vm0, %v2396_v42, 0.0 }
 0x246   : > { %2397 = vpow2.f32 %v1255_v43  ;;  %1271 = vadd.xlane.f32.xlu0 %v1270_v45 }
 0x249   : > { %v1230_v15 = vpop.xlane.xlu1 %1229 }
 0x24a   : > { %v1246_v46 = vsub.f32 %v1206_v50, %v1230_v15 }
 0x24c   : > { %v2398_v4 = vpop.eup %2397  ;;  %v1257_v47 = vmul.f32 1.442695, %v1246_v46 }
 0x24d   : > { %v1273_v48 = vsel %vm1218_vm0, %v2398_v4, 0.0 }
 0x24e   : > { %2399 = vpow2.f32 %v1257_v47  ;;  %1274 = vadd.xlane.f32.xlu1 %v1273_v48 }
 0x251   : > { %v1233_v51 = vpop.xlane.xlu2 %1232 }
 0x252   : > { %v1247_v49 = vsub.f32 %v1209_v20, %v1233_v51  ;;  %v2573_v20 = vmov 2  }
 0x254   : > { %v2888_v52 = vpop.eup %2399  ;;  %v1259_v56 = vmul.f32 1.442695, %v1247_v49 }
 0x255   : > { %v1276_v57 = vsel %vm1218_vm0, %v2888_v52, 0.0 }
 0x256   : > { %2401 = vpow2.f32 %v1259_v56  ;;  %1277 = vadd.xlane.f32.xlu2 %v1276_v57 }
 0x259   : > { %v1236_v41 = vpop.xlane.xlu2 %1235 }
 0x25a   : > { %v1248_v44 = vsub.f32 %v1211_v1, %v1236_v41  ;;  %v2576_v1 = vmov 5  }
 0x25c   : > { %v2892_v55 = vpop.eup %2401  ;;  %v1261_v32 = vmul.f32 1.442695, %v1248_v44 }
 0x25d   : > { %v1279_v58 = vsel %vm1218_vm0, %v2892_v55, 0.0 }
 0x25e   : > { %2403 = vpow2.f32 %v1261_v32  ;;  %1280 = vadd.xlane.f32.xlu0 %v1279_v58  ;;  %v1372_v58 = vld [vmem:[%s2712_s11 + $0x48] sm:$0xff] }
 0x264   : > { %v2896_v59 = vpop.eup %2403 }
 0x265   : > { %v1282_v37 = vsel %vm1218_vm0, %v2896_v59, 0.0 }
 0x266   : > { %1283 = vadd.xlane.f32.xlu1 %v1282_v37  ;;  %v1308_v37 = vld [vmem:[%s2712_s11 + $0x40] sm:$0xff] }
 0x267   : > { %v1239_v60 = vpop.xlane.xlu0 %1238 }
 0x268   : > { %v1249_v54 = vsub.f32 %v1214_v53, %v1239_v60  ;;  %v2578_v53 = vmov 7   ;;  %v1428_v60 = vld [vmem:[%s2712_s11 + $0x50] sm:$0xff] }
 0x26a   : > { %v1263_v18 = vmul.f32 1.442695, %v1249_v54 }
 0x26c   : > { %2405 = vpow2.f32 %v1263_v18 }
 0x26f   : > { %v1242_v61 = vpop.xlane.xlu1 %1241 }
 0x270   : > { %v1250_v62 = vsub.f32 %v1216_v28, %v1242_v61  ;;  %v1307_v61 = vld [vmem:[%s2712_s11] sm:$0xff] }
 0x272   : > { %v2900_v38 = vpop.eup %2405  ;;  %v1265_v63 = vmul.f32 1.442695, %v1250_v62 }
 0x273   : > { %v1285_v19 = vsel %vm1218_vm0, %v2900_v38, 0.0 }
 0x274   : > { %2407 = vpow2.f32 %v1265_v63  ;;  %1286 = vadd.xlane.f32.xlu2 %v1285_v19  ;;  %v1484_v19 = vld [vmem:[%s2712_s11 + $0x58] sm:$0xff] }
 0x27a   : > { %v2904_v27 = vpop.eup %2407 }
 0x27b   : > { %v1288_v0 = vsel %vm1218_vm0, %v2904_v27, 0.0 }
 0x27c   : > { %1289 = vadd.xlane.f32.xlu0 %v1288_v0 }
 0x2b1   : > { %v1269_v7 = vpop.xlane.xlu2 %1268 }
 0x2b2   : > { %2409 = vrcp.f32 %v1269_v7 }
 0x2b8   : > { %v2410_v10 = vpop.eup %2409 }
 0x2b9   : > { %v1299_v3 = vmul.f32 %v2410_v10, %v2394_v35  ;;  %v1272_v11 = vpop.xlane.xlu0 %1271  ;;  %v1483_v10 = vld [vmem:[%s2712_s11 + $0x18] sm:$0xff] }
 0x2ba   : > { %2411 = vrcp.f32 %v1272_v11 }
 0x2bb   : > { %1317 = vperm.xlu1 %2328, %v1299_v3  }
 0x2c0   : > { %v2412_v12 = vpop.eup %2411 }
 0x2c1   : > { %v1300_v13 = vmul.f32 %v2412_v12, %v2396_v42  ;;  %v1275_v50 = vpop.xlane.xlu1 %1274 }
 0x2c2   : > { %2413 = vrcp.f32 %v1275_v50  ;;  %v1539_v50 = vld [vmem:[%s2712_s11 + $0x20] sm:$0xff] }
 0x2c3   : > { %2329 = vset.pattern.permute.xlu1 %v2572_v6  ;;  %1384 = vperm.xlu0 %2337, %v1300_v13  }
 0x2c4   : > { %1322 = vperm.xlu2 %2336, %v1300_v13   ;;  %1380 = vperm.xlu1 %2329, %v1299_v3  }
 0x2c8   : > { %v2414_v14 = vpop.eup %2413 }
 0x2c9   : > { %v1301_v16 = vmul.f32 %v2414_v14, %v2398_v4  ;;  %v1278_v24 = vpop.xlane.xlu2 %1277 }
 0x2ca   : > { %2415 = vrcp.f32 %v1278_v24 }
 0x2cb   : > { %2338 = vset.pattern.permute.xlu0 %v2573_v20 }
 0x2cc   : > { %2345 = vset.pattern.permute.xlu2 %v2572_v6  ;;  %2330 = vset.pattern.permute.xlu1 %v2573_v20 }
 0x2cd   : > { %1440 = vperm.xlu0 %2338, %v1300_v13   ;;  %1388 = vperm.xlu2 %2345, %v1301_v16  }
 0x2ce   : > { %1436 = vperm.xlu1 %2330, %v1299_v3  }
 0x2d0   : > { %v2416_v26 = vpop.eup %2415 }
 0x2d1   : > { %v2932_v28 = vmul.f32 %v2416_v26, %v2888_v52  ;;  %v1281_v31 = vpop.xlane.xlu0 %1280 }
 0x2d5   : > { %2339 = vset.pattern.permute.xlu0 %v2574_v21  ;;  %2346 = vset.pattern.permute.xlu2 %v2573_v20 }
 0x2d6   : > { %2331 = vset.pattern.permute.xlu1 %v2574_v21  ;;  %1496 = vperm.xlu0 %2339, %v1300_v13  }
 0x2d7   : > { %1444 = vperm.xlu2 %2346, %v1301_v16   ;;  %1492 = vperm.xlu1 %2331, %v1299_v3  }
 0x2d9   : > { %v1284_v35 = vpop.xlane.xlu1 %1283 }
 0x2de   : > { %2340 = vset.pattern.permute.xlu0 %v2575_v22 }
 0x2df   : > { %2347 = vset.pattern.permute.xlu2 %v2574_v21  ;;  %2332 = vset.pattern.permute.xlu1 %v2575_v22 }
 0x2e0   : > { %1552 = vperm.xlu0 %2340, %v1300_v13   ;;  %1500 = vperm.xlu2 %2347, %v1301_v16  }
 0x2e1   : > { %1548 = vperm.xlu1 %2332, %v1299_v3  }
 0x2e7   : > { %v1287_v25 = vpop.xlane.xlu2 %1286 }
 0x2e8   : > { %2341 = vset.pattern.permute.xlu0 %v2576_v1  ;;  %2348 = vset.pattern.permute.xlu2 %v2575_v22  ;;  %2417 = vrcp.f32 %v1287_v25 }
 0x2e9   : > { %2333 = vset.pattern.permute.xlu1 %v2576_v1  ;;  %1608 = vperm.xlu0 %2341, %v1300_v13   ;;  %2419 = vrcp.f32 %v1281_v31 }
 0x2ea   : > { %1556 = vperm.xlu2 %2348, %v1301_v16   ;;  %1604 = vperm.xlu1 %2333, %v1299_v3   ;;  %2421 = vrcp.f32 %v1284_v35 }
 0x2ee   : > { %v2418_v29 = vpop.eup %2417 }
 0x2ef   : > { %v2938_v33 = vmul.f32 %v2418_v29, %v2900_v38  ;;  %v2420_v30 = vpop.eup %2419  ;;  %v1290_v36 = vpop.xlane.xlu0 %1289  ;;  %v1427_v38 = vld [vmem:[%s2712_s11 + $0x10] sm:$0xff] }
 0x2f0   : > { %v2947_v34 = vmul.f32 %v2420_v30, %v2892_v55  ;;  %v2422_v47 = vpop.eup %2421  ;;  %2423 = vrcp.f32 %v1290_v36  ;;  %v1651_v36 = vld [vmem:[%s2712_s11 + $0x30] sm:$0xff] }
 0x2f1   : > { %2342 = vset.pattern.permute.xlu0 %v2577_v23  ;;  %v2994_v48 = vmul.f32 %v2422_v47, %v2896_v59  ;;  %v1371_v59 = vld [vmem:[%s2712_s11 + $0x8] sm:$0xff] }
 0x2f2   : > { %2349 = vset.pattern.permute.xlu2 %v2576_v1  ;;  %2334 = vset.pattern.permute.xlu1 %v2577_v23 }
 0x2f3   : > { %1664 = vperm.xlu0 %2342, %v1300_v13   ;;  %1612 = vperm.xlu2 %2349, %v1301_v16  }
 0x2f4   : > { %1660 = vperm.xlu1 %2334, %v1299_v3  }
 0x2f6   : > { %v2424_v32 = vpop.eup %2423 }
 0x2f7   : > { %v3019_v18 = vmul.f32 %v2424_v32, %v2904_v27  ;;  %v1540_v27 = vld [vmem:[%s2712_s11 + $0x60] sm:$0xff]  ;;  %v2426_v32 = vld [vmem:[%s2712_s11 + $0x38] sm:$0xff] }
 0x2fb   : > { %2343 = vset.pattern.permute.xlu0 %v2578_v53  ;;  %2350 = vset.pattern.permute.xlu2 %v2577_v23 }
 0x2fc   : > { %2335 = vset.pattern.permute.xlu1 %v2578_v53  ;;  %1712 = vperm.xlu0 %2343, %v1300_v13  }
 0x2fd   : > { %1668 = vperm.xlu2 %2350, %v1301_v16   ;;  %1708 = vperm.xlu1 %2335, %v1299_v3  }
 0x304   : > { %2344 = vset.pattern.permute.xlu0 %v2571_v5 }
 0x305   : > { %2351 = vset.pattern.permute.xlu2 %v2578_v53  ;;  %2353 = vset.pattern.permute.xlu1 %v2572_v6 }
 0x306   : > { %1327 = vperm.xlu0 %2344, %v1301_v16   ;;  %1716 = vperm.xlu2 %2351, %v1301_v16  }
 0x307   : > { %1392 = vperm.xlu1 %2353, %v2932_v28  }
 0x30e   : > { %2376 = vset.pattern.permute.xlu0 %v2572_v6  ;;  %2352 = vset.pattern.permute.xlu2 %v2571_v5 }
 0x30f   : > { %2354 = vset.pattern.permute.xlu1 %v2573_v20  ;;  %1404 = vperm.xlu0 %2376, %v2938_v33  }
 0x310   : > { %1332 = vperm.xlu2 %2352, %v2932_v28   ;;  %1448 = vperm.xlu1 %2354, %v2932_v28  }
 0x317   : > { %2377 = vset.pattern.permute.xlu0 %v2573_v20 }
 0x318   : > { %2360 = vset.pattern.permute.xlu2 %v2572_v6  ;;  %2355 = vset.pattern.permute.xlu1 %v2574_v21 }
 0x319   : > { %1460 = vperm.xlu0 %2377, %v2938_v33   ;;  %1396 = vperm.xlu2 %2360, %v2947_v34  }
 0x31a   : > { %1504 = vperm.xlu1 %2355, %v2932_v28  }
 0x31e   : > { %v2955_v17 = vpop.permute.xlu2 %1322 }
 0x31f   : > { %v1356_v0 = vmul.f32 %v2955_v17, %v1308_v37 }
 0x321   : > { %2378 = vset.pattern.permute.xlu0 %v2574_v21  ;;  %2361 = vset.pattern.permute.xlu2 %v2573_v20 }
 0x322   : > { %2356 = vset.pattern.permute.xlu1 %v2575_v22  ;;  %1516 = vperm.xlu0 %2378, %v2938_v33  }
 0x323   : > { %1452 = vperm.xlu2 %2361, %v2947_v34   ;;  %1560 = vperm.xlu1 %2356, %v2932_v28  }
 0x327   : > { %v2963_v39 = vpop.permute.xlu2 %1388 }
 0x32a   : > { %2379 = vset.pattern.permute.xlu0 %v2575_v22 }
 0x32b   : > { %2362 = vset.pattern.permute.xlu2 %v2574_v21  ;;  %2357 = vset.pattern.permute.xlu1 %v2576_v1 }
 0x32c   : > { %1572 = vperm.xlu0 %2379, %v2938_v33   ;;  %1508 = vperm.xlu2 %2362, %v2947_v34  }
 0x32d   : > { %1616 = vperm.xlu1 %2357, %v2932_v28   ;;  %v2971_v2 = vpop.permute.xlu1 %1317 }
 0x32e   : > { %v1355_v3 = vmul.f32 %v2971_v2, %v1307_v61  ;;  %v1373_v61 = vld [vmem:[%s2712_s11 + $0x88] sm:$0xff] }
 0x331   : > { %v2973_v40 = vpop.permute.xlu2 %1444 }
 0x334   : > { %2380 = vset.pattern.permute.xlu0 %v2576_v1  ;;  %2363 = vset.pattern.permute.xlu2 %v2575_v22 }
 0x335   : > { %2358 = vset.pattern.permute.xlu1 %v2577_v23  ;;  %1628 = vperm.xlu0 %2380, %v2938_v33   ;;  %v1385_v42 = vpop.permute.xlu0 %1384 }
 0x336   : > { %1564 = vperm.xlu2 %2363, %v2947_v34   ;;  %1672 = vperm.xlu1 %2358, %v2932_v28   ;;  %v1381_v43 = vpop.permute.xlu1 %1380  ;;  %v1412_v62 = vmul.f32 %v1385_v42, %v1372_v58 }
 0x337   : > { %v1411_v63 = vmul.f32 %v1381_v43, %v1371_v59 }
 0x338   : > { %v1420_v12 = vadd.f32 %v1412_v62, %v1356_v0  ;;  %v1309_v62 = vld [vmem:[%s2712_s11 + $0x80] sm:$0xff] }
 0x339   : > { %v1419_v16 = vadd.f32 %v1411_v63, %v1355_v3  ;;  %v1374_v63 = vld [vmem:[%s2712_s11 + $0xc8] sm:$0xff] }
 0x33a   : > { %v2981_v45 = vpop.permute.xlu2 %1500 }
 0x33d   : > { %2381 = vset.pattern.permute.xlu0 %v2577_v23 }
 0x33e   : > { %2364 = vset.pattern.permute.xlu2 %v2576_v1  ;;  %2359 = vset.pattern.permute.xlu1 %v2571_v5 }
 0x33f   : > { %1684 = vperm.xlu0 %2381, %v2938_v33   ;;  %1620 = vperm.xlu2 %2364, %v2947_v34   ;;  %v1441_v15 = vpop.permute.xlu0 %1440 }
 0x340   : > { %1337 = vperm.xlu1 %2359, %v2947_v34   ;;  %v1437_v46 = vpop.permute.xlu1 %1436  ;;  %v1468_v7 = vmul.f32 %v1441_v15, %v1428_v60 }
 0x341   : > { %v1467_v11 = vmul.f32 %v1437_v46, %v1427_v38  ;;  %v1310_v38 = vld [vmem:[%s2712_s11 + $0xc0] sm:$0xff] }
 0x342   : > { %v1476_v26 = vadd.f32 %v1468_v7, %v1420_v12  ;;  %v1413_v7 = vmul.f32 %v2963_v39, %v1373_v61  ;;  %v1487_v61 = vld [vmem:[%s2712_s11 + $0x118] sm:$0xff] }
 0x343   : > { %v1475_v31 = vadd.f32 %v1467_v11, %v1419_v16  ;;  %v1485_v11 = vld [vmem:[%s2712_s11 + $0x98] sm:$0xff] }
 0x344   : > { %v2989_v4 = vpop.permute.xlu2 %1556  ;;  %v1525_v16 = vmul.f32 %v2981_v45, %v1485_v11  ;;  %v1655_v11 = vld [vmem:[%s2712_s11 + $0x130] sm:$0xff] }
 0x347   : > { %2389 = vset.pattern.permute.xlu0 %v2578_v53  ;;  %2365 = vset.pattern.permute.xlu2 %v2577_v23 }
 0x348   : > { %1732 = vperm.xlu0 %2389, %v2938_v33   ;;  %1676 = vperm.xlu2 %2365, %v2947_v34   ;;  %v1497_v51 = vpop.permute.xlu0 %1496 }
 0x349   : > { %2367 = vset.pattern.permute.xlu1 %v2572_v6  ;;  %v1493_v49 = vpop.permute.xlu1 %1492  ;;  %v1524_v13 = vmul.f32 %v1497_v51, %v1484_v19  ;;  %v1429_v19 = vld [vmem:[%s2712_s11 + $0x90] sm:$0xff] }
 0x34a   : > { %1400 = vperm.xlu1 %2367, %v2994_v48   ;;  %v1523_v24 = vmul.f32 %v1493_v49, %v1483_v10  ;;  %v1469_v12 = vmul.f32 %v2973_v40, %v1429_v19  ;;  %v1430_v40 = vld [vmem:[%s2712_s11 + $0xd0] sm:$0xff] }
 0x34b   : > { %v1532_v17 = vadd.f32 %v1524_v13, %v1476_v26 }
 0x34c   : > { %v1531_v2 = vadd.f32 %v1523_v24, %v1475_v31 }
 0x34d   : > { %v3000_v52 = vpop.permute.xlu2 %1612 }
 0x350   : > { %2366 = vset.pattern.permute.xlu2 %v2571_v5 }
 0x351   : > { %1342 = vperm.xlu2 %2366, %v2994_v48  }
 0x352   : > { %2368 = vset.pattern.permute.xlu1 %v2573_v20  ;;  %v1553_v56 = vpop.permute.xlu0 %1552 }
 0x353   : > { %1456 = vperm.xlu1 %2368, %v2994_v48   ;;  %v1549_v57 = vpop.permute.xlu1 %1548  ;;  %v1580_v29 = vmul.f32 %v1553_v56, %v1540_v27 }
 0x354   : > { %v1579_v30 = vmul.f32 %v1549_v57, %v1539_v50  ;;  %v2425_v57 = vld [vmem:[%s2712_s11 + $0x78] sm:$0xff]  ;;  %v1541_v50 = vld [vmem:[%s2712_s11 + $0xa0] sm:$0xff] }
 0x355   : > { %v1588_v15 = vadd.f32 %v1580_v29, %v1532_v17  ;;  %v2427_v29 = vld [vmem:[%s2712_s11 + $0xa8] sm:$0xff] }
 0x356   : > { %v1587_v47 = vadd.f32 %v1579_v30, %v1531_v2  ;;  %v1637_v31 = vmul.f32 %v2427_v29, %v3000_v52  ;;  %v1486_v52 = vld [vmem:[%s2712_s11 + $0xd8] sm:$0xff] }
 0x357   : > { %v3006_v41 = vpop.permute.xlu2 %1668 }
 0x359   : > { %2375 = vset.pattern.permute.xlu2 %v2578_v53 }
 0x35a   : > { %1724 = vperm.xlu2 %2375, %v2947_v34   ;;  %v1652_v34 = vld [vmem:[%s2712_s11 + $0x70] sm:$0xff] }
 0x35b   : > { %2369 = vset.pattern.permute.xlu1 %v2574_v21  ;;  %v1609_v44 = vpop.permute.xlu0 %1608 }
 0x35c   : > { %1512 = vperm.xlu1 %2369, %v2994_v48   ;;  %v1605_v55 = vpop.permute.xlu1 %1604  ;;  %v1636_v35 = vmul.f32 %v1609_v44, %v2774_v9 }
 0x35d   : > { %v1635_v42 = vmul.f32 %v1605_v55, %v2771_v8 }
 0x35e   : > { %v1644_v49 = vadd.f32 %v1636_v35, %v1588_v15 }
 0x35f   : > { %v1643_v9 = vadd.f32 %v1635_v42, %v1587_v47 }
 0x360   : > { %v3016_v54 = vpop.permute.xlu2 %1716 }
 0x362   : > { %2382 = vset.pattern.permute.xlu2 %v2571_v5 }
 0x363   : > { %1352 = vperm.xlu2 %2382, %v3019_v18  }
 0x364   : > { %2370 = vset.pattern.permute.xlu1 %v2575_v22 }
 0x365   : > { %1568 = vperm.xlu1 %2370, %v2994_v48   ;;  %v1665_v14 = vpop.permute.xlu0 %1664 }
 0x366   : > { %v1661_v25 = vpop.permute.xlu1 %1660  ;;  %v1692_v46 = vmul.f32 %v1665_v14, %v1652_v34 }
 0x367   : > { %v1691_v51 = vmul.f32 %v1661_v25, %v1651_v36  ;;  %v1581_v25 = vmul.f32 %v2989_v4, %v1541_v50  ;;  %v2429_v36 = vld [vmem:[%s2712_s11 + $0xb8] sm:$0xff] }
 0x368   : > { %v1700_v8 = vadd.f32 %v1692_v46, %v1644_v49  ;;  %v1741_v4 = vmul.f32 %v2429_v36, %v3016_v54  ;;  %v1598_v49 = vld [vmem:[%s2712_s11 + $0xe8] sm:$0xff] }
 0x36a   : > { %v1333_v43 = vpop.permute.xlu2 %1332 }
 0x36b   : > { %2383 = vset.pattern.permute.xlu2 %v2572_v6  ;;  %v1699_v6 = vadd.f32 %v1691_v51, %v1643_v9 }
 0x36c   : > { %1408 = vperm.xlu2 %2383, %v3019_v18  }
 0x36d   : > { %2371 = vset.pattern.permute.xlu1 %v2576_v1 }
 0x36e   : > { %1624 = vperm.xlu1 %2371, %v2994_v48   ;;  %v1713_v56 = vpop.permute.xlu0 %1712 }
 0x36f   : > { %v1740_v44 = vmul.f32 %v2425_v57, %v1713_v56  ;;  %v1709_v55 = vpop.permute.xlu1 %1708 }
 0x370   : > { %v1739_v58 = vmul.f32 %v2426_v32, %v1709_v55  ;;  %v1311_v32 = vld [vmem:[%s2712_s11 + $0x100] sm:$0xff] }
 0x371   : > { %v1748_v59 = vadd.f32 %v1740_v44, %v1700_v8  ;;  %v1654_v8 = vld [vmem:[%s2712_s11 + $0xf0] sm:$0xff] }
 0x372   : > { %v1747_v37 = vadd.f32 %v1739_v58, %v1699_v6  ;;  %v1375_v6 = vld [vmem:[%s2712_s11 + $0x108] sm:$0xff]  ;;  %v1431_v58 = vld [vmem:[%s2712_s11 + $0x110] sm:$0xff] }
 0x373   : > { %1756 = vst [vmem:[%s3044_s16 + $0x8] sm:$0xff] %v1748_v59  ;;  %v3047_v60 = vpop.permute.xlu2 %1396 }
 0x374   : > { %1755 = vst [vmem:[%s3044_s16] sm:$0xff] %v1747_v37  ;;  %2384 = vset.pattern.permute.xlu2 %v2573_v20  ;;  %v1358_v20 = vmul.f32 %v1333_v43, %v1310_v38 }
 0x375   : > { %1464 = vperm.xlu2 %2384, %v3019_v18  }
 0x376   : > { %2372 = vset.pattern.permute.xlu1 %v2577_v23 }
 0x377   : > { %1680 = vperm.xlu1 %2372, %v2994_v48  }
 0x378   : > { %v1328_v0 = vpop.permute.xlu0 %1327 }
 0x379   : > { %v1357_v10 = vmul.f32 %v1328_v0, %v1309_v62  ;;  %v1393_v3 = vpop.permute.xlu1 %1392 }
 0x37a   : > { %v1414_v27 = vmul.f32 %v1393_v3, %v1374_v63  ;;  %v1543_v63 = vld [vmem:[%s2712_s11 + $0x120] sm:$0xff] }
 0x37b   : > { %v1421_v13 = vadd.f32 %v1413_v7, %v1357_v10  ;;  %v1599_v7 = vld [vmem:[%s2712_s11 + $0x128] sm:$0xff] }
 0x37c   : > { %v1422_v14 = vadd.f32 %v1414_v27, %v1358_v20 }
 0x37d   : > { %v1477_v24 = vadd.f32 %v1469_v12, %v1421_v13  ;;  %2385 = vset.pattern.permute.xlu2 %v2574_v21  ;;  %v1453_v39 = vpop.permute.xlu2 %1452  ;;  %v2428_v21 = vld [vmem:[%s2712_s11 + $0xb0] sm:$0xff] }
 0x37e   : > { %1520 = vperm.xlu2 %2385, %v3019_v18   ;;  %v1693_v34 = vmul.f32 %v2428_v21, %v3006_v41 }
 0x37f   : > { %v1533_v26 = vadd.f32 %v1525_v16, %v1477_v24  ;;  %2373 = vset.pattern.permute.xlu1 %v2571_v5  ;;  %v2430_v16 = vld [vmem:[%s2712_s11 + $0x138] sm:$0xff] }
 0x380   : > { %1347 = vperm.xlu1 %2373, %v2938_v33  }
 0x381   : > { %v1589_v45 = vadd.f32 %v1581_v25, %v1533_v26 }
 0x382   : > { %v1449_v30 = vpop.permute.xlu1 %1448 }
 0x383   : > { %v1645_v17 = vadd.f32 %v1637_v31, %v1589_v45  ;;  %v1470_v35 = vmul.f32 %v1449_v30, %v1430_v40 }
 0x385   : > { %v1701_v2 = vadd.f32 %v1693_v34, %v1645_v17  ;;  %v1478_v5 = vadd.f32 %v1470_v35, %v1422_v14 }
 0x386   : > { %2386 = vset.pattern.permute.xlu2 %v2575_v22  ;;  %v1509_v33 = vpop.permute.xlu2 %1508  ;;  %v1542_v22 = vld [vmem:[%s2712_s11 + $0xe0] sm:$0xff] }
 0x387   : > { %v1749_v42 = vadd.f32 %v1741_v4, %v1701_v2  ;;  %1576 = vperm.xlu2 %2386, %v3019_v18   ;;  %v1527_v19 = vmul.f32 %v1509_v33, %v1487_v61  ;;  %v1378_v33 = vld [vmem:[%s2712_s11 + $0x1c8] sm:$0xff] }
 0x388   : > { %2374 = vset.pattern.permute.xlu1 %v2578_v53 }
 0x389   : > { %1757 = vst [vmem:[%s3044_s16 + $0x10] sm:$0xff] %v1749_v42  ;;  %1720 = vperm.xlu1 %2374, %v2932_v28   ;;  %v1314_v42 = vld [vmem:[%s2712_s11 + $0x1c0] sm:$0xff] }
 0x38c   : > { %v1505_v41 = vpop.permute.xlu1 %1504 }
 0x38d   : > { %v1526_v43 = vmul.f32 %v1505_v41, %v1486_v52  ;;  %v1434_v52 = vld [vmem:[%s2712_s11 + $0x1d0] sm:$0xff] }
 0x38f   : > { %v1534_v15 = vadd.f32 %v1526_v43, %v1478_v5  ;;  %2387 = vset.pattern.permute.xlu2 %v2576_v1  ;;  %v1377_v43 = vld [vmem:[%s2712_s11 + $0x188] sm:$0xff] }
 0x390   : > { %v1565_v54 = vpop.permute.xlu2 %1564  ;;  %1632 = vperm.xlu2 %2387, %v3019_v18  }
 0x391   : > { %1728 = vperm.xlu1 %2374, %v2994_v48   ;;  %v1583_v10 = vmul.f32 %v1565_v54, %v1543_v63  ;;  %v1313_v54 = vld [vmem:[%s2712_s11 + $0x180] sm:$0xff] }
 0x395   : > { %v1561_v46 = vpop.permute.xlu1 %1560 }
 0x396   : > { %v1582_v47 = vmul.f32 %v1561_v46, %v1542_v22 }
 0x398   : > { %v1590_v51 = vadd.f32 %v1582_v47, %v1534_v15  ;;  %2388 = vset.pattern.permute.xlu2 %v2577_v23  ;;  %v1490_v15 = vld [vmem:[%s2712_s11 + $0x1d8] sm:$0xff]  ;;  %v1433_v47 = vld [vmem:[%s2712_s11 + $0x190] sm:$0xff] }
 0x399   : > { %v1621_v28 = vpop.permute.xlu2 %1620  ;;  %1688 = vperm.xlu2 %2388, %v3019_v18  }
 0x39a   : > { %v1639_v20 = vmul.f32 %v1621_v28, %v1599_v7  ;;  %v1546_v28 = vld [vmem:[%s2712_s11 + $0x1e0] sm:$0xff] }
 0x39f   : > { %v1617_v1 = vpop.permute.xlu1 %1616 }
 0x3a0   : > { %v1638_v9 = vmul.f32 %v1617_v1, %v1598_v49 }
 0x3a1   : > { %2390 = vset.pattern.permute.xlu2 %v2578_v53  ;;  %v1415_v53 = vmul.f32 %v3047_v60, %v1375_v6  ;;  %v1602_v6 = vld [vmem:[%s2712_s11 + $0x1e8] sm:$0xff] }
 0x3a2   : > { %v1646_v56 = vadd.f32 %v1638_v9, %v1590_v51  ;;  %v1677_v48 = vpop.permute.xlu2 %1676  ;;  %1736 = vperm.xlu2 %2390, %v3019_v18   ;;  %v1471_v18 = vmul.f32 %v1453_v39, %v1431_v58  ;;  %v1405_v39 = vpop.permute.xlu0 %1404  ;;  %v1376_v9 = vld [vmem:[%s2712_s11 + $0x148] sm:$0xff]  ;;  %v1312_v58 = vld [vmem:[%s2712_s11 + $0x140] sm:$0xff] }
 0x3a3   : > { %v1695_v13 = vmul.f32 %v1677_v48, %v1655_v11  ;;  %v1417_v1 = vmul.f32 %v1405_v39, %v1377_v43 }
 0x3a8   : > { %v1673_v57 = vpop.permute.xlu1 %1672 }
 0x3a9   : > { %v1694_v44 = vmul.f32 %v1673_v57, %v1654_v8 }
 0x3aa   : > { %v1461_v29 = vpop.permute.xlu0 %1460 }
 0x3ab   : > { %v3092_v23 = vadd.f32 %v1694_v44, %v1646_v56  ;;  %v3094_v55 = vpop.permute.xlu2 %1342  ;;  %v1489_v44 = vld [vmem:[%s2712_s11 + $0x198] sm:$0xff] }
 0x3ac   : > { %v1360_v11 = vmul.f32 %v3094_v55, %v1312_v58 }
 0x3b2   : > { %v1338_v59 = vpop.permute.xlu1 %1337  ;;  %v1517_v30 = vpop.permute.xlu0 %1516 }
 0x3b3   : > { %v1359_v37 = vmul.f32 %v1338_v59, %v1311_v32  ;;  %v1473_v32 = vmul.f32 %v1461_v29, %v1433_v47  ;;  %v1432_v59 = vld [vmem:[%s2712_s11 + $0x150] sm:$0xff]  ;;  %v1529_v63 = vmul.f32 %v1517_v30, %v1489_v44 }
 0x3b4   : > { %v1725_v62 = vpop.permute.xlu2 %1724 }
 0x3b5   : > { %v1423_v38 = vadd.f32 %v1415_v53, %v1359_v37  ;;  %v1743_v24 = vmul.f32 %v2430_v16, %v1725_v62  ;;  %v1545_v62 = vld [vmem:[%s2712_s11 + $0x1a0] sm:$0xff]  ;;  %v1657_v16 = vld [vmem:[%s2712_s11 + $0x1b0] sm:$0xff] }
 0x3b7   : > { %v1479_v0 = vadd.f32 %v1471_v18, %v1423_v38  ;;  %v1658_v38 = vld [vmem:[%s2712_s11 + $0x1f0] sm:$0xff] }
 0x3b9   : > { %v1535_v3 = vadd.f32 %v1527_v19, %v1479_v0  ;;  %v1488_v19 = vld [vmem:[%s2712_s11 + $0x158] sm:$0xff] }
 0x3ba   : > { %v1573_v17 = vpop.permute.xlu0 %1572 }
 0x3bb   : > { %v1591_v27 = vadd.f32 %v1583_v10, %v1535_v3  ;;  %v1601_v3 = vld [vmem:[%s2712_s11 + $0x1a8] sm:$0xff] }
 0x3bc   : > { %v1401_v12 = vpop.permute.xlu1 %1400 }
 0x3bd   : > { %v1647_v50 = vadd.f32 %v1639_v20, %v1591_v27  ;;  %v1353_v60 = vpop.permute.xlu2 %1352  ;;  %v1416_v18 = vmul.f32 %v1401_v12, %v1376_v9  ;;  %v1585_v27 = vmul.f32 %v1573_v17, %v1545_v62 }
 0x3be   : > { %v1362_v22 = vmul.f32 %v1353_v60, %v1314_v42 }
 0x3bf   : > { %v1703_v14 = vadd.f32 %v1695_v13, %v1647_v50  ;;  %v1544_v13 = vld [vmem:[%s2712_s11 + $0x160] sm:$0xff]  ;;  %v1424_v12 = vadd.f32 %v1416_v18, %v1360_v11 }
 0x3c1   : > { %v1751_v25 = vadd.f32 %v1743_v24, %v1703_v14 }
 0x3c2   : > { %v1629_v4 = vpop.permute.xlu0 %1628 }
 0x3c3   : > { %1759 = vst [vmem:[%s3044_s16 + $0x20] sm:$0xff] %v1751_v25  ;;  %v1641_v39 = vmul.f32 %v1629_v4, %v1601_v3  ;;  %v1600_v25 = vld [vmem:[%s2712_s11 + $0x168] sm:$0xff]  ;;  %v2432_v4 = vld [vmem:[%s2712_s11 + $0x1f8] sm:$0xff] }
 0x3c5   : > { %v1457_v26 = vpop.permute.xlu1 %1456 }
 0x3c6   : > { %v1409_v40 = vpop.permute.xlu2 %1408  ;;  %v1472_v20 = vmul.f32 %v1457_v26, %v1432_v59 }
 0x3c7   : > { %v1418_v41 = vmul.f32 %v1409_v40, %v1378_v33  ;;  %v1656_v33 = vld [vmem:[%s2712_s11 + $0x170] sm:$0xff] }
 0x3c8   : > { %v1480_v55 = vadd.f32 %v1472_v20, %v1424_v12 }
 0x3c9   : > { %v1426_v56 = vadd.f32 %v1418_v41, %v1362_v22 }
 0x3ca   : > { %v1685_v51 = vpop.permute.xlu0 %1684 }
 0x3ce   : > { %v1513_v31 = vpop.permute.xlu1 %1512 }
 0x3cf   : > { %v1465_v45 = vpop.permute.xlu2 %1464  ;;  %v1528_v24 = vmul.f32 %v1513_v31, %v1488_v19 }
 0x3d0   : > { %v1474_v46 = vmul.f32 %v1465_v45, %v1434_v52 }
 0x3d1   : > { %v1536_v41 = vadd.f32 %v1528_v24, %v1480_v55 }
 0x3d2   : > { %v1482_v53 = vadd.f32 %v1474_v46, %v1426_v56  ;;  %v1733_v30 = vpop.permute.xlu0 %1732 }
 0x3d7   : > { %v1569_v21 = vpop.permute.xlu1 %1568 }
 0x3d8   : > { %v1521_v34 = vpop.permute.xlu2 %1520  ;;  %v1584_v26 = vmul.f32 %v1569_v21, %v1544_v13  ;;  %v2433_v21 = vld [vmem:[%s2712_s11 + $0x1b8] sm:$0xff] }
 0x3d9   : > { %v1530_v48 = vmul.f32 %v1521_v34, %v1490_v15  ;;  %v2431_v34 = vld [vmem:[%s2712_s11 + $0xf8] sm:$0xff] }
 0x3da   : > { %v1592_v47 = vadd.f32 %v1584_v26, %v1536_v41 }
 0x3db   : > { %v1538_v0 = vadd.f32 %v1530_v48, %v1482_v53 }
 0x3e0   : > { %v3106_v35 = vpop.permute.xlu1 %1624 }
 0x3e1   : > { %v1577_v36 = vpop.permute.xlu2 %1576  ;;  %v1640_v43 = vmul.f32 %v3106_v35, %v1600_v25 }
 0x3e2   : > { %v1586_v37 = vmul.f32 %v1577_v36, %v1546_v28 }
 0x3e3   : > { %v1648_v35 = vadd.f32 %v1640_v43, %v1592_v47 }
 0x3e4   : > { %v1594_v50 = vadd.f32 %v1586_v37, %v1538_v0 }
 0x3e9   : > { %v3108_v2 = vpop.permute.xlu1 %1680 }
 0x3ea   : > { %v1633_v5 = vpop.permute.xlu2 %1632 }
 0x3eb   : > { %v1642_v7 = vmul.f32 %v1633_v5, %v1602_v6  ;;  %v1697_v5 = vmul.f32 %v1685_v51, %v1657_v16  ;;  %v1696_v51 = vmul.f32 %v3108_v2, %v1656_v33 }
 0x3ed   : > { %v1650_v40 = vadd.f32 %v1642_v7, %v1594_v50 }
 0x3f2   : > { %v1348_v49 = vpop.permute.xlu1 %1347 }
 0x3f3   : > { %v1361_v8 = vmul.f32 %v1348_v49, %v1313_v54  ;;  %v1689_v57 = vpop.permute.xlu2 %1688  ;;  %v1745_v54 = vmul.f32 %v2433_v21, %v1733_v30  ;;  %v1704_v49 = vadd.f32 %v1696_v51, %v1648_v35 }
 0x3f4   : > { %v1698_v14 = vmul.f32 %v1689_v57, %v1658_v38 }
 0x3f5   : > { %v1425_v61 = vadd.f32 %v1417_v1, %v1361_v8  ;;  %v2434_v1 = vld [vmem:[%s2712_s11 + $0x178] sm:$0xff] }
 0x3f6   : > { %v1706_v31 = vadd.f32 %v1698_v14, %v1650_v40 }
 0x3f7   : > { %v1481_v10 = vadd.f32 %v1473_v32, %v1425_v61 }
 0x3f9   : > { %v1537_v60 = vadd.f32 %v1529_v63, %v1481_v10 }
 0x3fb   : > { %v1593_v29 = vadd.f32 %v1585_v27, %v1537_v60  ;;  %v1721_v45 = vpop.permute.xlu1 %1720 }
 0x3fc   : > { %v1742_v17 = vmul.f32 %v2431_v34, %v1721_v45  ;;  %v1737_v36 = vpop.permute.xlu2 %1736 }
 0x3fd   : > { %v1649_v42 = vadd.f32 %v1641_v39, %v1593_v29  ;;  %v1746_v52 = vmul.f32 %v2432_v4, %v1737_v36 }
 0x3fe   : > { %v1750_v15 = vadd.f32 %v1742_v17, %v3092_v23 }
 0x3ff   : > { %v1705_v22 = vadd.f32 %v1697_v5, %v1649_v42  ;;  %v1754_v46 = vadd.f32 %v1746_v52, %v1706_v31 }
 0x400   : > { %1758 = vst [vmem:[%s3044_s16 + $0x18] sm:$0xff] %v1750_v15 }
 0x401   : > { %v1753_v28 = vadd.f32 %v1745_v54, %v1705_v22  ;;  %1762 = vst [vmem:[%s3044_s16 + $0x38] sm:$0xff] %v1754_v46 }
 0x403   : > { %1761 = vst [vmem:[%s3044_s16 + $0x30] sm:$0xff] %v1753_v28  ;;  %v1729_v23 = vpop.permute.xlu1 %1728 }
 0x404   : > { %v1744_v9 = vmul.f32 %v2434_v1, %v1729_v23 }
 0x406   : > { %v1752_v56 = vadd.f32 %v1744_v9, %v1704_v49 }
 0x408   : > { %1760 = vst [vmem:[%s3044_s16 + $0x28] sm:$0xff] %v1752_v56 }
 0x409   : > { %2522 = shalt.err (!%p2519_p10)
}
 0x40a   : > { %s2579_s28 = smov 128   ;;  %s2580_s11 = smov 8  }
 0x40b   : > { %2264 = dma.vmem_to_hbm [thread:$0]  (%p2679_p5), %s1777_s14, 1024, %s1779_s15, %s1764_s10, %s2579_s28, %s2579_s28, %s2580_s11  }
 0x40c PF: > { %p2281_p11 = scmp.ge.s32.totalorder %s2565_s21, 2  ;;  %s1793_s16 = sand.u32 1, %s2553_s18  }
 0x40d   : > { %s1794_s17 = scalar_lea.sflag [#allocation4], %s1793_s16 }
 0x40e   : > { %p2275_p12 = pnand %p2281_p11, %p2646_p6 }
 0x410   : > { %p2276_p13 = pneg %p2275_p12 }
 0x412   : > { %2548 = dma.done.wait (%p2276_p13), %s1794_s17, 1024  }
 0x413   : > { %2550 = vsyncadd (%p2276_p13), %s1794_s17, 4294966272  ;;  %p19_p0 = scmp.ge.s32.totalorder %s2663_s7, 6   ;;  %s3187_s18 = smov %s2557_s19 }
 0x414   : > { %s3188_s19 = smov %s2561_s20  ;;  %s3189_s20 = smov %s2675_s12 }
 0x415   : > { %s3190_s21 = smov %s2663_s7  ;;  %21 = sbr.rel (!%p19_p0) target bundleno = 6 (0x6), region = 89 }
 0x41a   :  { %1800 = vsyncpa [#allocation3], 1 }
 0x41b   :  { %1802 = vsyncpa [#allocation3 + $0x1], 1 }
 0x41c   :  { %1803 = vsyncpa [#allocation6], 1 }
 0x41d   :  { %1804 = vsyncpa [#allocation4], 1 }
 0x41e   :  { %1806 = vsyncpa [#allocation4 + $0x1], 1 }

</bundles_post_ra>
